<compile_context>
chip_gen: v7x
topology: tpu7x:2x2x1
jax: 0.10.0
libtpu: 0.0.40
codegen_flags: <defaults>
</compile_context>

<pallas_src>
import functools

import jax
import jax.numpy as jnp
from jax.experimental import pallas as pl
from jax.experimental.pallas import tpu as pltpu

_BN_EPS = 1e-5
_LANE = 128


def _round_up(x, m):
    return (x + m - 1) // m * m


def _vmem_limit_bytes():
    """Per-generation scoped-VMEM budget: ~72% of physical, capped at 100 MiB."""
    cap = 128 * 1024 * 1024
    try:
        info = pltpu.get_tpu_info()
        cap = int(getattr(info, "vmem_capacity_bytes", cap))
    except Exception:
        pass
    return max(min(int(cap * 0.72), 100 * 1024 * 1024), 32 * 1024 * 1024)


def _pick_band_rows(H, W, cin_p, cout_p, vmem_limit):
    """Largest divisor of H whose per-step working set fits the VMEM budget."""
    w_bytes = 2 * 9 * cin_p * cout_p * 2                # weights, double-buffered
    budget = max(vmem_limit - w_bytes - (4 << 20), 4 << 20)

    def est(th):
        return (2 * th * W * cin_p * 2                  # input band (double-buffered, bf16)
                + 2 * th * W * cout_p * 2               # output band (double-buffered, bf16)
                + 3 * (th + 2) * W * cin_p * 2          # dx-shifted bf16 halo copies
                + th * W * cout_p * 4)                  # f32 accumulator scratch

    for th in range(H, 0, -1):
        if H % th == 0 and est(th) <= budget:
            return th
    return 1


# --------------------------------------------------------------------------- #
# Kernel 1: [optional fused BN-affine + ReLU prologue] -> halo'd row band ->
#           3x3 conv as 9 contiguous bf16 MXU dots (f32 accumulate) ->
#           raw band output + per-(image, band) per-channel sum / sumsq.
# --------------------------------------------------------------------------- #
def _conv3x3_stats_kernel(xm_ref, xt_ref, xb_ref, s_ref, t_ref, w_ref,
                          y_ref, sum_ref, sq_ref,
                          sh0, sh1, sh2, acc_ref, *, apply_act):
    """One (image, row-band) tile per grid step.

    xm_ref  : (1, TH, W, Cin_p)   bf16  raw band rows
    xt_ref  : (1, 1, W, Cin_p)    bf16  raw row above the band (zeros at r == 0)
    xb_ref  : (1, 1, W, Cin_p)    bf16  raw row below the band (zeros at r == last)
    s_ref   : (1, Cin_p)          f32   input-side BN scale (ignored if !apply_act)
    t_ref   : (1, Cin_p)          f32   input-side BN shift (ignored if !apply_act)
    w_ref   : (9, Cin_p, Cout_p)  bf16  conv weights, tap-major (resident)
    y_ref   : (1, TH, W, Cout_p)  bf16  raw conv output band
    sum_ref : (1, 1, 1, Cout_p)   f32   per-(image, band) per-channel sum
    sq_ref  : (1, 1, 1, Cout_p)   f32   per-(image, band) per-channel sumsq
    sh0/1/2 : (TH+2, W, Cin_p)    bf16  dx-shifted activated band copies (scratch)
    acc_ref : (TH*W, Cout_p)      f32   accumulator scratch
    """
    TH, W, cin_p = xm_ref.shape[1], xm_ref.shape[2], xm_ref.shape[3]
    cout_p = w_ref.shape[2]
    r = pl.program_id(1)
    last = pl.num_programs(1) - 1

    def act(v):
        # Fused input-side BN-affine + ReLU prologue (f32 math, bf16 store).
        # TODO(synk): use bf16 VALU math on v6e/v7x (keep f32 on v5e).
        if not apply_act:
            return v
        shp = (1,) * (v.ndim - 1) + (cin_p,)
        v = v.astype(jnp.float32)
        v = jnp.maximum(v * s_ref[...].reshape(shp) + t_ref[...].reshape(shp), 0.0)
        return v.astype(jnp.bfloat16)

    # Center-tap (dx = 1) band with one halo row above/below, in the activated
    # domain.  At the image top/bottom the halo row is the conv's zero padding
    # and must stay exactly zero *after* the prologue affine, hence the pl.when
    # re-zeroing (relu(s*0 + t) can be nonzero).
    sh1[1:TH + 1] = act(xm_ref[0])
    sh1[0:1] = act(xt_ref[0])
    sh1[TH + 1:TH + 2] = act(xb_ref[0])

    @pl.when(r == 0)
    def _():
        sh1[0:1] = jnp.zeros((1, W, cin_p), jnp.bfloat16)

    @pl.when(r == last)
    def _():
        sh1[TH + 1:TH + 2] = jnp.zeros((1, W, cin_p), jnp.bfloat16)

    # dx = 0 / dx = 2 shifted copies (one column-shift pass each) so every MXU
    # feed below is a contiguous leading-row slice + free reshape — never a
    # per-tap strided reshape copy.  The explicit zero column is the conv's
    # left/right SAME padding.
    sh0[:, 1:W, :] = sh1[:, 0:W - 1, :]
    sh0[:, 0:1, :] = jnp.zeros((TH + 2, 1, cin_p), jnp.bfloat16)
    sh2[:, 0:W - 1, :] = sh1[:, 1:W, :]
    sh2[:, W - 1:W, :] = jnp.zeros((TH + 2, 1, cin_p), jnp.bfloat16)

    # 9 taps = 9 contiguous (TH*W, Cin_p) @ (Cin_p, Cout_p) bf16 MXU dots with
    # f32 accumulation (first tap initializes, avoiding an accumulator memset).
    # TODO(synk): pair taps along K (K = 2*Cin_p) to fill the 256-wide MXU on
    #             v6e/v7x; K = 128 is already a full pass on v5e.
    shifts = (sh0, sh1, sh2)
    for dy in range(3):
        for dx in range(3):
            slab = shifts[dx][dy:dy + TH].reshape(TH * W, cin_p)
            contrib = jnp.dot(slab, w_ref[dy * 3 + dx],
                              preferred_element_type=jnp.float32)
            if dy == 0 and dx == 0:
                acc_ref[...] = contrib
            else:
                acc_ref[...] += contrib

    acc = acc_ref[...]
    y_ref[0] = acc.reshape(TH, W, cout_p).astype(y_ref.dtype)
    # Per-(image, band) per-channel raw-output statistics for the two-pass BN.
    # TODO(synk): E[x^2]-E[x]^2 in f32 can cancel at very large N*H*W; switch
    #             to a shifted sumsq if full-resolution stats show drift.
    sum_ref[...] = jnp.sum(acc, axis=0, keepdims=True).reshape(1, 1, 1, cout_p)
    sq_ref[...] = jnp.sum(acc * acc, axis=0, keepdims=True).reshape(1, 1, 1, cout_p)


def _conv3x3_stats(x, x_top, x_bot, s, t, w, *, band_rows, apply_act, vmem_limit):
    N, H, W, cin_p = x.shape
    cout_p = w.shape[-1]
    th = band_rows
    nb = H // th
    kern = functools.partial(_conv3x3_stats_kernel, apply_act=apply_act)
    flops = 2 * N * H * W * 9 * cin_p * cout_p
    bytes_accessed = (x.size * 2 + x_top.size * 2 + x_bot.size * 2 + w.size * 2
                      + (s.size + t.size) * 4
                      + N * H * W * cout_p * 2 + 2 * N * nb * cout_p * 4)
    return pl.pallas_call(
        kern,
        out_shape=(
            jax.ShapeDtypeStruct((N, H, W, cout_p), jnp.bfloat16),   # raw conv out
            jax.ShapeDtypeStruct((N, nb, 1, cout_p), jnp.float32),   # per-band sum
            jax.ShapeDtypeStruct((N, nb, 1, cout_p), jnp.float32),   # per-band sumsq
        ),
        grid_spec=pltpu.PrefetchScalarGridSpec(
            num_scalar_prefetch=0,
            grid=(N, nb),
            in_specs=[
                pl.BlockSpec((1, th, W, cin_p), lambda n, r: (n, r, 0, 0)),
                pl.BlockSpec((1, 1, W, cin_p), lambda n, r: (n, r, 0, 0)),
                pl.BlockSpec((1, 1, W, cin_p), lambda n, r: (n, r, 0, 0)),
                # Resident across the whole grid (constant index_map).
                # TODO(synk): pipeline_mode=pl.Buffered(1) to drop the
                #             duplicate pipeline buffer on these.
                pl.BlockSpec((1, cin_p), lambda n, r: (0, 0)),
                pl.BlockSpec((1, cin_p), lambda n, r: (0, 0)),
                pl.BlockSpec((9, cin_p, cout_p), lambda n, r: (0, 0, 0)),
            ],
            out_specs=[
                pl.BlockSpec((1, th, W, cout_p), lambda n, r: (n, r, 0, 0)),
                pl.BlockSpec((1, 1, 1, cout_p), lambda n, r: (n, r, 0, 0)),
                pl.BlockSpec((1, 1, 1, cout_p), lambda n, r: (n, r, 0, 0)),
            ],
            scratch_shapes=[
                pltpu.VMEM((th + 2, W, cin_p), jnp.bfloat16),    # sh0 (dx = 0)
                pltpu.VMEM((th + 2, W, cin_p), jnp.bfloat16),    # sh1 (dx = 1)
                pltpu.VMEM((th + 2, W, cin_p), jnp.bfloat16),    # sh2 (dx = 2)
                pltpu.VMEM((th * W, cout_p), jnp.float32),       # f32 accumulator
            ],
        ),
        compiler_params=pltpu.CompilerParams(
            dimension_semantics=("parallel", "parallel"),
            vmem_limit_bytes=vmem_limit,
        ),
        cost_estimate=pl.CostEstimate(flops=int(flops), transcendentals=0,
                                      bytes_accessed=int(bytes_accessed)),
    )(x, x_top, x_bot, s, t, w)


# --------------------------------------------------------------------------- #
# Kernel 2: final BN-affine + ReLU epilogue (single FMA per element, bf16 out).
# --------------------------------------------------------------------------- #
def _bn_relu_kernel(y_ref, s_ref, t_ref, o_ref):
    c = y_ref.shape[3]
    y = y_ref[0].astype(jnp.float32)
    s = s_ref[...].reshape(1, 1, c)
    t = t_ref[...].reshape(1, 1, c)
    o_ref[0] = jnp.maximum(y * s + t, 0.0).astype(o_ref.dtype)


def _bn_relu(y, s, t, *, band_rows, vmem_limit):
    N, H, W, c = y.shape
    th = band_rows
    nb = H // th
    bytes_accessed = y.size * 2 + (s.size + t.size) * 4 + y.size * 2
    return pl.pallas_call(
        _bn_relu_kernel,
        out_shape=jax.ShapeDtypeStruct((N, H, W, c), jnp.bfloat16),
        grid_spec=pltpu.PrefetchScalarGridSpec(
            num_scalar_prefetch=0,
            grid=(N, nb),
            in_specs=[
                pl.BlockSpec((1, th, W, c), lambda n, r: (n, r, 0, 0)),
                pl.BlockSpec((1, c), lambda n, r: (0, 0)),
                pl.BlockSpec((1, c), lambda n, r: (0, 0)),
            ],
            out_specs=pl.BlockSpec((1, th, W, c), lambda n, r: (n, r, 0, 0)),
        ),
        compiler_params=pltpu.CompilerParams(
            dimension_semantics=("parallel", "parallel"),
            vmem_limit_bytes=vmem_limit,
        ),
        cost_estimate=pl.CostEstimate(flops=int(2 * y.size), transcendentals=0,
                                      bytes_accessed=int(bytes_accessed)),
    )(y, s, t)


# --------------------------------------------------------------------------- #
# Glue (layout, halo-row gather and tiny per-channel math only)
# --------------------------------------------------------------------------- #
def _prep_conv_weight(w_oihw, cin_p, cout_p):
    # (Cout, Cin, 3, 3) -> (9, Cin_p, Cout_p), tap-major, channel-padded, bf16.
    cout, cin, kh, kw = w_oihw.shape
    w = jnp.transpose(w_oihw, (2, 3, 1, 0))
    w = jnp.pad(w, ((0, 0), (0, 0), (0, cin_p - cin), (0, cout_p - cout)))
    return w.reshape(kh * kw, cin_p, cout_p).astype(jnp.bfloat16)


def _pad_channels(v, c_p):
    return jnp.pad(v.astype(jnp.float32), (0, c_p - v.shape[0]))


def _bn_scale_shift(sum_, sq, gamma_p, beta_p, count):
    # Training-mode BatchNorm: biased variance over (N, H, W).
    mean = sum_ / count
    var = jnp.maximum(sq / count - mean * mean, 0.0)
    s = gamma_p.reshape(1, -1) * jax.lax.rsqrt(var + _BN_EPS)
    t = beta_p.reshape(1, -1) - mean * s
    return s, t


def _band_halos(x, th):
    """Per-band halo rows: the row above / below each band (zeros at image edges)."""
    N, H, W, C = x.shape
    nb = H // th
    zero = jnp.zeros((N, 1, W, C), x.dtype)
    top = jnp.concatenate([zero, x[:, th - 1::th][:, :nb - 1]], axis=1)
    bot = jnp.concatenate([x[:, th::th], zero], axis=1)
    return top, bot


@functools.partial(jax.jit, static_argnames=("band_rows",))
def double_conv(x_nchw, w1, g1, b1, w2, g2, b2, band_rows=None):
    """Forward of DoubleConv: (Conv3x3 bias=False -> BatchNorm2d -> ReLU) * 2."""
    N, cin, H, W = x_nchw.shape
    cmid, cout = w1.shape[0], w2.shape[0]
    cin_p, cmid_p, cout_p = (_round_up(c, _LANE) for c in (cin, cmid, cout))

    vmem_limit = _vmem_limit_bytes()
    if band_rows is None:
        cmax = max(cin_p, cmid_p, cout_p)
        band_rows = _pick_band_rows(H, W, cmax, cmax, vmem_limit)
    if H % band_rows != 0:
        raise ValueError(f"band_rows={band_rows} must divide H={H}")

    # Single NCHW -> NHWC layout change at the PyTorch boundary; lane-dense
    # (channel-padded) bf16 NHWC everywhere in between.
    x = jnp.transpose(x_nchw, (0, 2, 3, 1)).astype(jnp.bfloat16)
    x = jnp.pad(x, ((0, 0), (0, 0), (0, 0), (0, cin_p - cin)))

    w1g = _prep_conv_weight(w1, cin_p, cmid_p)
    w2g = _prep_conv_weight(w2, cmid_p, cout_p)
    count = float(N * H * W)

    # Conv 1 (+ per-band per-channel stats of its raw output).
    dummy = jnp.zeros((1, cin_p), jnp.float32)
    x_top, x_bot = _band_halos(x, band_rows)
    y1, sum1, sq1 = _conv3x3_stats(x, x_top, x_bot, dummy, dummy, w1g,
                                   band_rows=band_rows, apply_act=False,
                                   vmem_limit=vmem_limit)
    s1, t1 = _bn_scale_shift(jnp.sum(sum1, axis=(0, 1)), jnp.sum(sq1, axis=(0, 1)),
                             _pad_channels(g1, cmid_p), _pad_channels(b1, cmid_p),
                             count)

    # Conv 2: BN1 + ReLU fused into its prologue (normalized h1 never hits HBM).
    y1_top, y1_bot = _band_halos(y1, band_rows)
    y2, sum2, sq2 = _conv3x3_stats(y1, y1_top, y1_bot, s1, t1, w2g,
                                   band_rows=band_rows, apply_act=True,
                                   vmem_limit=vmem_limit)
    s2, t2 = _bn_scale_shift(jnp.sum(sum2, axis=(0, 1)), jnp.sum(sq2, axis=(0, 1)),
                             _pad_channels(g2, cout_p), _pad_channels(b2, cout_p),
                             count)

    # BN2 + ReLU epilogue (bf16 output; in a full UNet this would be fused into
    # the next consumer's prologue exactly like BN1 is fused into conv 2).
    out = _bn_relu(y2, s2, t2, band_rows=band_rows, vmem_limit=vmem_limit)
    return jnp.transpose(out[..., :cout], (0, 3, 1, 2)).astype(jnp.float32)


# --------------------------------------------------------------------------- #
# Pure-JAX f32 reference (PyTorch semantics) for a correctness sanity check.
# --------------------------------------------------------------------------- #
def _reference(x_nchw, w1, g1, b1, w2, g2, b2):
    def block(x, w, g, b):
        y = jax.lax.conv_general_dilated(
            x, w, window_strides=(1, 1), padding="SAME",
            dimension_numbers=("NCHW", "OIHW", "NCHW"))
        mean = jnp.mean(y, axis=(0, 2, 3), keepdims=True)
        var = jnp.mean((y - mean) ** 2, axis=(0, 2, 3), keepdims=True)
        y = (y - mean) * jax.lax.rsqrt(var + _BN_EPS)
        y = y * g.reshape(1, -1, 1, 1) + b.reshape(1, -1, 1, 1)
        return jnp.maximum(y, 0.0)
    return block(block(x_nchw, w1, g1, b1), w2, g2, b2)


if __name__ == "__main__":
    N, Cin, Cout, H, W = 2, 4, 8, 16, 16
    Cmid = Cout  # DoubleConv default: mid_channels = out_channels

    key = jax.random.PRNGKey(0)
    kx, k1, k2, kg1, kb1, kg2, kb2 = jax.random.split(key, 7)

    x = jax.random.normal(kx, (N, Cin, H, W), jnp.float32)
    w1 = 0.2 * jax.random.normal(k1, (Cmid, Cin, 3, 3), jnp.float32)
    w2 = 0.2 * jax.random.normal(k2, (Cout, Cmid, 3, 3), jnp.float32)
    g1 = 1.0 + 0.1 * jax.random.normal(kg1, (Cmid,), jnp.float32)
    b1 = 0.1 * jax.random.normal(kb1, (Cmid,), jnp.float32)
    g2 = 1.0 + 0.1 * jax.random.normal(kg2, (Cout,), jnp.float32)
    b2 = 0.1 * jax.random.normal(kb2, (Cout,), jnp.float32)

    ref = _reference(x, w1, g1, b1, w2, g2, b2)

    # Forced 4-row bands (4 bands over H=16) exercise the first / interior /
    # last halo handling; the default call exercises the auto band-size pick.
    out_banded = jax.block_until_ready(
        double_conv(x, w1, g1, b1, w2, g2, b2, band_rows=4))
    out_auto = jax.block_until_ready(double_conv(x, w1, g1, b1, w2, g2, b2))

    assert out_banded.shape == (N, Cout, H, W), out_banded.shape
    for name, out in (("banded", out_banded), ("auto", out_auto)):
        err = float(jnp.max(jnp.abs(out - ref)))
        # Tolerance accounts for bf16 MXU inputs / bf16 intermediates vs the
        # pure-f32 reference; real bugs (halo misalignment, wrong BN stats)
        # would be O(1).
        assert bool(jnp.allclose(out, ref, atol=5e-2, rtol=5e-2)), (
            f"{name}: mismatch vs reference, max abs diff = {err}")
    print("KERNEL_OK")
</pallas_src>

<mosaic_0001>
module attributes {stable_mosaic.version = 11 : i64} {
  func.func @_conv3x3_stats_kernel(%arg0: i32, %arg1: i32, %arg2: memref<1x4x16x128xbf16, #tpu.memory_space<vmem>>, %arg3: memref<1x1x16x128xbf16, #tpu.memory_space<vmem>>, %arg4: memref<1x1x16x128xbf16, #tpu.memory_space<vmem>>, %arg5: memref<1x128xf32, #tpu.memory_space<vmem>>, %arg6: memref<1x128xf32, #tpu.memory_space<vmem>>, %arg7: memref<9x128x128xbf16, #tpu.memory_space<vmem>>, %arg8: memref<1x4x16x128xbf16, #tpu.memory_space<vmem>>, %arg9: memref<1x1x1x128xf32, #tpu.memory_space<vmem>>, %arg10: memref<1x1x1x128xf32, #tpu.memory_space<vmem>>, %arg11: memref<6x16x128xbf16, #tpu.memory_space<vmem>>, %arg12: memref<6x16x128xbf16, #tpu.memory_space<vmem>>, %arg13: memref<6x16x128xbf16, #tpu.memory_space<vmem>>, %arg14: memref<64x128xf32, #tpu.memory_space<vmem>>) attributes {dimension_semantics = [#tpu.dimension_semantics<parallel>, #tpu.dimension_semantics<parallel>], iteration_bounds = array<i64: 2, 4>, scalar_prefetch = 0 : i64, scratch_operands = 4 : i64, tpu.core_type = #tpu.core_type<tc>, window_params = [{transform_indices = @transform_0, window_bounds = array<i64: 1, 4, 16, 128>}, {transform_indices = @transform_1, window_bounds = array<i64: 1, 1, 16, 128>}, {transform_indices = @transform_2, window_bounds = array<i64: 1, 1, 16, 128>}, {pipeline_mode = #tpu.pipeline_mode<synchronous>, transform_indices = @transform_3, window_bounds = array<i64: 1, 128>}, {pipeline_mode = #tpu.pipeline_mode<synchronous>, transform_indices = @transform_4, window_bounds = array<i64: 1, 128>}, {pipeline_mode = #tpu.pipeline_mode<synchronous>, transform_indices = @transform_5, window_bounds = array<i64: 9, 128, 128>}, {transform_indices = @transform_6, window_bounds = array<i64: 1, 4, 16, 128>}, {transform_indices = @transform_7, window_bounds = array<i64: 1, 1, 1, 128>}, {transform_indices = @transform_8, window_bounds = array<i64: 1, 1, 1, 128>}]} {
    %c0 = arith.constant 0 : index
    %c0_0 = arith.constant 0 : index
    %c0_1 = arith.constant 0 : index
    %c0_2 = arith.constant 0 : index
    %0 = vector.load %arg2[%c0, %c0_0, %c0_1, %c0_2] : memref<1x4x16x128xbf16, #tpu.memory_space<vmem>>, vector<1x4x16x128xbf16>
    %1 = vector.shape_cast %0 : vector<1x4x16x128xbf16> to vector<4x16x128xbf16>
    %c1 = arith.constant 1 : index
    %c0_3 = arith.constant 0 : index
    %c0_4 = arith.constant 0 : index
    %2 = vector.load %arg12[%c1, %c0_3, %c0_4] : memref<6x16x128xbf16, #tpu.memory_space<vmem>>, vector<4x16x128xbf16>
    tpu.vector_store %arg12[%c1, %c0_3, %c0_4], %1 {strides = array<i32>} : memref<6x16x128xbf16, #tpu.memory_space<vmem>>, vector<4x16x128xbf16>,
    %c0_5 = arith.constant 0 : index
    %c0_6 = arith.constant 0 : index
    %c0_7 = arith.constant 0 : index
    %c0_8 = arith.constant 0 : index
    %3 = vector.load %arg3[%c0_5, %c0_6, %c0_7, %c0_8] : memref<1x1x16x128xbf16, #tpu.memory_space<vmem>>, vector<1x1x16x128xbf16>
    %4 = vector.shape_cast %3 : vector<1x1x16x128xbf16> to vector<1x16x128xbf16>
    %c0_9 = arith.constant 0 : index
    %c0_10 = arith.constant 0 : index
    %c0_11 = arith.constant 0 : index
    %5 = vector.load %arg12[%c0_9, %c0_10, %c0_11] : memref<6x16x128xbf16, #tpu.memory_space<vmem>>, vector<1x16x128xbf16>
    tpu.vector_store %arg12[%c0_9, %c0_10, %c0_11], %4 {strides = array<i32>} : memref<6x16x128xbf16, #tpu.memory_space<vmem>>, vector<1x16x128xbf16>,
    %c0_12 = arith.constant 0 : index
    %c0_13 = arith.constant 0 : index
    %c0_14 = arith.constant 0 : index
    %c0_15 = arith.constant 0 : index
    %6 = vector.load %arg4[%c0_12, %c0_13, %c0_14, %c0_15] : memref<1x1x16x128xbf16, #tpu.memory_space<vmem>>, vector<1x1x16x128xbf16>
    %7 = vector.shape_cast %6 : vector<1x1x16x128xbf16> to vector<1x16x128xbf16>
    %c5 = arith.constant 5 : index
    %c0_16 = arith.constant 0 : index
    %c0_17 = arith.constant 0 : index
    %8 = vector.load %arg12[%c5, %c0_16, %c0_17] : memref<6x16x128xbf16, #tpu.memory_space<vmem>>, vector<1x16x128xbf16>
    tpu.vector_store %arg12[%c5, %c0_16, %c0_17], %7 {strides = array<i32>} : memref<6x16x128xbf16, #tpu.memory_space<vmem>>, vector<1x16x128xbf16>,
    %c0_i32 = arith.constant 0 : i32
    %9 = arith.cmpi eq, %arg1, %c0_i32 : i32
    %10 = arith.extui %9 : i1 to i32
    %c0_i32_18 = arith.constant 0 : i32
    %11 = arith.cmpi ne, %10, %c0_i32_18 : i32
    scf.if %11 {
      %cst_145 = arith.constant 0.000000e+00 : bf16
      %108 = vector.broadcast %cst_145 : bf16 to vector<1x16x128xbf16>
      %c0_146 = arith.constant 0 : index
      %c0_147 = arith.constant 0 : index
      %c0_148 = arith.constant 0 : index
      %109 = vector.load %arg12[%c0_146, %c0_147, %c0_148] : memref<6x16x128xbf16, #tpu.memory_space<vmem>>, vector<1x16x128xbf16>
      tpu.vector_store %arg12[%c0_146, %c0_147, %c0_148], %108 {strides = array<i32>} : memref<6x16x128xbf16, #tpu.memory_space<vmem>>, vector<1x16x128xbf16>,
    } else {
    }
    %c3_i32 = arith.constant 3 : i32
    %12 = arith.cmpi eq, %arg1, %c3_i32 : i32
    %13 = arith.extui %12 : i1 to i32
    %c0_i32_19 = arith.constant 0 : i32
    %14 = arith.cmpi ne, %13, %c0_i32_19 : i32
    scf.if %14 {
      %cst_145 = arith.constant 0.000000e+00 : bf16
      %108 = vector.broadcast %cst_145 : bf16 to vector<1x16x128xbf16>
      %c5_146 = arith.constant 5 : index
      %c0_147 = arith.constant 0 : index
      %c0_148 = arith.constant 0 : index
      %109 = vector.load %arg12[%c5_146, %c0_147, %c0_148] : memref<6x16x128xbf16, #tpu.memory_space<vmem>>, vector<1x16x128xbf16>
      tpu.vector_store %arg12[%c5_146, %c0_147, %c0_148], %108 {strides = array<i32>} : memref<6x16x128xbf16, #tpu.memory_space<vmem>>, vector<1x16x128xbf16>,
    } else {
    }
    %c0_20 = arith.constant 0 : index
    %c0_21 = arith.constant 0 : index
    %c0_22 = arith.constant 0 : index
    %15 = vector.load %arg12[%c0_20, %c0_21, %c0_22] : memref<6x16x128xbf16, #tpu.memory_space<vmem>>, vector<6x15x128xbf16>
    %c0_23 = arith.constant 0 : index
    %c1_24 = arith.constant 1 : index
    %c0_25 = arith.constant 0 : index
    %16 = vector.load %arg11[%c0_23, %c1_24, %c0_25] : memref<6x16x128xbf16, #tpu.memory_space<vmem>>, vector<6x15x128xbf16>
    tpu.vector_store %arg11[%c0_23, %c1_24, %c0_25], %15 {strides = array<i32>} : memref<6x16x128xbf16, #tpu.memory_space<vmem>>, vector<6x15x128xbf16>,
    %cst = arith.constant 0.000000e+00 : bf16
    %17 = vector.broadcast %cst : bf16 to vector<6x1x128xbf16>
    %c0_26 = arith.constant 0 : index
    %c0_27 = arith.constant 0 : index
    %c0_28 = arith.constant 0 : index
    %18 = vector.load %arg11[%c0_26, %c0_27, %c0_28] : memref<6x16x128xbf16, #tpu.memory_space<vmem>>, vector<6x1x128xbf16>
    tpu.vector_store %arg11[%c0_26, %c0_27, %c0_28], %17 {strides = array<i32>} : memref<6x16x128xbf16, #tpu.memory_space<vmem>>, vector<6x1x128xbf16>,
    %c0_29 = arith.constant 0 : index
    %c1_30 = arith.constant 1 : index
    %c0_31 = arith.constant 0 : index
    %19 = vector.load %arg12[%c0_29, %c1_30, %c0_31] : memref<6x16x128xbf16, #tpu.memory_space<vmem>>, vector<6x15x128xbf16>
    %c0_32 = arith.constant 0 : index
    %c0_33 = arith.constant 0 : index
    %c0_34 = arith.constant 0 : index
    %20 = vector.load %arg13[%c0_32, %c0_33, %c0_34] : memref<6x16x128xbf16, #tpu.memory_space<vmem>>, vector<6x15x128xbf16>
    tpu.vector_store %arg13[%c0_32, %c0_33, %c0_34], %19 {strides = array<i32>} : memref<6x16x128xbf16, #tpu.memory_space<vmem>>, vector<6x15x128xbf16>,
    %cst_35 = arith.constant 0.000000e+00 : bf16
    %21 = vector.broadcast %cst_35 : bf16 to vector<6x1x128xbf16>
    %c0_36 = arith.constant 0 : index
    %c15 = arith.constant 15 : index
    %c0_37 = arith.constant 0 : index
    %22 = vector.load %arg13[%c0_36, %c15, %c0_37] : memref<6x16x128xbf16, #tpu.memory_space<vmem>>, vector<6x1x128xbf16>
    tpu.vector_store %arg13[%c0_36, %c15, %c0_37], %21 {strides = array<i32>} : memref<6x16x128xbf16, #tpu.memory_space<vmem>>, vector<6x1x128xbf16>,
    %c0_38 = arith.constant 0 : index
    %c0_39 = arith.constant 0 : index
    %c0_40 = arith.constant 0 : index
    %23 = vector.load %arg11[%c0_38, %c0_39, %c0_40] : memref<6x16x128xbf16, #tpu.memory_space<vmem>>, vector<4x16x128xbf16>
    %24 = vector.shape_cast %23 : vector<4x16x128xbf16> to vector<64x128xbf16>
    %c0_41 = arith.constant 0 : index
    %c0_42 = arith.constant 0 : index
    %c0_43 = arith.constant 0 : index
    %25 = vector.load %arg7[%c0_41, %c0_42, %c0_43] : memref<9x128x128xbf16, #tpu.memory_space<vmem>>, vector<1x128x128xbf16>
    %26 = vector.shape_cast %25 : vector<1x128x128xbf16> to vector<128x128xbf16>
    %cst_44 = arith.constant dense<0.000000e+00> : vector<64x128xf32>
    %27 = tpu.matmul %24, %26, %cst_44 {dimension_numbers = #tpu.dot_dimension_numbers<[1], [0], [0], [1], [0, 0, 1, 1], [], []>} : vector<64x128xbf16>, vector<128x128xbf16>, vector<64x128xf32> -> vector<64x128xf32>
    %c0_45 = arith.constant 0 : index
    %c0_46 = arith.constant 0 : index
    %28 = vector.load %arg14[%c0_45, %c0_46] : memref<64x128xf32, #tpu.memory_space<vmem>>, vector<64x128xf32>
    tpu.vector_store %arg14[%c0_45, %c0_46], %27 {strides = array<i32>} : memref<64x128xf32, #tpu.memory_space<vmem>>, vector<64x128xf32>,
    %c0_47 = arith.constant 0 : index
    %c0_48 = arith.constant 0 : index
    %c0_49 = arith.constant 0 : index
    %29 = vector.load %arg12[%c0_47, %c0_48, %c0_49] : memref<6x16x128xbf16, #tpu.memory_space<vmem>>, vector<4x16x128xbf16>
    %30 = vector.shape_cast %29 : vector<4x16x128xbf16> to vector<64x128xbf16>
    %c1_50 = arith.constant 1 : index
    %c0_51 = arith.constant 0 : index
    %c0_52 = arith.constant 0 : index
    %31 = vector.load %arg7[%c1_50, %c0_51, %c0_52] : memref<9x128x128xbf16, #tpu.memory_space<vmem>>, vector<1x128x128xbf16>
    %32 = vector.shape_cast %31 : vector<1x128x128xbf16> to vector<128x128xbf16>
    %cst_53 = arith.constant dense<0.000000e+00> : vector<64x128xf32>
    %33 = tpu.matmul %30, %32, %cst_53 {dimension_numbers = #tpu.dot_dimension_numbers<[1], [0], [0], [1], [0, 0, 1, 1], [], []>} : vector<64x128xbf16>, vector<128x128xbf16>, vector<64x128xf32> -> vector<64x128xf32>
    %c0_54 = arith.constant 0 : index
    %c0_55 = arith.constant 0 : index
    %34 = vector.load %arg14[%c0_54, %c0_55] : memref<64x128xf32, #tpu.memory_space<vmem>>, vector<64x128xf32>
    %35 = arith.addf %34, %33 : vector<64x128xf32>
    %c0_56 = arith.constant 0 : index
    %c0_57 = arith.constant 0 : index
    %36 = vector.load %arg14[%c0_56, %c0_57] : memref<64x128xf32, #tpu.memory_space<vmem>>, vector<64x128xf32>
    tpu.vector_store %arg14[%c0_56, %c0_57], %35 {strides = array<i32>} : memref<64x128xf32, #tpu.memory_space<vmem>>, vector<64x128xf32>,
    %c0_58 = arith.constant 0 : index
    %c0_59 = arith.constant 0 : index
    %c0_60 = arith.constant 0 : index
    %37 = vector.load %arg13[%c0_58, %c0_59, %c0_60] : memref<6x16x128xbf16, #tpu.memory_space<vmem>>, vector<4x16x128xbf16>
    %38 = vector.shape_cast %37 : vector<4x16x128xbf16> to vector<64x128xbf16>
    %c2 = arith.constant 2 : index
    %c0_61 = arith.constant 0 : index
    %c0_62 = arith.constant 0 : index
    %39 = vector.load %arg7[%c2, %c0_61, %c0_62] : memref<9x128x128xbf16, #tpu.memory_space<vmem>>, vector<1x128x128xbf16>
    %40 = vector.shape_cast %39 : vector<1x128x128xbf16> to vector<128x128xbf16>
    %cst_63 = arith.constant dense<0.000000e+00> : vector<64x128xf32>
    %41 = tpu.matmul %38, %40, %cst_63 {dimension_numbers = #tpu.dot_dimension_numbers<[1], [0], [0], [1], [0, 0, 1, 1], [], []>} : vector<64x128xbf16>, vector<128x128xbf16>, vector<64x128xf32> -> vector<64x128xf32>
    %c0_64 = arith.constant 0 : index
    %c0_65 = arith.constant 0 : index
    %42 = vector.load %arg14[%c0_64, %c0_65] : memref<64x128xf32, #tpu.memory_space<vmem>>, vector<64x128xf32>
    %43 = arith.addf %42, %41 : vector<64x128xf32>
    %c0_66 = arith.constant 0 : index
    %c0_67 = arith.constant 0 : index
    %44 = vector.load %arg14[%c0_66, %c0_67] : memref<64x128xf32, #tpu.memory_space<vmem>>, vector<64x128xf32>
    tpu.vector_store %arg14[%c0_66, %c0_67], %43 {strides = array<i32>} : memref<64x128xf32, #tpu.memory_space<vmem>>, vector<64x128xf32>,
    %c1_68 = arith.constant 1 : index
    %c0_69 = arith.constant 0 : index
    %c0_70 = arith.constant 0 : index
    %45 = vector.load %arg11[%c1_68, %c0_69, %c0_70] : memref<6x16x128xbf16, #tpu.memory_space<vmem>>, vector<4x16x128xbf16>
    %46 = vector.shape_cast %45 : vector<4x16x128xbf16> to vector<64x128xbf16>
    %c3 = arith.constant 3 : index
    %c0_71 = arith.constant 0 : index
    %c0_72 = arith.constant 0 : index
    %47 = vector.load %arg7[%c3, %c0_71, %c0_72] : memref<9x128x128xbf16, #tpu.memory_space<vmem>>, vector<1x128x128xbf16>
    %48 = vector.shape_cast %47 : vector<1x128x128xbf16> to vector<128x128xbf16>
    %cst_73 = arith.constant dense<0.000000e+00> : vector<64x128xf32>
    %49 = tpu.matmul %46, %48, %cst_73 {dimension_numbers = #tpu.dot_dimension_numbers<[1], [0], [0], [1], [0, 0, 1, 1], [], []>} : vector<64x128xbf16>, vector<128x128xbf16>, vector<64x128xf32> -> vector<64x128xf32>
    %c0_74 = arith.constant 0 : index
    %c0_75 = arith.constant 0 : index
    %50 = vector.load %arg14[%c0_74, %c0_75] : memref<64x128xf32, #tpu.memory_space<vmem>>, vector<64x128xf32>
    %51 = arith.addf %50, %49 : vector<64x128xf32>
    %c0_76 = arith.constant 0 : index
    %c0_77 = arith.constant 0 : index
    %52 = vector.load %arg14[%c0_76, %c0_77] : memref<64x128xf32, #tpu.memory_space<vmem>>, vector<64x128xf32>
    tpu.vector_store %arg14[%c0_76, %c0_77], %51 {strides = array<i32>} : memref<64x128xf32, #tpu.memory_space<vmem>>, vector<64x128xf32>,
    %c1_78 = arith.constant 1 : index
    %c0_79 = arith.constant 0 : index
    %c0_80 = arith.constant 0 : index
    %53 = vector.load %arg12[%c1_78, %c0_79, %c0_80] : memref<6x16x128xbf16, #tpu.memory_space<vmem>>, vector<4x16x128xbf16>
    %54 = vector.shape_cast %53 : vector<4x16x128xbf16> to vector<64x128xbf16>
    %c4 = arith.constant 4 : index
    %c0_81 = arith.constant 0 : index
    %c0_82 = arith.constant 0 : index
    %55 = vector.load %arg7[%c4, %c0_81, %c0_82] : memref<9x128x128xbf16, #tpu.memory_space<vmem>>, vector<1x128x128xbf16>
    %56 = vector.shape_cast %55 : vector<1x128x128xbf16> to vector<128x128xbf16>
    %cst_83 = arith.constant dense<0.000000e+00> : vector<64x128xf32>
    %57 = tpu.matmul %54, %56, %cst_83 {dimension_numbers = #tpu.dot_dimension_numbers<[1], [0], [0], [1], [0, 0, 1, 1], [], []>} : vector<64x128xbf16>, vector<128x128xbf16>, vector<64x128xf32> -> vector<64x128xf32>
    %c0_84 = arith.constant 0 : index
    %c0_85 = arith.constant 0 : index
    %58 = vector.load %arg14[%c0_84, %c0_85] : memref<64x128xf32, #tpu.memory_space<vmem>>, vector<64x128xf32>
    %59 = arith.addf %58, %57 : vector<64x128xf32>
    %c0_86 = arith.constant 0 : index
    %c0_87 = arith.constant 0 : index
    %60 = vector.load %arg14[%c0_86, %c0_87] : memref<64x128xf32, #tpu.memory_space<vmem>>, vector<64x128xf32>
    tpu.vector_store %arg14[%c0_86, %c0_87], %59 {strides = array<i32>} : memref<64x128xf32, #tpu.memory_space<vmem>>, vector<64x128xf32>,
    %c1_88 = arith.constant 1 : index
    %c0_89 = arith.constant 0 : index
    %c0_90 = arith.constant 0 : index
    %61 = vector.load %arg13[%c1_88, %c0_89, %c0_90] : memref<6x16x128xbf16, #tpu.memory_space<vmem>>, vector<4x16x128xbf16>
    %62 = vector.shape_cast %61 : vector<4x16x128xbf16> to vector<64x128xbf16>
    %c5_91 = arith.constant 5 : index
    %c0_92 = arith.constant 0 : index
    %c0_93 = arith.constant 0 : index
    %63 = vector.load %arg7[%c5_91, %c0_92, %c0_93] : memref<9x128x128xbf16, #tpu.memory_space<vmem>>, vector<1x128x128xbf16>
    %64 = vector.shape_cast %63 : vector<1x128x128xbf16> to vector<128x128xbf16>
    %cst_94 = arith.constant dense<0.000000e+00> : vector<64x128xf32>
    %65 = tpu.matmul %62, %64, %cst_94 {dimension_numbers = #tpu.dot_dimension_numbers<[1], [0], [0], [1], [0, 0, 1, 1], [], []>} : vector<64x128xbf16>, vector<128x128xbf16>, vector<64x128xf32> -> vector<64x128xf32>
    %c0_95 = arith.constant 0 : index
    %c0_96 = arith.constant 0 : index
    %66 = vector.load %arg14[%c0_95, %c0_96] : memref<64x128xf32, #tpu.memory_space<vmem>>, vector<64x128xf32>
    %67 = arith.addf %66, %65 : vector<64x128xf32>
    %c0_97 = arith.constant 0 : index
    %c0_98 = arith.constant 0 : index
    %68 = vector.load %arg14[%c0_97, %c0_98] : memref<64x128xf32, #tpu.memory_space<vmem>>, vector<64x128xf32>
    tpu.vector_store %arg14[%c0_97, %c0_98], %67 {strides = array<i32>} : memref<64x128xf32, #tpu.memory_space<vmem>>, vector<64x128xf32>,
    %c2_99 = arith.constant 2 : index
    %c0_100 = arith.constant 0 : index
    %c0_101 = arith.constant 0 : index
    %69 = vector.load %arg11[%c2_99, %c0_100, %c0_101] : memref<6x16x128xbf16, #tpu.memory_space<vmem>>, vector<4x16x128xbf16>
    %70 = vector.shape_cast %69 : vector<4x16x128xbf16> to vector<64x128xbf16>
    %c6 = arith.constant 6 : index
    %c0_102 = arith.constant 0 : index
    %c0_103 = arith.constant 0 : index
    %71 = vector.load %arg7[%c6, %c0_102, %c0_103] : memref<9x128x128xbf16, #tpu.memory_space<vmem>>, vector<1x128x128xbf16>
    %72 = vector.shape_cast %71 : vector<1x128x128xbf16> to vector<128x128xbf16>
    %cst_104 = arith.constant dense<0.000000e+00> : vector<64x128xf32>
    %73 = tpu.matmul %70, %72, %cst_104 {dimension_numbers = #tpu.dot_dimension_numbers<[1], [0], [0], [1], [0, 0, 1, 1], [], []>} : vector<64x128xbf16>, vector<128x128xbf16>, vector<64x128xf32> -> vector<64x128xf32>
    %c0_105 = arith.constant 0 : index
    %c0_106 = arith.constant 0 : index
    %74 = vector.load %arg14[%c0_105, %c0_106] : memref<64x128xf32, #tpu.memory_space<vmem>>, vector<64x128xf32>
    %75 = arith.addf %74, %73 : vector<64x128xf32>
    %c0_107 = arith.constant 0 : index
    %c0_108 = arith.constant 0 : index
    %76 = vector.load %arg14[%c0_107, %c0_108] : memref<64x128xf32, #tpu.memory_space<vmem>>, vector<64x128xf32>
    tpu.vector_store %arg14[%c0_107, %c0_108], %75 {strides = array<i32>} : memref<64x128xf32, #tpu.memory_space<vmem>>, vector<64x128xf32>,
    %c2_109 = arith.constant 2 : index
    %c0_110 = arith.constant 0 : index
    %c0_111 = arith.constant 0 : index
    %77 = vector.load %arg12[%c2_109, %c0_110, %c0_111] : memref<6x16x128xbf16, #tpu.memory_space<vmem>>, vector<4x16x128xbf16>
    %78 = vector.shape_cast %77 : vector<4x16x128xbf16> to vector<64x128xbf16>
    %c7 = arith.constant 7 : index
    %c0_112 = arith.constant 0 : index
    %c0_113 = arith.constant 0 : index
    %79 = vector.load %arg7[%c7, %c0_112, %c0_113] : memref<9x128x128xbf16, #tpu.memory_space<vmem>>, vector<1x128x128xbf16>
    %80 = vector.shape_cast %79 : vector<1x128x128xbf16> to vector<128x128xbf16>
    %cst_114 = arith.constant dense<0.000000e+00> : vector<64x128xf32>
    %81 = tpu.matmul %78, %80, %cst_114 {dimension_numbers = #tpu.dot_dimension_numbers<[1], [0], [0], [1], [0, 0, 1, 1], [], []>} : vector<64x128xbf16>, vector<128x128xbf16>, vector<64x128xf32> -> vector<64x128xf32>
    %c0_115 = arith.constant 0 : index
    %c0_116 = arith.constant 0 : index
    %82 = vector.load %arg14[%c0_115, %c0_116] : memref<64x128xf32, #tpu.memory_space<vmem>>, vector<64x128xf32>
    %83 = arith.addf %82, %81 : vector<64x128xf32>
    %c0_117 = arith.constant 0 : index
    %c0_118 = arith.constant 0 : index
    %84 = vector.load %arg14[%c0_117, %c0_118] : memref<64x128xf32, #tpu.memory_space<vmem>>, vector<64x128xf32>
    tpu.vector_store %arg14[%c0_117, %c0_118], %83 {strides = array<i32>} : memref<64x128xf32, #tpu.memory_space<vmem>>, vector<64x128xf32>,
    %c2_119 = arith.constant 2 : index
    %c0_120 = arith.constant 0 : index
    %c0_121 = arith.constant 0 : index
    %85 = vector.load %arg13[%c2_119, %c0_120, %c0_121] : memref<6x16x128xbf16, #tpu.memory_space<vmem>>, vector<4x16x128xbf16>
    %86 = vector.shape_cast %85 : vector<4x16x128xbf16> to vector<64x128xbf16>
    %c8 = arith.constant 8 : index
    %c0_122 = arith.constant 0 : index
    %c0_123 = arith.constant 0 : index
    %87 = vector.load %arg7[%c8, %c0_122, %c0_123] : memref<9x128x128xbf16, #tpu.memory_space<vmem>>, vector<1x128x128xbf16>
    %88 = vector.shape_cast %87 : vector<1x128x128xbf16> to vector<128x128xbf16>
    %cst_124 = arith.constant dense<0.000000e+00> : vector<64x128xf32>
    %89 = tpu.matmul %86, %88, %cst_124 {dimension_numbers = #tpu.dot_dimension_numbers<[1], [0], [0], [1], [0, 0, 1, 1], [], []>} : vector<64x128xbf16>, vector<128x128xbf16>, vector<64x128xf32> -> vector<64x128xf32>
    %c0_125 = arith.constant 0 : index
    %c0_126 = arith.constant 0 : index
    %90 = vector.load %arg14[%c0_125, %c0_126] : memref<64x128xf32, #tpu.memory_space<vmem>>, vector<64x128xf32>
    %91 = arith.addf %90, %89 : vector<64x128xf32>
    %c0_127 = arith.constant 0 : index
    %c0_128 = arith.constant 0 : index
    %92 = vector.load %arg14[%c0_127, %c0_128] : memref<64x128xf32, #tpu.memory_space<vmem>>, vector<64x128xf32>
    tpu.vector_store %arg14[%c0_127, %c0_128], %91 {strides = array<i32>} : memref<64x128xf32, #tpu.memory_space<vmem>>, vector<64x128xf32>,
    %c0_129 = arith.constant 0 : index
    %c0_130 = arith.constant 0 : index
    %93 = vector.load %arg14[%c0_129, %c0_130] : memref<64x128xf32, #tpu.memory_space<vmem>>, vector<64x128xf32>
    %94 = vector.shape_cast %93 : vector<64x128xf32> to vector<4x16x128xf32>
    %95 = arith.truncf %94 : vector<4x16x128xf32> to vector<4x16x128xbf16>
    %c0_131 = arith.constant 0 : index
    %c0_132 = arith.constant 0 : index
    %c0_133 = arith.constant 0 : index
    %c0_134 = arith.constant 0 : index
    %96 = vector.load %arg8[%c0_131, %c0_132, %c0_133, %c0_134] : memref<1x4x16x128xbf16, #tpu.memory_space<vmem>>, vector<1x4x16x128xbf16>
    %97 = vector.shape_cast %96 : vector<1x4x16x128xbf16> to vector<4x16x128xbf16>
    %98 = vector.shape_cast %95 : vector<4x16x128xbf16> to vector<1x4x16x128xbf16>
    tpu.vector_store %arg8[%c0_131, %c0_132, %c0_133, %c0_134], %98 {strides = array<i32>} : memref<1x4x16x128xbf16, #tpu.memory_space<vmem>>, vector<1x4x16x128xbf16>,
    %cst_135 = arith.constant dense<0.000000e+00> : vector<128xf32>
    %99 = vector.multi_reduction <add>, %93, %cst_135 [0] : vector<64x128xf32> to vector<128xf32>
    %100 = vector.shape_cast %99 : vector<128xf32> to vector<1x128xf32>
    %101 = vector.shape_cast %100 : vector<1x128xf32> to vector<1x1x1x128xf32>
    %c0_136 = arith.constant 0 : index
    %c0_137 = arith.constant 0 : index
    %c0_138 = arith.constant 0 : index
    %c0_139 = arith.constant 0 : index
    %102 = vector.load %arg9[%c0_136, %c0_137, %c0_138, %c0_139] : memref<1x1x1x128xf32, #tpu.memory_space<vmem>>, vector<1x1x1x128xf32>
    tpu.vector_store %arg9[%c0_136, %c0_137, %c0_138, %c0_139], %101 {strides = array<i32>} : memref<1x1x1x128xf32, #tpu.memory_space<vmem>>, vector<1x1x1x128xf32>,
    %103 = arith.mulf %93, %93 : vector<64x128xf32>
    %cst_140 = arith.constant dense<0.000000e+00> : vector<128xf32>
    %104 = vector.multi_reduction <add>, %103, %cst_140 [0] : vector<64x128xf32> to vector<128xf32>
    %105 = vector.shape_cast %104 : vector<128xf32> to vector<1x128xf32>
    %106 = vector.shape_cast %105 : vector<1x128xf32> to vector<1x1x1x128xf32>
    %c0_141 = arith.constant 0 : index
    %c0_142 = arith.constant 0 : index
    %c0_143 = arith.constant 0 : index
    %c0_144 = arith.constant 0 : index
    %107 = vector.load %arg10[%c0_141, %c0_142, %c0_143, %c0_144] : memref<1x1x1x128xf32, #tpu.memory_space<vmem>>, vector<1x1x1x128xf32>
    tpu.vector_store %arg10[%c0_141, %c0_142, %c0_143, %c0_144], %106 {strides = array<i32>} : memref<1x1x1x128xf32, #tpu.memory_space<vmem>>, vector<1x1x1x128xf32>,
    return
  }
  func.func @transform_0(%arg0: i32, %arg1: i32) -> (i32, i32, i32, i32) {
    %c0_i32 = arith.constant 0 : i32
    %c0_i32_0 = arith.constant 0 : i32
    %c0_i32_1 = arith.constant 0 : i32
    return %arg0, %arg1, %c0_i32, %c0_i32_0 : i32, i32, i32, i32
  }
  func.func @transform_1(%arg0: i32, %arg1: i32) -> (i32, i32, i32, i32) {
    %c0_i32 = arith.constant 0 : i32
    %c0_i32_0 = arith.constant 0 : i32
    %c0_i32_1 = arith.constant 0 : i32
    return %arg0, %arg1, %c0_i32, %c0_i32_0 : i32, i32, i32, i32
  }
  func.func @transform_2(%arg0: i32, %arg1: i32) -> (i32, i32, i32, i32) {
    %c0_i32 = arith.constant 0 : i32
    %c0_i32_0 = arith.constant 0 : i32
    %c0_i32_1 = arith.constant 0 : i32
    return %arg0, %arg1, %c0_i32, %c0_i32_0 : i32, i32, i32, i32
  }
  func.func @transform_3(%arg0: i32, %arg1: i32) -> (i32, i32) {
    %c0_i32 = arith.constant 0 : i32
    %c0_i32_0 = arith.constant 0 : i32
    %c0_i32_1 = arith.constant 0 : i32
    return %c0_i32, %c0_i32_0 : i32, i32
  }
  func.func @transform_4(%arg0: i32, %arg1: i32) -> (i32, i32) {
    %c0_i32 = arith.constant 0 : i32
    %c0_i32_0 = arith.constant 0 : i32
    %c0_i32_1 = arith.constant 0 : i32
    return %c0_i32, %c0_i32_0 : i32, i32
  }
  func.func @transform_5(%arg0: i32, %arg1: i32) -> (i32, i32, i32) {
    %c0_i32 = arith.constant 0 : i32
    %c0_i32_0 = arith.constant 0 : i32
    %c0_i32_1 = arith.constant 0 : i32
    %c0_i32_2 = arith.constant 0 : i32
    return %c0_i32, %c0_i32_0, %c0_i32_1 : i32, i32, i32
  }
  func.func @transform_6(%arg0: i32, %arg1: i32) -> (i32, i32, i32, i32) {
    %c0_i32 = arith.constant 0 : i32
    %c0_i32_0 = arith.constant 0 : i32
    %c0_i32_1 = arith.constant 0 : i32
    return %arg0, %arg1, %c0_i32, %c0_i32_0 : i32, i32, i32, i32
  }
  func.func @transform_7(%arg0: i32, %arg1: i32) -> (i32, i32, i32, i32) {
    %c0_i32 = arith.constant 0 : i32
    %c0_i32_0 = arith.constant 0 : i32
    %c0_i32_1 = arith.constant 0 : i32
    return %arg0, %arg1, %c0_i32, %c0_i32_0 : i32, i32, i32, i32
  }
  func.func @transform_8(%arg0: i32, %arg1: i32) -> (i32, i32, i32, i32) {
    %c0_i32 = arith.constant 0 : i32
    %c0_i32_0 = arith.constant 0 : i32
    %c0_i32_1 = arith.constant 0 : i32
    return %arg0, %arg1, %c0_i32, %c0_i32_0 : i32, i32, i32, i32
  }
}

module attributes {stable_mosaic.version = 11 : i64} {
  func.func @_bn_relu_kernel(%arg0: i32, %arg1: i32, %arg2: memref<1x4x16x128xbf16, #tpu.memory_space<vmem>>, %arg3: memref<1x128xf32, #tpu.memory_space<vmem>>, %arg4: memref<1x128xf32, #tpu.memory_space<vmem>>, %arg5: memref<1x4x16x128xbf16, #tpu.memory_space<vmem>>) attributes {dimension_semantics = [#tpu.dimension_semantics<parallel>, #tpu.dimension_semantics<parallel>], iteration_bounds = array<i64: 2, 4>, scalar_prefetch = 0 : i64, scratch_operands = 0 : i64, tpu.core_type = #tpu.core_type<tc>, window_params = [{transform_indices = @transform_0, window_bounds = array<i64: 1, 4, 16, 128>}, {pipeline_mode = #tpu.pipeline_mode<synchronous>, transform_indices = @transform_1, window_bounds = array<i64: 1, 128>}, {pipeline_mode = #tpu.pipeline_mode<synchronous>, transform_indices = @transform_2, window_bounds = array<i64: 1, 128>}, {transform_indices = @transform_3, window_bounds = array<i64: 1, 4, 16, 128>}]} {
    %c0 = arith.constant 0 : index
    %c0_0 = arith.constant 0 : index
    %c0_1 = arith.constant 0 : index
    %c0_2 = arith.constant 0 : index
    %0 = vector.load %arg2[%c0, %c0_0, %c0_1, %c0_2] : memref<1x4x16x128xbf16, #tpu.memory_space<vmem>>, vector<1x4x16x128xbf16>
    %1 = vector.shape_cast %0 : vector<1x4x16x128xbf16> to vector<4x16x128xbf16>
    %2 = arith.extf %1 : vector<4x16x128xbf16> to vector<4x16x128xf32>
    %c0_3 = arith.constant 0 : index
    %c0_4 = arith.constant 0 : index
    %3 = vector.load %arg3[%c0_3, %c0_4] : memref<1x128xf32, #tpu.memory_space<vmem>>, vector<1x128xf32>
    %4 = vector.shape_cast %3 : vector<1x128xf32> to vector<1x1x128xf32>
    %c0_5 = arith.constant 0 : index
    %c0_6 = arith.constant 0 : index
    %5 = vector.load %arg4[%c0_5, %c0_6] : memref<1x128xf32, #tpu.memory_space<vmem>>, vector<1x128xf32>
    %6 = vector.shape_cast %5 : vector<1x128xf32> to vector<1x1x128xf32>
    %7 = vector.broadcast %4 : vector<1x1x128xf32> to vector<4x16x128xf32>
    %8 = arith.mulf %2, %7 : vector<4x16x128xf32>
    %9 = vector.broadcast %6 : vector<1x1x128xf32> to vector<4x16x128xf32>
    %10 = arith.addf %8, %9 : vector<4x16x128xf32>
    %cst = arith.constant 0.000000e+00 : f32
    %11 = vector.broadcast %cst : f32 to vector<4x16x128xf32>
    %12 = arith.maximumf %10, %11 : vector<4x16x128xf32>
    %13 = arith.truncf %12 : vector<4x16x128xf32> to vector<4x16x128xbf16>
    %c0_7 = arith.constant 0 : index
    %c0_8 = arith.constant 0 : index
    %c0_9 = arith.constant 0 : index
    %c0_10 = arith.constant 0 : index
    %14 = vector.load %arg5[%c0_7, %c0_8, %c0_9, %c0_10] : memref<1x4x16x128xbf16, #tpu.memory_space<vmem>>, vector<1x4x16x128xbf16>
    %15 = vector.shape_cast %14 : vector<1x4x16x128xbf16> to vector<4x16x128xbf16>
    %16 = vector.shape_cast %13 : vector<4x16x128xbf16> to vector<1x4x16x128xbf16>
    tpu.vector_store %arg5[%c0_7, %c0_8, %c0_9, %c0_10], %16 {strides = array<i32>} : memref<1x4x16x128xbf16, #tpu.memory_space<vmem>>, vector<1x4x16x128xbf16>,
    return
  }
  func.func @transform_0(%arg0: i32, %arg1: i32) -> (i32, i32, i32, i32) {
    %c0_i32 = arith.constant 0 : i32
    %c0_i32_0 = arith.constant 0 : i32
    %c0_i32_1 = arith.constant 0 : i32
    return %arg0, %arg1, %c0_i32, %c0_i32_0 : i32, i32, i32, i32
  }
  func.func @transform_1(%arg0: i32, %arg1: i32) -> (i32, i32) {
    %c0_i32 = arith.constant 0 : i32
    %c0_i32_0 = arith.constant 0 : i32
    %c0_i32_1 = arith.constant 0 : i32
    return %c0_i32, %c0_i32_0 : i32, i32
  }
  func.func @transform_2(%arg0: i32, %arg1: i32) -> (i32, i32) {
    %c0_i32 = arith.constant 0 : i32
    %c0_i32_0 = arith.constant 0 : i32
    %c0_i32_1 = arith.constant 0 : i32
    return %c0_i32, %c0_i32_0 : i32, i32
  }
  func.func @transform_3(%arg0: i32, %arg1: i32) -> (i32, i32, i32, i32) {
    %c0_i32 = arith.constant 0 : i32
    %c0_i32_0 = arith.constant 0 : i32
    %c0_i32_1 = arith.constant 0 : i32
    return %arg0, %arg1, %c0_i32, %c0_i32_0 : i32, i32, i32, i32
  }
}

module attributes {stable_mosaic.version = 11 : i64} {
  func.func @_conv3x3_stats_kernel(%arg0: i32, %arg1: i32, %arg2: memref<1x4x16x128xbf16, #tpu.memory_space<vmem>>, %arg3: memref<1x1x16x128xbf16, #tpu.memory_space<vmem>>, %arg4: memref<1x1x16x128xbf16, #tpu.memory_space<vmem>>, %arg5: memref<1x128xf32, #tpu.memory_space<vmem>>, %arg6: memref<1x128xf32, #tpu.memory_space<vmem>>, %arg7: memref<9x128x128xbf16, #tpu.memory_space<vmem>>, %arg8: memref<1x4x16x128xbf16, #tpu.memory_space<vmem>>, %arg9: memref<1x1x1x128xf32, #tpu.memory_space<vmem>>, %arg10: memref<1x1x1x128xf32, #tpu.memory_space<vmem>>, %arg11: memref<6x16x128xbf16, #tpu.memory_space<vmem>>, %arg12: memref<6x16x128xbf16, #tpu.memory_space<vmem>>, %arg13: memref<6x16x128xbf16, #tpu.memory_space<vmem>>, %arg14: memref<64x128xf32, #tpu.memory_space<vmem>>) attributes {dimension_semantics = [#tpu.dimension_semantics<parallel>, #tpu.dimension_semantics<parallel>], iteration_bounds = array<i64: 2, 4>, scalar_prefetch = 0 : i64, scratch_operands = 4 : i64, tpu.core_type = #tpu.core_type<tc>, window_params = [{transform_indices = @transform_0, window_bounds = array<i64: 1, 4, 16, 128>}, {transform_indices = @transform_1, window_bounds = array<i64: 1, 1, 16, 128>}, {transform_indices = @transform_2, window_bounds = array<i64: 1, 1, 16, 128>}, {pipeline_mode = #tpu.pipeline_mode<synchronous>, transform_indices = @transform_3, window_bounds = array<i64: 1, 128>}, {pipeline_mode = #tpu.pipeline_mode<synchronous>, transform_indices = @transform_4, window_bounds = array<i64: 1, 128>}, {pipeline_mode = #tpu.pipeline_mode<synchronous>, transform_indices = @transform_5, window_bounds = array<i64: 9, 128, 128>}, {transform_indices = @transform_6, window_bounds = array<i64: 1, 4, 16, 128>}, {transform_indices = @transform_7, window_bounds = array<i64: 1, 1, 1, 128>}, {transform_indices = @transform_8, window_bounds = array<i64: 1, 1, 1, 128>}]} {
    %c0 = arith.constant 0 : index
    %c0_0 = arith.constant 0 : index
    %c0_1 = arith.constant 0 : index
    %c0_2 = arith.constant 0 : index
    %0 = vector.load %arg2[%c0, %c0_0, %c0_1, %c0_2] : memref<1x4x16x128xbf16, #tpu.memory_space<vmem>>, vector<1x4x16x128xbf16>
    %1 = vector.shape_cast %0 : vector<1x4x16x128xbf16> to vector<4x16x128xbf16>
    %2 = arith.extf %1 : vector<4x16x128xbf16> to vector<4x16x128xf32>
    %c0_3 = arith.constant 0 : index
    %c0_4 = arith.constant 0 : index
    %3 = vector.load %arg5[%c0_3, %c0_4] : memref<1x128xf32, #tpu.memory_space<vmem>>, vector<1x128xf32>
    %4 = vector.shape_cast %3 : vector<1x128xf32> to vector<1x1x128xf32>
    %5 = vector.broadcast %4 : vector<1x1x128xf32> to vector<4x16x128xf32>
    %6 = arith.mulf %2, %5 : vector<4x16x128xf32>
    %c0_5 = arith.constant 0 : index
    %c0_6 = arith.constant 0 : index
    %7 = vector.load %arg6[%c0_5, %c0_6] : memref<1x128xf32, #tpu.memory_space<vmem>>, vector<1x128xf32>
    %8 = vector.shape_cast %7 : vector<1x128xf32> to vector<1x1x128xf32>
    %9 = vector.broadcast %8 : vector<1x1x128xf32> to vector<4x16x128xf32>
    %10 = arith.addf %6, %9 : vector<4x16x128xf32>
    %cst = arith.constant 0.000000e+00 : f32
    %11 = vector.broadcast %cst : f32 to vector<4x16x128xf32>
    %12 = arith.maximumf %10, %11 : vector<4x16x128xf32>
    %13 = arith.truncf %12 : vector<4x16x128xf32> to vector<4x16x128xbf16>
    %c1 = arith.constant 1 : index
    %c0_7 = arith.constant 0 : index
    %c0_8 = arith.constant 0 : index
    %14 = vector.load %arg12[%c1, %c0_7, %c0_8] : memref<6x16x128xbf16, #tpu.memory_space<vmem>>, vector<4x16x128xbf16>
    tpu.vector_store %arg12[%c1, %c0_7, %c0_8], %13 {strides = array<i32>} : memref<6x16x128xbf16, #tpu.memory_space<vmem>>, vector<4x16x128xbf16>,
    %c0_9 = arith.constant 0 : index
    %c0_10 = arith.constant 0 : index
    %c0_11 = arith.constant 0 : index
    %c0_12 = arith.constant 0 : index
    %15 = vector.load %arg3[%c0_9, %c0_10, %c0_11, %c0_12] : memref<1x1x16x128xbf16, #tpu.memory_space<vmem>>, vector<1x1x16x128xbf16>
    %16 = vector.shape_cast %15 : vector<1x1x16x128xbf16> to vector<1x16x128xbf16>
    %17 = arith.extf %16 : vector<1x16x128xbf16> to vector<1x16x128xf32>
    %c0_13 = arith.constant 0 : index
    %c0_14 = arith.constant 0 : index
    %18 = vector.load %arg5[%c0_13, %c0_14] : memref<1x128xf32, #tpu.memory_space<vmem>>, vector<1x128xf32>
    %19 = vector.shape_cast %18 : vector<1x128xf32> to vector<1x1x128xf32>
    %20 = vector.broadcast %19 : vector<1x1x128xf32> to vector<1x16x128xf32>
    %21 = arith.mulf %17, %20 : vector<1x16x128xf32>
    %c0_15 = arith.constant 0 : index
    %c0_16 = arith.constant 0 : index
    %22 = vector.load %arg6[%c0_15, %c0_16] : memref<1x128xf32, #tpu.memory_space<vmem>>, vector<1x128xf32>
    %23 = vector.shape_cast %22 : vector<1x128xf32> to vector<1x1x128xf32>
    %24 = vector.broadcast %23 : vector<1x1x128xf32> to vector<1x16x128xf32>
    %25 = arith.addf %21, %24 : vector<1x16x128xf32>
    %cst_17 = arith.constant 0.000000e+00 : f32
    %26 = vector.broadcast %cst_17 : f32 to vector<1x16x128xf32>
    %27 = arith.maximumf %25, %26 : vector<1x16x128xf32>
    %28 = arith.truncf %27 : vector<1x16x128xf32> to vector<1x16x128xbf16>
    %c0_18 = arith.constant 0 : index
    %c0_19 = arith.constant 0 : index
    %c0_20 = arith.constant 0 : index
    %29 = vector.load %arg12[%c0_18, %c0_19, %c0_20] : memref<6x16x128xbf16, #tpu.memory_space<vmem>>, vector<1x16x128xbf16>
    tpu.vector_store %arg12[%c0_18, %c0_19, %c0_20], %28 {strides = array<i32>} : memref<6x16x128xbf16, #tpu.memory_space<vmem>>, vector<1x16x128xbf16>,
    %c0_21 = arith.constant 0 : index
    %c0_22 = arith.constant 0 : index
    %c0_23 = arith.constant 0 : index
    %c0_24 = arith.constant 0 : index
    %30 = vector.load %arg4[%c0_21, %c0_22, %c0_23, %c0_24] : memref<1x1x16x128xbf16, #tpu.memory_space<vmem>>, vector<1x1x16x128xbf16>
    %31 = vector.shape_cast %30 : vector<1x1x16x128xbf16> to vector<1x16x128xbf16>
    %32 = arith.extf %31 : vector<1x16x128xbf16> to vector<1x16x128xf32>
    %c0_25 = arith.constant 0 : index
    %c0_26 = arith.constant 0 : index
    %33 = vector.load %arg5[%c0_25, %c0_26] : memref<1x128xf32, #tpu.memory_space<vmem>>, vector<1x128xf32>
    %34 = vector.shape_cast %33 : vector<1x128xf32> to vector<1x1x128xf32>
    %35 = vector.broadcast %34 : vector<1x1x128xf32> to vector<1x16x128xf32>
    %36 = arith.mulf %32, %35 : vector<1x16x128xf32>
    %c0_27 = arith.constant 0 : index
    %c0_28 = arith.constant 0 : index
    %37 = vector.load %arg6[%c0_27, %c0_28] : memref<1x128xf32, #tpu.memory_space<vmem>>, vector<1x128xf32>
    %38 = vector.shape_cast %37 : vector<1x128xf32> to vector<1x1x128xf32>
    %39 = vector.broadcast %38 : vector<1x1x128xf32> to vector<1x16x128xf32>
    %40 = arith.addf %36, %39 : vector<1x16x128xf32>
    %cst_29 = arith.constant 0.000000e+00 : f32
    %41 = vector.broadcast %cst_29 : f32 to vector<1x16x128xf32>
    %42 = arith.maximumf %40, %41 : vector<1x16x128xf32>
    %43 = arith.truncf %42 : vector<1x16x128xf32> to vector<1x16x128xbf16>
    %c5 = arith.constant 5 : index
    %c0_30 = arith.constant 0 : index
    %c0_31 = arith.constant 0 : index
    %44 = vector.load %arg12[%c5, %c0_30, %c0_31] : memref<6x16x128xbf16, #tpu.memory_space<vmem>>, vector<1x16x128xbf16>
    tpu.vector_store %arg12[%c5, %c0_30, %c0_31], %43 {strides = array<i32>} : memref<6x16x128xbf16, #tpu.memory_space<vmem>>, vector<1x16x128xbf16>,
    %c0_i32 = arith.constant 0 : i32
    %45 = arith.cmpi eq, %arg1, %c0_i32 : i32
    %46 = arith.extui %45 : i1 to i32
    %c0_i32_32 = arith.constant 0 : i32
    %47 = arith.cmpi ne, %46, %c0_i32_32 : i32
    scf.if %47 {
      %cst_160 = arith.constant 0.000000e+00 : bf16
      %144 = vector.broadcast %cst_160 : bf16 to vector<1x16x128xbf16>
      %c0_161 = arith.constant 0 : index
      %c0_162 = arith.constant 0 : index
      %c0_163 = arith.constant 0 : index
      %145 = vector.load %arg12[%c0_161, %c0_162, %c0_163] : memref<6x16x128xbf16, #tpu.memory_space<vmem>>, vector<1x16x128xbf16>
      tpu.vector_store %arg12[%c0_161, %c0_162, %c0_163], %144 {strides = array<i32>} : memref<6x16x128xbf16, #tpu.memory_space<vmem>>, vector<1x16x128xbf16>,
    } else {
    }
    %c3_i32 = arith.constant 3 : i32
    %48 = arith.cmpi eq, %arg1, %c3_i32 : i32
    %49 = arith.extui %48 : i1 to i32
    %c0_i32_33 = arith.constant 0 : i32
    %50 = arith.cmpi ne, %49, %c0_i32_33 : i32
    scf.if %50 {
      %cst_160 = arith.constant 0.000000e+00 : bf16
      %144 = vector.broadcast %cst_160 : bf16 to vector<1x16x128xbf16>
      %c5_161 = arith.constant 5 : index
      %c0_162 = arith.constant 0 : index
      %c0_163 = arith.constant 0 : index
      %145 = vector.load %arg12[%c5_161, %c0_162, %c0_163] : memref<6x16x128xbf16, #tpu.memory_space<vmem>>, vector<1x16x128xbf16>
      tpu.vector_store %arg12[%c5_161, %c0_162, %c0_163], %144 {strides = array<i32>} : memref<6x16x128xbf16, #tpu.memory_space<vmem>>, vector<1x16x128xbf16>,
    } else {
    }
    %c0_34 = arith.constant 0 : index
    %c0_35 = arith.constant 0 : index
    %c0_36 = arith.constant 0 : index
    %51 = vector.load %arg12[%c0_34, %c0_35, %c0_36] : memref<6x16x128xbf16, #tpu.memory_space<vmem>>, vector<6x15x128xbf16>
    %c0_37 = arith.constant 0 : index
    %c1_38 = arith.constant 1 : index
    %c0_39 = arith.constant 0 : index
    %52 = vector.load %arg11[%c0_37, %c1_38, %c0_39] : memref<6x16x128xbf16, #tpu.memory_space<vmem>>, vector<6x15x128xbf16>
    tpu.vector_store %arg11[%c0_37, %c1_38, %c0_39], %51 {strides = array<i32>} : memref<6x16x128xbf16, #tpu.memory_space<vmem>>, vector<6x15x128xbf16>,
    %cst_40 = arith.constant 0.000000e+00 : bf16
    %53 = vector.broadcast %cst_40 : bf16 to vector<6x1x128xbf16>
    %c0_41 = arith.constant 0 : index
    %c0_42 = arith.constant 0 : index
    %c0_43 = arith.constant 0 : index
    %54 = vector.load %arg11[%c0_41, %c0_42, %c0_43] : memref<6x16x128xbf16, #tpu.memory_space<vmem>>, vector<6x1x128xbf16>
    tpu.vector_store %arg11[%c0_41, %c0_42, %c0_43], %53 {strides = array<i32>} : memref<6x16x128xbf16, #tpu.memory_space<vmem>>, vector<6x1x128xbf16>,
    %c0_44 = arith.constant 0 : index
    %c1_45 = arith.constant 1 : index
    %c0_46 = arith.constant 0 : index
    %55 = vector.load %arg12[%c0_44, %c1_45, %c0_46] : memref<6x16x128xbf16, #tpu.memory_space<vmem>>, vector<6x15x128xbf16>
    %c0_47 = arith.constant 0 : index
    %c0_48 = arith.constant 0 : index
    %c0_49 = arith.constant 0 : index
    %56 = vector.load %arg13[%c0_47, %c0_48, %c0_49] : memref<6x16x128xbf16, #tpu.memory_space<vmem>>, vector<6x15x128xbf16>
    tpu.vector_store %arg13[%c0_47, %c0_48, %c0_49], %55 {strides = array<i32>} : memref<6x16x128xbf16, #tpu.memory_space<vmem>>, vector<6x15x128xbf16>,
    %cst_50 = arith.constant 0.000000e+00 : bf16
    %57 = vector.broadcast %cst_50 : bf16 to vector<6x1x128xbf16>
    %c0_51 = arith.constant 0 : index
    %c15 = arith.constant 15 : index
    %c0_52 = arith.constant 0 : index
    %58 = vector.load %arg13[%c0_51, %c15, %c0_52] : memref<6x16x128xbf16, #tpu.memory_space<vmem>>, vector<6x1x128xbf16>
    tpu.vector_store %arg13[%c0_51, %c15, %c0_52], %57 {strides = array<i32>} : memref<6x16x128xbf16, #tpu.memory_space<vmem>>, vector<6x1x128xbf16>,
    %c0_53 = arith.constant 0 : index
    %c0_54 = arith.constant 0 : index
    %c0_55 = arith.constant 0 : index
    %59 = vector.load %arg11[%c0_53, %c0_54, %c0_55] : memref<6x16x128xbf16, #tpu.memory_space<vmem>>, vector<4x16x128xbf16>
    %60 = vector.shape_cast %59 : vector<4x16x128xbf16> to vector<64x128xbf16>
    %c0_56 = arith.constant 0 : index
    %c0_57 = arith.constant 0 : index
    %c0_58 = arith.constant 0 : index
    %61 = vector.load %arg7[%c0_56, %c0_57, %c0_58] : memref<9x128x128xbf16, #tpu.memory_space<vmem>>, vector<1x128x128xbf16>
    %62 = vector.shape_cast %61 : vector<1x128x128xbf16> to vector<128x128xbf16>
    %cst_59 = arith.constant dense<0.000000e+00> : vector<64x128xf32>
    %63 = tpu.matmul %60, %62, %cst_59 {dimension_numbers = #tpu.dot_dimension_numbers<[1], [0], [0], [1], [0, 0, 1, 1], [], []>} : vector<64x128xbf16>, vector<128x128xbf16>, vector<64x128xf32> -> vector<64x128xf32>
    %c0_60 = arith.constant 0 : index
    %c0_61 = arith.constant 0 : index
    %64 = vector.load %arg14[%c0_60, %c0_61] : memref<64x128xf32, #tpu.memory_space<vmem>>, vector<64x128xf32>
    tpu.vector_store %arg14[%c0_60, %c0_61], %63 {strides = array<i32>} : memref<64x128xf32, #tpu.memory_space<vmem>>, vector<64x128xf32>,
    %c0_62 = arith.constant 0 : index
    %c0_63 = arith.constant 0 : index
    %c0_64 = arith.constant 0 : index
    %65 = vector.load %arg12[%c0_62, %c0_63, %c0_64] : memref<6x16x128xbf16, #tpu.memory_space<vmem>>, vector<4x16x128xbf16>
    %66 = vector.shape_cast %65 : vector<4x16x128xbf16> to vector<64x128xbf16>
    %c1_65 = arith.constant 1 : index
    %c0_66 = arith.constant 0 : index
    %c0_67 = arith.constant 0 : index
    %67 = vector.load %arg7[%c1_65, %c0_66, %c0_67] : memref<9x128x128xbf16, #tpu.memory_space<vmem>>, vector<1x128x128xbf16>
    %68 = vector.shape_cast %67 : vector<1x128x128xbf16> to vector<128x128xbf16>
    %cst_68 = arith.constant dense<0.000000e+00> : vector<64x128xf32>
    %69 = tpu.matmul %66, %68, %cst_68 {dimension_numbers = #tpu.dot_dimension_numbers<[1], [0], [0], [1], [0, 0, 1, 1], [], []>} : vector<64x128xbf16>, vector<128x128xbf16>, vector<64x128xf32> -> vector<64x128xf32>
    %c0_69 = arith.constant 0 : index
    %c0_70 = arith.constant 0 : index
    %70 = vector.load %arg14[%c0_69, %c0_70] : memref<64x128xf32, #tpu.memory_space<vmem>>, vector<64x128xf32>
    %71 = arith.addf %70, %69 : vector<64x128xf32>
    %c0_71 = arith.constant 0 : index
    %c0_72 = arith.constant 0 : index
    %72 = vector.load %arg14[%c0_71, %c0_72] : memref<64x128xf32, #tpu.memory_space<vmem>>, vector<64x128xf32>
    tpu.vector_store %arg14[%c0_71, %c0_72], %71 {strides = array<i32>} : memref<64x128xf32, #tpu.memory_space<vmem>>, vector<64x128xf32>,
    %c0_73 = arith.constant 0 : index
    %c0_74 = arith.constant 0 : index
    %c0_75 = arith.constant 0 : index
    %73 = vector.load %arg13[%c0_73, %c0_74, %c0_75] : memref<6x16x128xbf16, #tpu.memory_space<vmem>>, vector<4x16x128xbf16>
    %74 = vector.shape_cast %73 : vector<4x16x128xbf16> to vector<64x128xbf16>
    %c2 = arith.constant 2 : index
    %c0_76 = arith.constant 0 : index
    %c0_77 = arith.constant 0 : index
    %75 = vector.load %arg7[%c2, %c0_76, %c0_77] : memref<9x128x128xbf16, #tpu.memory_space<vmem>>, vector<1x128x128xbf16>
    %76 = vector.shape_cast %75 : vector<1x128x128xbf16> to vector<128x128xbf16>
    %cst_78 = arith.constant dense<0.000000e+00> : vector<64x128xf32>
    %77 = tpu.matmul %74, %76, %cst_78 {dimension_numbers = #tpu.dot_dimension_numbers<[1], [0], [0], [1], [0, 0, 1, 1], [], []>} : vector<64x128xbf16>, vector<128x128xbf16>, vector<64x128xf32> -> vector<64x128xf32>
    %c0_79 = arith.constant 0 : index
    %c0_80 = arith.constant 0 : index
    %78 = vector.load %arg14[%c0_79, %c0_80] : memref<64x128xf32, #tpu.memory_space<vmem>>, vector<64x128xf32>
    %79 = arith.addf %78, %77 : vector<64x128xf32>
    %c0_81 = arith.constant 0 : index
    %c0_82 = arith.constant 0 : index
    %80 = vector.load %arg14[%c0_81, %c0_82] : memref<64x128xf32, #tpu.memory_space<vmem>>, vector<64x128xf32>
    tpu.vector_store %arg14[%c0_81, %c0_82], %79 {strides = array<i32>} : memref<64x128xf32, #tpu.memory_space<vmem>>, vector<64x128xf32>,
    %c1_83 = arith.constant 1 : index
    %c0_84 = arith.constant 0 : index
    %c0_85 = arith.constant 0 : index
    %81 = vector.load %arg11[%c1_83, %c0_84, %c0_85] : memref<6x16x128xbf16, #tpu.memory_space<vmem>>, vector<4x16x128xbf16>
    %82 = vector.shape_cast %81 : vector<4x16x128xbf16> to vector<64x128xbf16>
    %c3 = arith.constant 3 : index
    %c0_86 = arith.constant 0 : index
    %c0_87 = arith.constant 0 : index
    %83 = vector.load %arg7[%c3, %c0_86, %c0_87] : memref<9x128x128xbf16, #tpu.memory_space<vmem>>, vector<1x128x128xbf16>
    %84 = vector.shape_cast %83 : vector<1x128x128xbf16> to vector<128x128xbf16>
    %cst_88 = arith.constant dense<0.000000e+00> : vector<64x128xf32>
    %85 = tpu.matmul %82, %84, %cst_88 {dimension_numbers = #tpu.dot_dimension_numbers<[1], [0], [0], [1], [0, 0, 1, 1], [], []>} : vector<64x128xbf16>, vector<128x128xbf16>, vector<64x128xf32> -> vector<64x128xf32>
    %c0_89 = arith.constant 0 : index
    %c0_90 = arith.constant 0 : index
    %86 = vector.load %arg14[%c0_89, %c0_90] : memref<64x128xf32, #tpu.memory_space<vmem>>, vector<64x128xf32>
    %87 = arith.addf %86, %85 : vector<64x128xf32>
    %c0_91 = arith.constant 0 : index
    %c0_92 = arith.constant 0 : index
    %88 = vector.load %arg14[%c0_91, %c0_92] : memref<64x128xf32, #tpu.memory_space<vmem>>, vector<64x128xf32>
    tpu.vector_store %arg14[%c0_91, %c0_92], %87 {strides = array<i32>} : memref<64x128xf32, #tpu.memory_space<vmem>>, vector<64x128xf32>,
    %c1_93 = arith.constant 1 : index
    %c0_94 = arith.constant 0 : index
    %c0_95 = arith.constant 0 : index
    %89 = vector.load %arg12[%c1_93, %c0_94, %c0_95] : memref<6x16x128xbf16, #tpu.memory_space<vmem>>, vector<4x16x128xbf16>
    %90 = vector.shape_cast %89 : vector<4x16x128xbf16> to vector<64x128xbf16>
    %c4 = arith.constant 4 : index
    %c0_96 = arith.constant 0 : index
    %c0_97 = arith.constant 0 : index
    %91 = vector.load %arg7[%c4, %c0_96, %c0_97] : memref<9x128x128xbf16, #tpu.memory_space<vmem>>, vector<1x128x128xbf16>
    %92 = vector.shape_cast %91 : vector<1x128x128xbf16> to vector<128x128xbf16>
    %cst_98 = arith.constant dense<0.000000e+00> : vector<64x128xf32>
    %93 = tpu.matmul %90, %92, %cst_98 {dimension_numbers = #tpu.dot_dimension_numbers<[1], [0], [0], [1], [0, 0, 1, 1], [], []>} : vector<64x128xbf16>, vector<128x128xbf16>, vector<64x128xf32> -> vector<64x128xf32>
    %c0_99 = arith.constant 0 : index
    %c0_100 = arith.constant 0 : index
    %94 = vector.load %arg14[%c0_99, %c0_100] : memref<64x128xf32, #tpu.memory_space<vmem>>, vector<64x128xf32>
    %95 = arith.addf %94, %93 : vector<64x128xf32>
    %c0_101 = arith.constant 0 : index
    %c0_102 = arith.constant 0 : index
    %96 = vector.load %arg14[%c0_101, %c0_102] : memref<64x128xf32, #tpu.memory_space<vmem>>, vector<64x128xf32>
    tpu.vector_store %arg14[%c0_101, %c0_102], %95 {strides = array<i32>} : memref<64x128xf32, #tpu.memory_space<vmem>>, vector<64x128xf32>,
    %c1_103 = arith.constant 1 : index
    %c0_104 = arith.constant 0 : index
    %c0_105 = arith.constant 0 : index
    %97 = vector.load %arg13[%c1_103, %c0_104, %c0_105] : memref<6x16x128xbf16, #tpu.memory_space<vmem>>, vector<4x16x128xbf16>
    %98 = vector.shape_cast %97 : vector<4x16x128xbf16> to vector<64x128xbf16>
    %c5_106 = arith.constant 5 : index
    %c0_107 = arith.constant 0 : index
    %c0_108 = arith.constant 0 : index
    %99 = vector.load %arg7[%c5_106, %c0_107, %c0_108] : memref<9x128x128xbf16, #tpu.memory_space<vmem>>, vector<1x128x128xbf16>
    %100 = vector.shape_cast %99 : vector<1x128x128xbf16> to vector<128x128xbf16>
    %cst_109 = arith.constant dense<0.000000e+00> : vector<64x128xf32>
    %101 = tpu.matmul %98, %100, %cst_109 {dimension_numbers = #tpu.dot_dimension_numbers<[1], [0], [0], [1], [0, 0, 1, 1], [], []>} : vector<64x128xbf16>, vector<128x128xbf16>, vector<64x128xf32> -> vector<64x128xf32>
    %c0_110 = arith.constant 0 : index
    %c0_111 = arith.constant 0 : index
    %102 = vector.load %arg14[%c0_110, %c0_111] : memref<64x128xf32, #tpu.memory_space<vmem>>, vector<64x128xf32>
    %103 = arith.addf %102, %101 : vector<64x128xf32>
    %c0_112 = arith.constant 0 : index
    %c0_113 = arith.constant 0 : index
    %104 = vector.load %arg14[%c0_112, %c0_113] : memref<64x128xf32, #tpu.memory_space<vmem>>, vector<64x128xf32>
    tpu.vector_store %arg14[%c0_112, %c0_113], %103 {strides = array<i32>} : memref<64x128xf32, #tpu.memory_space<vmem>>, vector<64x128xf32>,
    %c2_114 = arith.constant 2 : index
    %c0_115 = arith.constant 0 : index
    %c0_116 = arith.constant 0 : index
    %105 = vector.load %arg11[%c2_114, %c0_115, %c0_116] : memref<6x16x128xbf16, #tpu.memory_space<vmem>>, vector<4x16x128xbf16>
    %106 = vector.shape_cast %105 : vector<4x16x128xbf16> to vector<64x128xbf16>
    %c6 = arith.constant 6 : index
    %c0_117 = arith.constant 0 : index
    %c0_118 = arith.constant 0 : index
    %107 = vector.load %arg7[%c6, %c0_117, %c0_118] : memref<9x128x128xbf16, #tpu.memory_space<vmem>>, vector<1x128x128xbf16>
    %108 = vector.shape_cast %107 : vector<1x128x128xbf16> to vector<128x128xbf16>
    %cst_119 = arith.constant dense<0.000000e+00> : vector<64x128xf32>
    %109 = tpu.matmul %106, %108, %cst_119 {dimension_numbers = #tpu.dot_dimension_numbers<[1], [0], [0], [1], [0, 0, 1, 1], [], []>} : vector<64x128xbf16>, vector<128x128xbf16>, vector<64x128xf32> -> vector<64x128xf32>
    %c0_120 = arith.constant 0 : index
    %c0_121 = arith.constant 0 : index
    %110 = vector.load %arg14[%c0_120, %c0_121] : memref<64x128xf32, #tpu.memory_space<vmem>>, vector<64x128xf32>
    %111 = arith.addf %110, %109 : vector<64x128xf32>
    %c0_122 = arith.constant 0 : index
    %c0_123 = arith.constant 0 : index
    %112 = vector.load %arg14[%c0_122, %c0_123] : memref<64x128xf32, #tpu.memory_space<vmem>>, vector<64x128xf32>
    tpu.vector_store %arg14[%c0_122, %c0_123], %111 {strides = array<i32>} : memref<64x128xf32, #tpu.memory_space<vmem>>, vector<64x128xf32>,
    %c2_124 = arith.constant 2 : index
    %c0_125 = arith.constant 0 : index
    %c0_126 = arith.constant 0 : index
    %113 = vector.load %arg12[%c2_124, %c0_125, %c0_126] : memref<6x16x128xbf16, #tpu.memory_space<vmem>>, vector<4x16x128xbf16>
    %114 = vector.shape_cast %113 : vector<4x16x128xbf16> to vector<64x128xbf16>
    %c7 = arith.constant 7 : index
    %c0_127 = arith.constant 0 : index
    %c0_128 = arith.constant 0 : index
    %115 = vector.load %arg7[%c7, %c0_127, %c0_128] : memref<9x128x128xbf16, #tpu.memory_space<vmem>>, vector<1x128x128xbf16>
    %116 = vector.shape_cast %115 : vector<1x128x128xbf16> to vector<128x128xbf16>
    %cst_129 = arith.constant dense<0.000000e+00> : vector<64x128xf32>
    %117 = tpu.matmul %114, %116, %cst_129 {dimension_numbers = #tpu.dot_dimension_numbers<[1], [0], [0], [1], [0, 0, 1, 1], [], []>} : vector<64x128xbf16>, vector<128x128xbf16>, vector<64x128xf32> -> vector<64x128xf32>
    %c0_130 = arith.constant 0 : index
    %c0_131 = arith.constant 0 : index
    %118 = vector.load %arg14[%c0_130, %c0_131] : memref<64x128xf32, #tpu.memory_space<vmem>>, vector<64x128xf32>
    %119 = arith.addf %118, %117 : vector<64x128xf32>
    %c0_132 = arith.constant 0 : index
    %c0_133 = arith.constant 0 : index
    %120 = vector.load %arg14[%c0_132, %c0_133] : memref<64x128xf32, #tpu.memory_space<vmem>>, vector<64x128xf32>
    tpu.vector_store %arg14[%c0_132, %c0_133], %119 {strides = array<i32>} : memref<64x128xf32, #tpu.memory_space<vmem>>, vector<64x128xf32>,
    %c2_134 = arith.constant 2 : index
    %c0_135 = arith.constant 0 : index
    %c0_136 = arith.constant 0 : index
    %121 = vector.load %arg13[%c2_134, %c0_135, %c0_136] : memref<6x16x128xbf16, #tpu.memory_space<vmem>>, vector<4x16x128xbf16>
    %122 = vector.shape_cast %121 : vector<4x16x128xbf16> to vector<64x128xbf16>
    %c8 = arith.constant 8 : index
    %c0_137 = arith.constant 0 : index
    %c0_138 = arith.constant 0 : index
    %123 = vector.load %arg7[%c8, %c0_137, %c0_138] : memref<9x128x128xbf16, #tpu.memory_space<vmem>>, vector<1x128x128xbf16>
    %124 = vector.shape_cast %123 : vector<1x128x128xbf16> to vector<128x128xbf16>
    %cst_139 = arith.constant dense<0.000000e+00> : vector<64x128xf32>
    %125 = tpu.matmul %122, %124, %cst_139 {dimension_numbers = #tpu.dot_dimension_numbers<[1], [0], [0], [1], [0, 0, 1, 1], [], []>} : vector<64x128xbf16>, vector<128x128xbf16>, vector<64x128xf32> -> vector<64x128xf32>
    %c0_140 = arith.constant 0 : index
    %c0_141 = arith.constant 0 : index
    %126 = vector.load %arg14[%c0_140, %c0_141] : memref<64x128xf32, #tpu.memory_space<vmem>>, vector<64x128xf32>
    %127 = arith.addf %126, %125 : vector<64x128xf32>
    %c0_142 = arith.constant 0 : index
    %c0_143 = arith.constant 0 : index
    %128 = vector.load %arg14[%c0_142, %c0_143] : memref<64x128xf32, #tpu.memory_space<vmem>>, vector<64x128xf32>
    tpu.vector_store %arg14[%c0_142, %c0_143], %127 {strides = array<i32>} : memref<64x128xf32, #tpu.memory_space<vmem>>, vector<64x128xf32>,
    %c0_144 = arith.constant 0 : index
    %c0_145 = arith.constant 0 : index
    %129 = vector.load %arg14[%c0_144, %c0_145] : memref<64x128xf32, #tpu.memory_space<vmem>>, vector<64x128xf32>
    %130 = vector.shape_cast %129 : vector<64x128xf32> to vector<4x16x128xf32>
    %131 = arith.truncf %130 : vector<4x16x128xf32> to vector<4x16x128xbf16>
    %c0_146 = arith.constant 0 : index
    %c0_147 = arith.constant 0 : index
    %c0_148 = arith.constant 0 : index
    %c0_149 = arith.constant 0 : index
    %132 = vector.load %arg8[%c0_146, %c0_147, %c0_148, %c0_149] : memref<1x4x16x128xbf16, #tpu.memory_space<vmem>>, vector<1x4x16x128xbf16>
    %133 = vector.shape_cast %132 : vector<1x4x16x128xbf16> to vector<4x16x128xbf16>
    %134 = vector.shape_cast %131 : vector<4x16x128xbf16> to vector<1x4x16x128xbf16>
    tpu.vector_store %arg8[%c0_146, %c0_147, %c0_148, %c0_149], %134 {strides = array<i32>} : memref<1x4x16x128xbf16, #tpu.memory_space<vmem>>, vector<1x4x16x128xbf16>,
    %cst_150 = arith.constant dense<0.000000e+00> : vector<128xf32>
    %135 = vector.multi_reduction <add>, %129, %cst_150 [0] : vector<64x128xf32> to vector<128xf32>
    %136 = vector.shape_cast %135 : vector<128xf32> to vector<1x128xf32>
    %137 = vector.shape_cast %136 : vector<1x128xf32> to vector<1x1x1x128xf32>
    %c0_151 = arith.constant 0 : index
    %c0_152 = arith.constant 0 : index
    %c0_153 = arith.constant 0 : index
    %c0_154 = arith.constant 0 : index
    %138 = vector.load %arg9[%c0_151, %c0_152, %c0_153, %c0_154] : memref<1x1x1x128xf32, #tpu.memory_space<vmem>>, vector<1x1x1x128xf32>
    tpu.vector_store %arg9[%c0_151, %c0_152, %c0_153, %c0_154], %137 {strides = array<i32>} : memref<1x1x1x128xf32, #tpu.memory_space<vmem>>, vector<1x1x1x128xf32>,
    %139 = arith.mulf %129, %129 : vector<64x128xf32>
    %cst_155 = arith.constant dense<0.000000e+00> : vector<128xf32>
    %140 = vector.multi_reduction <add>, %139, %cst_155 [0] : vector<64x128xf32> to vector<128xf32>
    %141 = vector.shape_cast %140 : vector<128xf32> to vector<1x128xf32>
    %142 = vector.shape_cast %141 : vector<1x128xf32> to vector<1x1x1x128xf32>
    %c0_156 = arith.constant 0 : index
    %c0_157 = arith.constant 0 : index
    %c0_158 = arith.constant 0 : index
    %c0_159 = arith.constant 0 : index
    %143 = vector.load %arg10[%c0_156, %c0_157, %c0_158, %c0_159] : memref<1x1x1x128xf32, #tpu.memory_space<vmem>>, vector<1x1x1x128xf32>
    tpu.vector_store %arg10[%c0_156, %c0_157, %c0_158, %c0_159], %142 {strides = array<i32>} : memref<1x1x1x128xf32, #tpu.memory_space<vmem>>, vector<1x1x1x128xf32>,
    return
  }
  func.func @transform_0(%arg0: i32, %arg1: i32) -> (i32, i32, i32, i32) {
    %c0_i32 = arith.constant 0 : i32
    %c0_i32_0 = arith.constant 0 : i32
    %c0_i32_1 = arith.constant 0 : i32
    return %arg0, %arg1, %c0_i32, %c0_i32_0 : i32, i32, i32, i32
  }
  func.func @transform_1(%arg0: i32, %arg1: i32) -> (i32, i32, i32, i32) {
    %c0_i32 = arith.constant 0 : i32
    %c0_i32_0 = arith.constant 0 : i32
    %c0_i32_1 = arith.constant 0 : i32
    return %arg0, %arg1, %c0_i32, %c0_i32_0 : i32, i32, i32, i32
  }
  func.func @transform_2(%arg0: i32, %arg1: i32) -> (i32, i32, i32, i32) {
    %c0_i32 = arith.constant 0 : i32
    %c0_i32_0 = arith.constant 0 : i32
    %c0_i32_1 = arith.constant 0 : i32
    return %arg0, %arg1, %c0_i32, %c0_i32_0 : i32, i32, i32, i32
  }
  func.func @transform_3(%arg0: i32, %arg1: i32) -> (i32, i32) {
    %c0_i32 = arith.constant 0 : i32
    %c0_i32_0 = arith.constant 0 : i32
    %c0_i32_1 = arith.constant 0 : i32
    return %c0_i32, %c0_i32_0 : i32, i32
  }
  func.func @transform_4(%arg0: i32, %arg1: i32) -> (i32, i32) {
    %c0_i32 = arith.constant 0 : i32
    %c0_i32_0 = arith.constant 0 : i32
    %c0_i32_1 = arith.constant 0 : i32
    return %c0_i32, %c0_i32_0 : i32, i32
  }
  func.func @transform_5(%arg0: i32, %arg1: i32) -> (i32, i32, i32) {
    %c0_i32 = arith.constant 0 : i32
    %c0_i32_0 = arith.constant 0 : i32
    %c0_i32_1 = arith.constant 0 : i32
    %c0_i32_2 = arith.constant 0 : i32
    return %c0_i32, %c0_i32_0, %c0_i32_1 : i32, i32, i32
  }
  func.func @transform_6(%arg0: i32, %arg1: i32) -> (i32, i32, i32, i32) {
    %c0_i32 = arith.constant 0 : i32
    %c0_i32_0 = arith.constant 0 : i32
    %c0_i32_1 = arith.constant 0 : i32
    return %arg0, %arg1, %c0_i32, %c0_i32_0 : i32, i32, i32, i32
  }
  func.func @transform_7(%arg0: i32, %arg1: i32) -> (i32, i32, i32, i32) {
    %c0_i32 = arith.constant 0 : i32
    %c0_i32_0 = arith.constant 0 : i32
    %c0_i32_1 = arith.constant 0 : i32
    return %arg0, %arg1, %c0_i32, %c0_i32_0 : i32, i32, i32, i32
  }
  func.func @transform_8(%arg0: i32, %arg1: i32) -> (i32, i32, i32, i32) {
    %c0_i32 = arith.constant 0 : i32
    %c0_i32_0 = arith.constant 0 : i32
    %c0_i32_1 = arith.constant 0 : i32
    return %arg0, %arg1, %c0_i32, %c0_i32_0 : i32, i32, i32, i32
  }
}

</mosaic_0001>

<bundles_post_ra>
// kernel: double_conv.5
= control target key start
LH: loop header
LB: loop body
LE: loop exit
PB: predicated region body
PF: predicated region fallthrough
CT: control target
= control target key end

     0   :  { %s1136_s0 = inlined_call_operand.hbm [shape: bf16[2,16,16,128], index: 0, kind: input, shape index: {}]   ;;  %s1137_s1 = inlined_call_operand.hbm [shape: f32[1,128], index: 1, kind: input, shape index: {}]   ;;  %s1138_s2 = inlined_call_operand.hbm [shape: f32[1,128], index: 2, kind: input, shape index: {}]   ;;  %s1139_s3 = inlined_call_operand.hbm [shape: bf16[2,16,16,128], index: 3, kind: output, shape index: {}]  }
   0x1   :  { %1148 = sst [smem:[#allocation14_spill]] %s1137_s1 }
   0x2   :  { %1149 = sst [smem:[#allocation15_spill]] %s1138_s2 }
   0x3   :  { %8 = vsyncpa [#allocation3], 0 }
   0x4   :  { %10 = vsyncpa [#allocation3 + $0x1], 0 }
   0x5   :  { %11 = vsyncpa [#allocation6], 0 }
   0x6   :  { %12 = vsyncpa [#allocation4], 0 }
   0x7   :  { %14 = vsyncpa [#allocation4 + $0x1], 0  ;;  %s861_s12 = smov 0   ;;  %s863_s13 = smov 0  }
   0x8   :  { %s865_s14 = smov 0   ;;  %s867_s15 = smov 0  }
   0x9   :  { %s869_s16 = smov 0   ;;  %s871_s17 = smov 0  }
   0xa   :  { %s873_s18 = smov 0   ;;  %s875_s19 = smov 0  }
   0xb LB: > { %1150 = sst [smem:[#allocation12_spill]] %s823_s17  ;;  %s455_s20 = sadd.s32 4294967295, %s831_s19   ;;  %s831_s19 = sphi %s875_s19, %s20_s19   ;;  %s827_s18 = sphi %s873_s18, %s1175_s18   ;;  %s823_s17 = sphi %s871_s17, %s1170_s17   ;;  %s819_s16 = sphi %s869_s16, %s1174_s16   ;;  %s815_s15 = sphi %s867_s15, %s1169_s15   ;;  %s811_s14 = sphi %s865_s14, %s1173_s14   ;;  %s807_s13 = sphi %s863_s13, %s1172_s13   ;;  %s803_s12 = sphi %s861_s12, %s1171_s12  }
   0xc   : > { %s456_s21 = sadd.s32 4294967294, %s831_s19   ;;  %p48_p0 = scmp.ne.s32.totalorder %s811_s14, %s807_s13 }
   0xd   : > { %p49_p1 = scmp.eq.s32.totalorder %s831_s19, 0  ;;  %p54_p2 = scmp.ne.s32.totalorder %s807_s13, %s803_s12 }
   0xe   : > { %p909_p3 = scmp.eq.s32.totalorder %s455_s20, 0  ;;  %p122_p4 = scmp.eq.s32.totalorder %s455_s20, 7 }
   0xf   : > { %p913_p5 = por %p49_p1, %p48_p0  ;;  %p128_p6 = scmp.eq.s32.totalorder %s456_s21, 7 }
  0x10   : > { %s1151_s23 = scalar_select %p909_p3, 1, 0 }
  0x11   : > { %p919_p7 = por %p909_p3, %p54_p2  ;;  %p923_p8 = por %p122_p4, %p48_p0 }
  0x12   : > { %p927_p9 = por %p128_p6, %p54_p2  ;;  %p457_p10 = scmp.ge.s32.totalorder %s831_s19, 1 }
  0x13   : > { %s1153_s25 = scalar_select %p919_p7, 1, 0 }
  0x14   : > { %s1154_s26 = scalar_select %p923_p8, 1, 0 }
  0x15   : > { %s1155_s27 = scalar_select %p927_p9, 1, 0 }
  0x16   : > { %p135_p11 = scmp.lt.s32.totalorder %s831_s19, 9  ;;  %s833_s29 = smov [#allocation5]  }
  0x17   : > { %s148_s30 = sshll.u32 %s833_s29, 4  ;;  %p569_p13 = scmp.lt.s32.totalorder %s831_s19, 8  ;;  %s149_s30 = int_to_ptr.vmem [resolvable:$true] %s148_s30 }
  0x18   : > { %p933_p12 = pnand %p457_p10, %p135_p11  ;;  %s834_s5 = smov [#allocation7]  }
  0x19   : > { %p942_p1 = pnand %p569_p13, %p913_p5  ;;  %s159_s6 = sshll.u32 %s834_s5, 4  ;;  %s952_s6 = int_to_ptr.vmem [resolvable:$true] %s159_s6 }
  0x1a   : > { %s1156_s28 = scalar_select %p933_p12, 1, 0 }
  0x1b   : > { %p552_p0 = pneg %p933_p12  ;;  %s1159_s1 = sld [smem:[#allocation14_spill]] }
  0x1c   : > { %s1157_s4 = scalar_select %p942_p1, 1, 0 }
  0x1d   : > { %p948_p2 = pnand %p552_p0, %p909_p3 }
  0x1f   : > { %p645_p5 = pneg %p948_p2 }
  0x21   : > { %s643_s10 = scalar_lea.hbm %s1159_s1, 16 }
  0x22   : > { %p644_p4 = scmp.ne.s32.totalorder %s1159_s1, %s643_s10  ;;  %p650_p11 = scmp.lt.u32.totalorder %s643_s10, %s1159_s1 }
  0x24   : > { %p646_p6 = pnand %p645_p5, %p644_p4 }
  0x26   : > { %p647_p10 = pneg %p646_p6 }
  0x28   : > { %p652_p13 = pnand %p650_p11, %p647_p10 }
  0x2a   : > { %655 = shalt.err (!%p652_p13)
}
  0x2b   : > { %s656_s29 = scalar_lea.vmem %s149_s30, 16  ;;  %s663_s5 = scalar_lea.vmem %s149_s30, 32 }
  0x2c   : > { %p657_p0 = scmp.ne.s32.totalorder %s149_s30, %s656_s29  ;;  %p664_p3 = scmp.lt.s32.totalorder %s149_s30, %s149_s30 }
  0x2d   : > { %p665_p7 = scmp.lt.s32.totalorder %s663_s5, %s656_s29 }
  0x2e   : > { %p659_p9 = pnand %p657_p0, %p645_p5 }
  0x2f   : > { %p666_p12 = por %p665_p7, %p664_p3 }
  0x30   : > { %p660_p8 = pneg %p659_p9 }
  0x32   : > { %p667_p1 = pnand %p666_p12, %p660_p8 }
  0x34   : > { %670 = shalt.err (!%p667_p1)
}
  0x35   : > { %555 = dma.hbm_to_vmem [thread:$0]  (!%p948_p2), %s1159_s1, 16, %s149_s30, [#allocation6]  }
  0x36   : > { %s1160_s2 = sld [smem:[#allocation15_spill]] }
  0x3c   : > { %s671_s20 = scalar_lea.hbm %s1160_s2, 16 }
  0x3d   : > { %p672_p9 = scmp.ne.s32.totalorder %s1160_s2, %s671_s20  ;;  %p678_p8 = scmp.lt.u32.totalorder %s671_s20, %s1160_s2 }
  0x3f   : > { %p674_p3 = pnand %p672_p9, %p645_p5 }
  0x41   : > { %p675_p7 = pneg %p674_p3 }
  0x43   : > { %p680_p12 = pnand %p678_p8, %p675_p7 }
  0x45   : > { %683 = shalt.err (!%p680_p12)
}
  0x46   : > { %s684_s30 = scalar_lea.vmem %s952_s6, 16  ;;  %s691_s8 = scalar_lea.vmem %s952_s6, 32 }
  0x47   : > { %p685_p1 = scmp.ne.s32.totalorder %s952_s6, %s684_s30  ;;  %p692_p10 = scmp.lt.s32.totalorder %s952_s6, %s952_s6 }
  0x48   : > { %p693_p11 = scmp.lt.s32.totalorder %s691_s8, %s684_s30 }
  0x49   : > { %p687_p4 = pnand %p685_p1, %p645_p5 }
  0x4a   : > { %p694_p13 = por %p693_p11, %p692_p10 }
  0x4b   : > { %p688_p6 = pneg %p687_p4 }
  0x4d   : > { %p695_p0 = pnand %p694_p13, %p688_p6 }
  0x4f   : > { %698 = shalt.err (!%p695_p0)
}
  0x50   : > { %558 = dma.hbm_to_vmem [thread:$0]  (!%p948_p2), %s1160_s2, 16, %s952_s6, [#allocation6]  }
  0x51   : > { %s29_s11 = sadd.s32 1, %s823_s17  ;;  %s32_s20 = sadd.s32 1, %s827_s18 }
  0x52   : > { %p30_p5 = scmp.ge.s32.totalorder %s29_s11, 4  ;;  %s170_s21 = sand.u32 1, %s811_s14  }
  0x53   : > { %s461_s24 = sshll.u32 %s170_s21, 5  ;;  %s488_s29 = sshll.u32 %s823_s17, 3 }
  0x54   : > { %s1177_s11 = smov (%p30_p5, %s29_s11), 0  ;;  %s1179_s20 = smov (!%p30_p5, %s32_s20), %s827_s18 }
  0x55   : > { %1161 = sst [smem:[#allocation13_spill]] %s1177_s11  ;;  %s37_s7 = ssub.s32 %s823_s17, %s1177_s11 }
  0x56   : > { %p34_p9 = scmp.ge.s32.totalorder %s1179_s20, 2  ;;  %s464_s5 = sshll.u32 %s827_s18, 5 }
  0x57   : > { %s174_s30 = scalar_lea.vmem [#allocation2], %s461_s24  ;;  %s181_s8 = sadd.s32 %s488_s29, %s464_s5 }
  0x58   : > { %s184_s6 = sshll.u32 %s174_s30, 4  ;;  %s1181_s20 = smov (%p34_p9, %s1179_s20), 0  ;;  %s1014_s6 = int_to_ptr.vmem [resolvable:$true] %s184_s6 }
  0x59   : > { %s36_s9 = ssub.s32 %s827_s18, %s1181_s20  ;;  %s465_s10 = sshll.u32 %s181_s8, 6 }
  0x5a   : > { %s38_s22 = sor.u32 %s37_s7, %s36_s9  ;;  %s1021_s11 = scalar_lea.hbm %s1136_s0, %s465_s10 }
  0x5b   : > { %p39_p2 = scmp.eq.s32.totalorder %s38_s22, 0  ;;  %s1162_s24 = sadd.s32 1, %s811_s14 }
  0x5c   : > { %s1028_s17 = scalar_lea.sflag [#allocation3], %s170_s21  ;;  %s699_s29 = scalar_lea.hbm %s1021_s11, 512 }
  0x5d   : > { %s1026_s30 = scalar_select %p39_p2, %s811_s14, %s1162_s24  }
  0x5e   : > { %p700_p3 = scmp.ne.s32.totalorder %s1021_s11, %s699_s29  ;;  %p1163_p7 = scmp.ne.s32.totalorder %s1157_s4, 0 }
  0x5f   : > { %s704_s7 = scalar_lea.hbm %s1136_s0, 4096  ;;  %p705_p4 = scmp.lt.u32.totalorder %s1021_s11, %s1136_s0 }
  0x60   : > { %p701_p8 = pneg %p1163_p7  ;;  %p706_p6 = scmp.lt.u32.totalorder %s704_s7, %s699_s29 }
  0x61   : > { %p708_p11 = scmp.lt.u32.totalorder %s699_s29, %s1021_s11 }
  0x62   : > { %p702_p12 = pnand %p701_p8, %p700_p3  ;;  %p707_p10 = por %p706_p6, %p705_p4 }
  0x64   : > { %p703_p1 = pneg %p702_p12  ;;  %p709_p13 = por %p708_p11, %p707_p10 }
  0x66   : > { %p710_p0 = pnand %p709_p13, %p703_p1 }
  0x68   : > { %713 = shalt.err (!%p710_p0)
}
  0x69   : > { %s714_s22 = scalar_lea.vmem %s1014_s6, 512  ;;  %s835_s21 = smov [#allocation2]  }
  0x6a   : > { %p715_p5 = scmp.ne.s32.totalorder %s1014_s6, %s714_s22  ;;  %s719_s9 = sshll.u32 %s835_s21, 4  ;;  %s720_s9 = int_to_ptr.vmem [resolvable:$false] %s719_s9 }
  0x6b   : > { %s721_s10 = scalar_lea.vmem %s720_s9, 1024  ;;  %p722_p3 = scmp.lt.s32.totalorder %s1014_s6, %s720_s9 }
  0x6c   : > { %p717_p9 = pnand %p715_p5, %p701_p8  ;;  %p723_p12 = scmp.lt.s32.totalorder %s721_s10, %s714_s22 }
  0x6e   : > { %p718_p2 = pneg %p717_p9  ;;  %p724_p4 = por %p723_p12, %p722_p3 }
  0x70   : > { %p725_p6 = pnand %p724_p4, %p718_p2 }
  0x72   : > { %728 = shalt.err (!%p725_p6)
}
  0x73   : > { %s836_s24 = smov 64   ;;  %s837_s29 = smov 4  }
  0x74   : > { %562 = dma.hbm_to_vmem [thread:$0]  (!%p1163_p7), %s1021_s11, 512, %s1014_s6, %s1028_s17, %s836_s24, %s836_s24, %s837_s29  }
  0x75   : > { %p1164_p8 = scmp.ne.s32.totalorder %s1156_s28, 0 }
  0x76   : > { %s1059_s1 = sand.u32 (!%p1164_p8), 1, %s807_s13   ;;  %p1165_p1 = scmp.ne.s32.totalorder (!%p1164_p8), %s1153_s25, 0 }
  0x77   : > { %196 = sbr.rel (%p1164_p8) target bundleno = 158 (0x9e), region = 32  ;;  %s467_s2 = sshll.u32 (!%p1164_p8), %s1059_s1, 5 }
  0x78   : > { %s199_s7 = scalar_lea.sflag (!%p1164_p8), [#allocation3], %s1059_s1  ;;  %s202_s5 = scalar_lea.vmem (!%p1164_p8), [#allocation2], %s467_s2 }
  0x7e   : > { %790 = dma.done.wait (%p1165_p1), %s199_s7, 512  }
  0x7f   : > { %792 = vsyncadd (%p1165_p1), %s199_s7, 4294966784  ;;  %p1166_p7 = scmp.ne.s32.totalorder %s1151_s23, 0 }
  0x81   : > { %794 = dma.done.wait (%p1166_p7), [#allocation6], 32  }
  0x82   : > { %796 = vsyncadd (%p1166_p7), [#allocation6], 4294967264  ;;  %v499_v0 = vld [vmem:[%s202_s5] sm:$0xff]   ;;  %v534_v4 = vld [vmem:[%s202_s5 + $0x8] sm:$0xff]   ;;  %s497_s17 = sshll.u32 %s815_s15, 3  ;;  %s484_s25 = sshll.u32 %s819_s16, 5 }
  0x83   : > { %v471_v1 = vld [vmem:[#allocation5] ss:$0 sm:$0xff]  ;;  %v500_v2 = vunpack.c.l.bf16 %v499_v0  ;;  %v501_v3 = vunpack.c.h.bf16 %v499_v0  ;;  %v535_v5 = vld [vmem:[%s202_s5 + $0x10] sm:$0xff]   ;;  %v536_v6 = vld [vmem:[%s202_s5 + $0x18] sm:$0xff]   ;;  %v504_v8 = vunpack.c.l.bf16 %v534_v4  ;;  %v505_v9 = vunpack.c.h.bf16 %v534_v4  ;;  %s343_s23 = sadd.s32 %s497_s17, %s484_s25  ;;  %s232_s15 = scalar_lea.vmem [#allocation8], %s467_s2 }
  0x84   : > { %v472_v7 = vld [vmem:[#allocation7] ss:$0 sm:$0xff]  ;;  %v508_v10 = vunpack.c.l.bf16 %v535_v5  ;;  %v509_v11 = vunpack.c.h.bf16 %v535_v5  ;;  %v512_v14 = vunpack.c.l.bf16 %v536_v6  ;;  %v513_v15 = vunpack.c.h.bf16 %v536_v6  ;;  %s346_s16 = sshll.u32 %s232_s15, 4  ;;  %s485_s28 = sshll.u32 %s343_s23, 6  ;;  %s1077_s16 = int_to_ptr.vmem [resolvable:$true] %s346_s16 }
  0x85   : > { %v259_v12 = vmul.f32 %v500_v2, %v471_v1  ;;  %v260_v13 = vmul.f32 %v501_v3, %v471_v1  ;;  %v261_v16 = vmul.f32 %v504_v8, %v471_v1  ;;  %v262_v17 = vmul.f32 %v505_v9, %v471_v1  ;;  %s1082_s6 = scalar_lea.hbm %s1139_s3, %s485_s28  ;;  %s330_s8 = scalar_lea.sflag [#allocation4], %s1059_s1 }
  0x86   : > { %v263_v18 = vmul.f32 %v508_v10, %v471_v1  ;;  %v264_v19 = vmul.f32 %v509_v11, %v471_v1  ;;  %v265_v22 = vmul.f32 %v512_v14, %v471_v1  ;;  %v266_v23 = vmul.f32 %v513_v15, %v471_v1  ;;  %s729_s22 = scalar_lea.vmem %s1077_s16, 512  ;;  %p1167_p11 = scmp.ne.s32.totalorder %s1154_s26, 0 }
  0x87   : > { %v273_v20 = vadd.f32 %v472_v7, %v259_v12  ;;  %v274_v21 = vadd.f32 %v472_v7, %v260_v13  ;;  %v275_v24 = vadd.f32 %v472_v7, %v261_v16  ;;  %v276_v25 = vadd.f32 %v472_v7, %v262_v17  ;;  %p730_p10 = scmp.ne.s32.totalorder %s1077_s16, %s729_s22  ;;  %s838_s21 = smov [#allocation8]  }
  0x88   : > { %v277_v26 = vadd.f32 %v472_v7, %v263_v18  ;;  %v278_v27 = vadd.f32 %v472_v7, %v264_v19  ;;  %v279_v30 = vadd.f32 %v472_v7, %v265_v22  ;;  %v280_v31 = vadd.f32 %v472_v7, %v266_v23  ;;  %s733_s9 = sshll.u32 %s838_s21, 4  ;;  %s734_s9 = int_to_ptr.vmem [resolvable:$false] %s733_s9 }
  0x89   : > { %v281_v28 = vmax.f32 %v273_v20, 0.0  ;;  %v282_v29 = vmax.f32 %v274_v21, 0.0  ;;  %v283_v32 = vmax.f32 %v275_v24, 0.0  ;;  %v284_v33 = vmax.f32 %v276_v25, 0.0  ;;  %p731_p13 = pnand %p730_p10, %p1167_p11  ;;  %s735_s10 = scalar_lea.vmem %s734_s9, 1024 }
  0x8a   : > { %v285_v34 = vmax.f32 %v277_v26, 0.0  ;;  %v286_v35 = vmax.f32 %v278_v27, 0.0  ;;  %v287_v37 = vmax.f32 %v279_v30, 0.0  ;;  %v288_v38 = vmax.f32 %v280_v31, 0.0  ;;  %p736_p5 = scmp.lt.s32.totalorder %s1077_s16, %s734_s9  ;;  %p737_p9 = scmp.lt.s32.totalorder %s735_s10, %s729_s22 }
  0x8b   : > { %v517_v36 = vpack.c.bf16 %v282_v29, %v281_v28  ;;  %v522_v39 = vpack.c.bf16 %v284_v33, %v283_v32  ;;  %p732_p0 = pneg %p731_p13 }
  0x8c   : > { %v527_v40 = vpack.c.bf16 %v286_v35, %v285_v34  ;;  %v532_v41 = vpack.c.bf16 %v288_v38, %v287_v37  ;;  %p738_p2 = por %p737_p9, %p736_p5 }
  0x8d   : > { %518 = vst [vmem:[%s232_s15] sm:$0xff] %v517_v36   ;;  %537 = vst [vmem:[%s232_s15 + $0x8] sm:$0xff] %v522_v39  }
  0x8e   : > { %538 = vst [vmem:[%s232_s15 + $0x10] sm:$0xff] %v527_v40   ;;  %539 = vst [vmem:[%s232_s15 + $0x18] sm:$0xff] %v532_v41   ;;  %p739_p3 = pnand %p738_p2, %p732_p0 }
  0x90   : > { %742 = shalt.err (!%p739_p3)
}
  0x91   : > { %s743_s24 = scalar_lea.hbm %s1082_s6, 512  ;;  %s747_s7 = scalar_lea.hbm %s1139_s3, 4096 }
  0x92   : > { %p744_p12 = scmp.ne.s32.totalorder %s1082_s6, %s743_s24  ;;  %p748_p8 = scmp.lt.u32.totalorder %s1082_s6, %s1139_s3 }
  0x93   : > { %p749_p1 = scmp.lt.u32.totalorder %s747_s7, %s743_s24  ;;  %p751_p10 = scmp.lt.u32.totalorder %s743_s24, %s1082_s6 }
  0x94   : > { %p745_p4 = pnand %p744_p12, %p1167_p11 }
  0x95   : > { %p750_p7 = por %p749_p1, %p748_p8 }
  0x96   : > { %p746_p6 = pneg %p745_p4 }
  0x97   : > { %p752_p13 = por %p751_p10, %p750_p7 }
  0x99   : > { %p753_p0 = pnand %p752_p13, %p746_p6 }
  0x9b   : > { %756 = shalt.err (!%p753_p0)
}
  0x9c   : > { %s839_s25 = smov 64   ;;  %s840_s23 = smov 4  }
  0x9d   : > { %550 = dma.vmem_to_hbm [thread:$0]  (%p1167_p11), %s1077_s16, 512, %s1082_s6, %s330_s8, %s839_s25, %s839_s25, %s840_s23  }
  0x9e PF: > { %p572_p5 = scmp.ge.s32.totalorder %s831_s19, 2  ;;  %s361_s15 = sand.u32 1, %s803_s12  }
  0x9f   : > { %p1168_p9 = scmp.ne.s32.totalorder %s1155_s27, 0  ;;  %s362_s28 = scalar_lea.sflag [#allocation4], %s361_s15 }
  0xa1   : > { %p564_p2 = pnand %p572_p5, %p1168_p9 }
  0xa3   : > { %798 = dma.done.wait (!%p564_p2), %s362_s28, 512  }
  0xa4   : > { %800 = vsyncadd (!%p564_p2), %s362_s28, 4294966784  ;;  %s20_s19 = sadd.s32 1, %s831_s19   ;;  %s1169_s15 = sld [smem:[#allocation12_spill]] }
  0xa5   : > { %p17_p3 = scmp.ge.s32.totalorder %s20_s19, 10   ;;  %s1170_s17 = sld [smem:[#allocation13_spill]] }
  0xa6   : > { %s1171_s12 = smov %s807_s13  ;;  %s1172_s13 = smov %s811_s14 }
  0xa7   : > { %s1173_s14 = smov %s1026_s30  ;;  %s1174_s16 = smov %s827_s18 }
  0xa8   : > { %s1175_s18 = smov %s1181_s20  ;;  %19 = sbr.rel (!%p17_p3) target bundleno = 11 (0xb), region = 85 }
  0xaf   :  { %367 = vsyncpa [#allocation3], 1 }
  0xb0   :  { %369 = vsyncpa [#allocation3 + $0x1], 1 }
  0xb1   :  { %370 = vsyncpa [#allocation6], 1 }
  0xb2   :  { %371 = vsyncpa [#allocation4], 1 }
  0xb3   :  { %373 = vsyncpa [#allocation4 + $0x1], 1 }

// kernel: double_conv.3
= control target key start
LH: loop header
LB: loop body
LE: loop exit
PB: predicated region body
PF: predicated region fallthrough
CT: control target
= control target key end

     0   :  { %s4342_s0 = inlined_call_operand.hbm [shape: bf16[2,16,16,128], index: 0, kind: input, shape index: {}]   ;;  %s4343_s1 = inlined_call_operand.hbm [shape: bf16[2,4,16,128], index: 1, kind: input, shape index: {}]   ;;  %s4344_s2 = inlined_call_operand.hbm [shape: bf16[2,4,16,128], index: 2, kind: input, shape index: {}]   ;;  %s4345_s3 = inlined_call_operand.hbm [shape: f32[1,128], index: 3, kind: input, shape index: {}, may-alias: {3,4}]   ;;  %s4346_s4 = inlined_call_operand.hbm [shape: f32[1,128], index: 4, kind: input, shape index: {}, may-alias: {3,4}]   ;;  %s4347_s5 = inlined_call_operand.hbm [shape: bf16[9,128,128], index: 5, kind: input, shape index: {}]   ;;  %s4348_s6 = inlined_call_operand.hbm [shape: bf16[2,16,16,128], index: 6, kind: output, shape index: {0}]   ;;  %s4349_s7 = inlined_call_operand.hbm [shape: f32[2,4,1,128], index: 7, kind: output, shape index: {1}]   ;;  %s4350_s8 = inlined_call_operand.hbm [shape: f32[2,4,1,128], index: 8, kind: output, shape index: {2}]  }
   0x1   :  { %4384 = sst [smem:[#allocation40_spill]] %s4343_s1 }
   0x2   :  { %4385 = sst [smem:[#allocation41_spill]] %s4345_s3 }
   0x3   :  { %4386 = sst [smem:[#allocation42_spill]] %s4348_s6 }
   0x4   :  { %4387 = sst [smem:[#allocation43_spill]] %s4349_s7 }
   0x5   :  { %4388 = sst [smem:[#allocation44_spill]] %s4350_s8 }
   0x6   :  { %14 = vsyncpa [#allocation7], 0 }
   0x7   :  { %16 = vsyncpa [#allocation7 + $0x1], 0 }
   0x8   :  { %17 = vsyncpa [#allocation10], 0 }
   0x9   :  { %19 = vsyncpa [#allocation10 + $0x1], 0 }
   0xa   :  { %20 = vsyncpa [#allocation13], 0 }
   0xb   :  { %21 = vsyncpa [#allocation16], 0 }
   0xc   :  { %22 = vsyncpa [#allocation8], 0 }
   0xd   :  { %24 = vsyncpa [#allocation8 + $0x1], 0 }
   0xe   :  { %25 = vsyncpa [#allocation19], 0 }
   0xf   :  { %27 = vsyncpa [#allocation19 + $0x1], 0  ;;  %s3705_s27 = smov 0   ;;  %s3707_s28 = smov 0  }
  0x10   :  { %s3709_s29 = smov 0   ;;  %s3711_s30 = smov 0  }
  0x11   :  { %s3713_s9 = smov 0   ;;  %s3715_s10 = smov 0  }
  0x12   :  { %s3717_s11 = smov 0   ;;  %s3719_s12 = smov 0  }
  0x13 LB: > { %4389 = sst [smem:[#allocation27_spill]] %s3615_s27  ;;  %s3746_s13 = sadd.s32 4294967295, %s3643_s12   ;;  %s3643_s12 = sphi %s3719_s12, %s33_s12   ;;  %s3639_s11 = sphi %s3717_s11, %s4461_s11   ;;  %s3635_s10 = sphi %s3715_s10, %s4460_s10   ;;  %s3631_s9 = sphi %s3713_s9, %s4459_s9   ;;  %s3627_s30 = sphi %s3711_s30, %s4458_s30   ;;  %s3623_s29 = sphi %s3709_s29, %s4455_s29   ;;  %s3619_s28 = sphi %s3707_s28, %s4454_s28   ;;  %s3615_s27 = sphi %s3705_s27, %s4453_s27  }
  0x14   : > { %4390 = sst [smem:[#allocation28_spill]] %s3619_s28  ;;  %s4351_s14 = sadd.s32 4294967294, %s3643_s12  }
  0x15   : > { %4391 = sst [smem:[#allocation29_spill]] %s3623_s29  ;;  %p61_p0 = scmp.ne.s32.totalorder %s3623_s29, %s3619_s28 }
  0x16   : > { %4392 = sst [smem:[#allocation30_spill]] %s3627_s30  ;;  %p62_p1 = scmp.eq.s32.totalorder %s3643_s12, 0 }
  0x17   : > { %4393 = sst [smem:[#allocation31_spill]] %s3631_s9  ;;  %p67_p2 = scmp.ne.s32.totalorder %s3619_s28, %s3615_s27 }
  0x18   : > { %4394 = sst [smem:[#allocation32_spill]] %s3643_s12  ;;  %p4357_p3 = scmp.eq.s32.totalorder %s3746_s13, 0 }
  0x19   : > { %4395 = sst [smem:[#allocation33_spill]] %s3746_s13  ;;  %p212_p4 = scmp.eq.s32.totalorder %s3746_s13, 7 }
  0x1a   : > { %p3757_p5 = por %p62_p1, %p61_p0  ;;  %p218_p6 = scmp.eq.s32.totalorder %s4351_s14, 7 }
  0x1b   : > { %p3765_p7 = por %p4357_p3, %p67_p2  ;;  %p3769_p8 = por %p212_p4, %p61_p0 }
  0x1c   : > { %s4396_s16 = scalar_select %p3757_p5, 1, 0 }
  0x1d   : > { %s4397_s17 = scalar_select %p3765_p7, 1, 0 }
  0x1e   : > { %s4399_s18 = scalar_select %p3769_p8, 1, 0 }
  0x1f   : > { %4398 = sst [smem:[#allocation34_spill]] %s4397_s17  ;;  %p3773_p9 = por %p218_p6, %p67_p2 }
  0x20   : > { %4400 = sst [smem:[#allocation35_spill]] %s4399_s18  ;;  %p2524_p10 = scmp.ge.s32.totalorder %s3643_s12, 1 }
  0x21   : > { %s4401_s19 = scalar_select %p3773_p9, 1, 0 }
  0x22   : > { %p281_p11 = scmp.lt.s32.totalorder %s3643_s12, 9  ;;  %s3645_s21 = smov [#allocation12]  }
  0x23   : > { %4402 = sst [smem:[#allocation36_spill]] %s4401_s19  ;;  %s294_s22 = sshll.u32 %s3645_s21, 4  ;;  %s295_s22 = int_to_ptr.vmem [resolvable:$true] %s294_s22 }
  0x24   : > { %p3779_p12 = pnand %p2524_p10, %p281_p11  ;;  %s42_s24 = sadd.s32 1, %s3635_s10 }
  0x25   : > { %p3792_p1 = scmp.ge.s32.totalorder %s42_s24, 4  ;;  %s45_s26 = sadd.s32 1, %s3639_s11 }
  0x26   : > { %s4403_s20 = scalar_select %p3779_p12, 1, 0 }
  0x27   : > { %p3110_p13 = pneg %p3779_p12  ;;  %s4406_s3 = sld [smem:[#allocation41_spill]] }
  0x28   : > { %s4405_s25 = scalar_select %p3792_p1, 1, 0 }
  0x29   : > { %p3787_p0 = pnand %p3110_p13, %p4357_p3 }
  0x2b   : > { %s4404_s23 = scalar_select %p3787_p0, 1, 0 }
  0x2c   : > { %p3805_p4 = pneg %p3787_p0 }
  0x2d   : > { %s3299_s19 = scalar_lea.hbm %s4406_s3, 16 }
  0x2e   : > { %p3300_p2 = scmp.ne.s32.totalorder %s4406_s3, %s3299_s19  ;;  %p3306_p11 = scmp.lt.u32.totalorder %s3299_s19, %s4406_s3 }
  0x2f   : > { %s4407_s8 = scalar_select %p3805_p4, 1, 0 }
  0x30   : > { %p3302_p6 = pnand %p3805_p4, %p3300_p2 }
  0x32   : > { %p3303_p10 = pneg %p3302_p6 }
  0x34   : > { %p3308_p13 = pnand %p3306_p11, %p3303_p10 }
  0x36   : > { %3311 = shalt.err (!%p3308_p13)
}
  0x37   : > { %s3312_s14 = scalar_lea.vmem %s295_s22, 16  ;;  %s3319_s27 = scalar_lea.vmem %s295_s22, 32 }
  0x38   : > { %p3313_p3 = scmp.ne.s32.totalorder %s295_s22, %s3312_s14  ;;  %p3320_p7 = scmp.lt.s32.totalorder %s295_s22, %s295_s22 }
  0x39   : > { %p3321_p12 = scmp.lt.s32.totalorder %s3319_s27, %s3312_s14 }
  0x3a   : > { %p3315_p9 = pnand %p3313_p3, %p3805_p4 }
  0x3b   : > { %p3322_p5 = por %p3321_p12, %p3320_p7 }
  0x3c   : > { %p3316_p8 = pneg %p3315_p9 }
  0x3e   : > { %p3323_p1 = pnand %p3322_p5, %p3316_p8 }
  0x40   : > { %3326 = shalt.err (!%p3323_p1)
}
  0x41   : > { %3113 = dma.hbm_to_vmem [thread:$0]  (!%p3787_p0), %s4406_s3, 16, %s295_s22, [#allocation13]  }
  0x42   : > { %p4408_p3 = scmp.ne.s32.totalorder %s4405_s25, 0  ;;  %p3143_p7 = scmp.lt.s32.totalorder %s3643_s12, 8 }
  0x43   : > { %s3832_s7 = sand.u32 1, %s3623_s29   ;;  %s353_s19 = sand.u32 1, %s3643_s12  }
  0x44   : > { %s4463_s24 = smov (%p4408_p3, %s42_s24), 0  ;;  %s4465_s26 = smov (!%p4408_p3, %s45_s26), %s3639_s11 }
  0x45   : > { %4409 = sst [smem:[#allocation37_spill]] %s4463_s24  ;;  %s50_s6 = ssub.s32 %s3635_s10, %s4463_s24 }
  0x46   : > { %p47_p5 = scmp.ge.s32.totalorder %s4465_s26, 2  ;;  %p4411_p8 = scmp.ne.s32.totalorder %s4396_s16, 0 }
  0x47   : > { %s2534_s25 = sshll.u32 %s3832_s7, 3  ;;  %s2535_s15 = sshll.u32 %s3635_s10, 1 }
  0x48   : > { %s4467_s26 = smov (%p47_p5, %s4465_s26), 0  ;;  %p3839_p9 = pnand %p3143_p7, %p4411_p8 }
  0x49   : > { %4410 = sst [smem:[#allocation38_spill]] %s4467_s26  ;;  %s49_s14 = ssub.s32 %s3639_s11, %s4467_s26 }
  0x4a   : > { %s4412_s22 = scalar_select %p3839_p9, 1, 0 }
  0x4b   : > { %s51_s27 = sor.u32 %s50_s6, %s49_s14  ;;  %s2536_s21 = sshll.u32 %s3639_s11, 3 }
  0x4c   : > { %p52_p12 = scmp.eq.s32.totalorder %s51_s27, 0  ;;  %s4413_s3 = sadd.s32 1, %s3623_s29 }
  0x4d   : > { %s3853_s18 = sadd.s32 %s2536_s21, %s2535_s15  ;;  %s357_s16 = scalar_lea.vmem [#allocation9], %s2534_s25 }
  0x4e   : > { %s3851_s24 = scalar_select %p52_p12, %s3623_s29, %s4413_s3  }
  0x4f   : > { %s366_s12 = sshll.u32 %s357_s16, 4  ;;  %s2537_s9 = sshll.u32 %s3853_s18, 6  ;;  %s3858_s12 = int_to_ptr.vmem [resolvable:$true] %s366_s12 }
  0x50   : > { %4414 = sst [smem:[#allocation39_spill]] %s3851_s24  ;;  %s4415_s1 = sld [smem:[#allocation40_spill]] }
  0x51   : > { %s3867_s3 = scalar_lea.sflag [#allocation10], %s353_s19  ;;  %p3873_p2 = pneg %p3839_p9 }
  0x53   : > { %s4416_s27 = scalar_select %p3873_p2, 1, 0 }
  0x56   : > { %s3865_s6 = scalar_lea.hbm %s4415_s1, %s2537_s9  ;;  %s3332_s15 = scalar_lea.hbm %s4415_s1, 1024 }
  0x57   : > { %s3327_s14 = scalar_lea.hbm %s3865_s6, 128  ;;  %p3333_p11 = scmp.lt.u32.totalorder %s3865_s6, %s4415_s1 }
  0x58   : > { %p3328_p1 = scmp.ne.s32.totalorder %s3865_s6, %s3327_s14  ;;  %p3334_p13 = scmp.lt.u32.totalorder %s3332_s15, %s3327_s14 }
  0x59   : > { %p3336_p5 = scmp.lt.u32.totalorder %s3327_s14, %s3865_s6 }
  0x5a   : > { %p3330_p6 = pnand %p3873_p2, %p3328_p1  ;;  %p3335_p3 = por %p3334_p13, %p3333_p11 }
  0x5c   : > { %p3331_p10 = pneg %p3330_p6  ;;  %p3337_p7 = por %p3336_p5, %p3335_p3 }
  0x5e   : > { %p3338_p8 = pnand %p3337_p7, %p3331_p10 }
  0x60   : > { %3341 = shalt.err (!%p3338_p8)
}
  0x61   : > { %s3342_s19 = scalar_lea.vmem %s3858_s12, 128  ;;  %s3646_s30 = smov [#allocation9]  }
  0x62   : > { %p3343_p12 = scmp.ne.s32.totalorder %s3858_s12, %s3342_s19  ;;  %s3347_s26 = sshll.u32 %s3646_s30, 4  ;;  %s3348_s26 = int_to_ptr.vmem [resolvable:$false] %s3347_s26 }
  0x63   : > { %s3349_s21 = scalar_lea.vmem %s3348_s26, 256  ;;  %p3350_p0 = scmp.lt.s32.totalorder %s3858_s12, %s3348_s26 }
  0x64   : > { %p3345_p1 = pnand %p3343_p12, %p3873_p2  ;;  %p3351_p4 = scmp.lt.s32.totalorder %s3349_s21, %s3342_s19 }
  0x66   : > { %p3346_p6 = pneg %p3345_p1  ;;  %p3352_p11 = por %p3351_p4, %p3350_p0 }
  0x68   : > { %p3353_p13 = pnand %p3352_p11, %p3346_p6 }
  0x6a   : > { %3356 = shalt.err (!%p3353_p13)
}
  0x6b   : > { %s3647_s14 = smov 64   ;;  %s3648_s15 = smov 4  }
  0x6c   : > { %3126 = dma.hbm_to_vmem [thread:$0]  (!%p3839_p9), %s3865_s6, 128, %s3858_s12, %s3867_s3, %s3647_s14, %s3647_s14, %s3648_s15  }
  0x6d   : > { %s3905_s30 = scalar_lea.hbm %s4344_s2, %s2537_s9  ;;  %s380_s26 = scalar_lea.vmem [#allocation11], %s2534_s25 }
  0x6e   : > { %s389_s21 = sshll.u32 %s380_s26, 4  ;;  %s3649_s1 = smov [#allocation14]   ;;  %s3909_s21 = int_to_ptr.vmem [resolvable:$true] %s389_s21 }
  0x6f   : > { %s305_s24 = sshll.u32 %s3649_s1, 4  ;;  %s3650_s29 = smov [#allocation15]   ;;  %s306_s24 = int_to_ptr.vmem [resolvable:$true] %s305_s24 }
  0x70   : > { %s315_s13 = sshll.u32 %s3650_s29, 4  ;;  %s3357_s12 = scalar_lea.hbm %s4346_s4, 16  ;;  %s316_s13 = int_to_ptr.vmem [resolvable:$true] %s315_s13 }
  0x71   : > { %p3358_p0 = scmp.ne.s32.totalorder %s4346_s4, %s3357_s12  ;;  %p4417_p4 = scmp.ne.s32.totalorder %s4407_s8, 0 }
  0x72   : > { %p3364_p5 = scmp.lt.u32.totalorder %s3357_s12, %s4346_s4 }
  0x73   : > { %p3360_p10 = pnand %p3358_p0, %p4417_p4 }
  0x75   : > { %p3361_p3 = pneg %p3360_p10 }
  0x77   : > { %p3366_p7 = pnand %p3364_p5, %p3361_p3 }
  0x79   : > { %3369 = shalt.err (!%p3366_p7)
}
  0x7a   : > { %s3370_s1 = scalar_lea.vmem %s306_s24, 16  ;;  %s3377_s28 = scalar_lea.vmem %s306_s24, 32 }
  0x7b   : > { %p3371_p8 = scmp.ne.s32.totalorder %s306_s24, %s3370_s1  ;;  %p3378_p6 = scmp.lt.s32.totalorder %s306_s24, %s306_s24 }
  0x7c   : > { %p3379_p11 = scmp.lt.s32.totalorder %s3377_s28, %s3370_s1 }
  0x7d   : > { %p3373_p12 = pnand %p3371_p8, %p4417_p4 }
  0x7e   : > { %p3380_p13 = por %p3379_p11, %p3378_p6 }
  0x7f   : > { %p3374_p1 = pneg %p3373_p12 }
  0x81   : > { %p3381_p9 = pnand %p3380_p13, %p3374_p1 }
  0x83   : > { %3384 = shalt.err (!%p3381_p9)
}
  0x84   : > { %p4418_p0 = scmp.ne.s32.totalorder %s4404_s23, 0  ;;  %s3385_s26 = scalar_lea.hbm %s4347_s5, 9216 }
  0x85   : > { %p3386_p10 = scmp.ne.s32.totalorder %s4347_s5, %s3385_s26  ;;  %p3392_p9 = scmp.lt.u32.totalorder %s3385_s26, %s4347_s5 }
  0x86   : > { %3116 = dma.hbm_to_vmem [thread:$0]  (!%p4418_p0), %s4346_s4, 16, %s306_s24, [#allocation13]  }
  0x87   : > { %p3388_p3 = pnand %p3386_p10, %p4417_p4 }
  0x89   : > { %p3389_p5 = pneg %p3388_p3 }
  0x8b   : > { %p3394_p7 = pnand %p3392_p9, %p3389_p5 }
  0x8d   : > { %3397 = shalt.err (!%p3394_p7)
}
  0x8e   : > { %s3398_s25 = scalar_lea.vmem %s316_s13, 9216  ;;  %p3406_p6 = scmp.lt.s32.totalorder %s316_s13, %s316_s13 }
  0x8f   : > { %p3399_p8 = scmp.ne.s32.totalorder %s316_s13, %s3398_s25  ;;  %p3407_p11 = scmp.lt.s32.totalorder %s3398_s25, %s3398_s25 }
  0x91   : > { %p3401_p12 = pnand %p3399_p8, %p4417_p4  ;;  %p3408_p13 = por %p3407_p11, %p3406_p6 }
  0x93   : > { %p3402_p1 = pneg %p3401_p12 }
  0x95   : > { %p3409_p2 = pnand %p3408_p13, %p3402_p1 }
  0x97   : > { %3412 = shalt.err (!%p3409_p2)
}
  0x98   : > { %3119 = dma.hbm_to_vmem [thread:$0]  (!%p4418_p0), %s4347_s5, 9216, %s316_s13, [#allocation16], %s3647_s14, %s3647_s14, %s3648_s15  }
  0x99   : > { %s2529_s8 = sshll.u32 %s3832_s7, 5  ;;  %s2649_s28 = sshll.u32 %s3635_s10, 3 }
  0x9a   : > { %s2532_s29 = sshll.u32 %s3639_s11, 5  ;;  %s333_s16 = scalar_lea.vmem [#allocation6], %s2529_s8 }
  0x9b   : > { %s340_s17 = sadd.s32 %s2649_s28, %s2532_s29  ;;  %s343_s19 = sshll.u32 %s333_s16, 4  ;;  %s3953_s19 = int_to_ptr.vmem [resolvable:$true] %s343_s19 }
  0x9c   : > { %s2533_s26 = sshll.u32 %s340_s17, 6  ;;  %s330_s6 = scalar_lea.sflag [#allocation7], %s3832_s7 }
  0x9d   : > { %s3958_s18 = scalar_lea.hbm %s4342_s0, %s2533_s26  ;;  %p4419_p4 = scmp.ne.s32.totalorder %s4416_s27, 0 }
  0x9e   : > { %s3413_s13 = scalar_lea.hbm %s3958_s18, 512  ;;  %s3418_s24 = scalar_lea.hbm %s4342_s0, 4096 }
  0x9f   : > { %p3414_p2 = scmp.ne.s32.totalorder %s3958_s18, %s3413_s13  ;;  %p3419_p3 = scmp.lt.u32.totalorder %s3958_s18, %s4342_s0 }
  0xa0   : > { %p3420_p5 = scmp.lt.u32.totalorder %s3418_s24, %s3413_s13  ;;  %p3422_p7 = scmp.lt.u32.totalorder %s3413_s13, %s3958_s18 }
  0xa1   : > { %p3416_p0 = pnand %p3414_p2, %p4419_p4 }
  0xa2   : > { %p3421_p9 = por %p3420_p5, %p3419_p3 }
  0xa3   : > { %p3417_p10 = pneg %p3416_p0 }
  0xa4   : > { %p3423_p8 = por %p3422_p7, %p3421_p9 }
  0xa6   : > { %p3424_p12 = pnand %p3423_p8, %p3417_p10 }
  0xa8   : > { %3427 = shalt.err (!%p3424_p12)
}
  0xa9   : > { %s3428_s28 = scalar_lea.vmem %s3953_s19, 512  ;;  %s3651_s29 = smov [#allocation6]  }
  0xaa   : > { %p3429_p1 = scmp.ne.s32.totalorder %s3953_s19, %s3428_s28  ;;  %s3433_s17 = sshll.u32 %s3651_s29, 4  ;;  %s3434_s17 = int_to_ptr.vmem [resolvable:$false] %s3433_s17 }
  0xab   : > { %s3435_s16 = scalar_lea.vmem %s3434_s17, 1024  ;;  %p3436_p13 = scmp.lt.s32.totalorder %s3953_s19, %s3434_s17 }
  0xac   : > { %p3431_p6 = pnand %p3429_p1, %p4419_p4  ;;  %p3437_p2 = scmp.lt.s32.totalorder %s3435_s16, %s3428_s28 }
  0xae   : > { %p3432_p11 = pneg %p3431_p6  ;;  %p3438_p0 = por %p3437_p2, %p3436_p13 }
  0xb0   : > { %p3439_p3 = pnand %p3438_p0, %p3432_p11 }
  0xb2   : > { %3442 = shalt.err (!%p3439_p3)
}
  0xb3   : > { %p4420_p10 = scmp.ne.s32.totalorder %s4412_s22, 0  ;;  %s3443_s26 = scalar_lea.hbm %s3905_s30, 128 }
  0xb4   : > { %p3444_p5 = scmp.ne.s32.totalorder %s3905_s30, %s3443_s26  ;;  %s3448_s13 = scalar_lea.hbm %s4344_s2, 1024 }
  0xb5   : > { %3123 = dma.hbm_to_vmem [thread:$0]  (!%p4420_p10), %s3958_s18, 512, %s3953_s19, %s330_s6, %s3647_s14, %s3647_s14, %s3648_s15  }
  0xb6   : > { %p3446_p9 = pnand %p3444_p5, %p4419_p4  ;;  %p3449_p8 = scmp.lt.u32.totalorder %s3905_s30, %s4344_s2 }
  0xb7   : > { %p3450_p12 = scmp.lt.u32.totalorder %s3448_s13, %s3443_s26  ;;  %p3452_p6 = scmp.lt.u32.totalorder %s3443_s26, %s3905_s30 }
  0xb8   : > { %p3447_p7 = pneg %p3446_p9 }
  0xb9   : > { %p3451_p1 = por %p3450_p12, %p3449_p8 }
  0xbb   : > { %p3453_p11 = por %p3452_p6, %p3451_p1 }
  0xbd   : > { %p3454_p13 = pnand %p3453_p11, %p3447_p7 }
  0xbf   : > { %3457 = shalt.err (!%p3454_p13)
}
  0xc0   : > { %s3458_s7 = scalar_lea.vmem %s3909_s21, 128  ;;  %s3652_s19 = smov [#allocation11]  }
  0xc1   : > { %p3459_p2 = scmp.ne.s32.totalorder %s3909_s21, %s3458_s7  ;;  %s3463_s18 = sshll.u32 %s3652_s19, 4  ;;  %s3464_s18 = int_to_ptr.vmem [resolvable:$false] %s3463_s18 }
  0xc2   : > { %s3465_s6 = scalar_lea.vmem %s3464_s18, 256  ;;  %p3466_p5 = scmp.lt.s32.totalorder %s3909_s21, %s3464_s18 }
  0xc3   : > { %p3461_p0 = pnand %p3459_p2, %p4419_p4  ;;  %p3467_p9 = scmp.lt.s32.totalorder %s3465_s6, %s3458_s7 }
  0xc5   : > { %p3462_p3 = pneg %p3461_p0  ;;  %p3468_p8 = por %p3467_p9, %p3466_p5 }
  0xc7   : > { %p3469_p12 = pnand %p3468_p8, %p3462_p3 }
  0xc9   : > { %3472 = shalt.err (!%p3469_p12)
}
  0xca   : > { %3129 = dma.hbm_to_vmem [thread:$0]  (!%p4420_p10), %s3905_s30, 128, %s3909_s21, %s3867_s3, %s3647_s14, %s3647_s14, %s3648_s15  }
  0xcb   : > { %p4421_p4 = scmp.ne.s32.totalorder %s4403_s20, 0 }
  0xcc   : > { %s4422_s27 = sld [smem:[#allocation28_spill]] (!%p4421_p4)  ;;  %s4423_s24 = sld [smem:[#allocation34_spill]] (!%p4421_p4) }
  0xcd   : > { %401 = sbr.rel (%p4421_p4) target bundleno = 719 (0x2cf), region = 44 }
  0xd2   : > { %s4015_s1 = sand.u32 (!%p4421_p4), 1, %s4422_s27   ;;  %p4424_p7 = scmp.ne.s32.totalorder (!%p4421_p4), %s4423_s24, 0 }
  0xd3   : > { %s2543_s8 = sshll.u32 (!%p4421_p4), %s4015_s1, 5  ;;  %s404_s28 = scalar_lea.sflag (!%p4421_p4), [#allocation7], %s4015_s1 }
  0xd4   : > { %s407_s29 = scalar_lea.vmem [#allocation6], %s2543_s8 }
  0xd5   : > { %3590 = dma.done.wait (%p4424_p7), %s404_s28, 512  }
  0xd6   : > { %3592 = vsyncadd (%p4424_p7), %s404_s28, 4294966784  ;;  %s4425_s22 = sld [smem:[#allocation33_spill]]  ;;  %s2544_s3 = sshll.u32 %s4015_s1, 3 }
  0xd7   : > { %s416_s15 = scalar_lea.vmem [#allocation9], %s2544_s3 }
  0xdc   : > { %s412_s20 = sand.u32 1, %s4425_s22  }
  0xdd   : > { %s413_s14 = scalar_lea.sflag [#allocation10], %s412_s20 }
  0xde   : > { %3594 = dma.done.wait (%p4424_p7), %s413_s14, 256  }
  0xdf   : > { %3596 = vsyncadd (%p4424_p7), %s413_s14, 4294967040  ;;  %s425_s30 = scalar_lea.vmem [#allocation11], %s2544_s3  ;;  %p4426_p10 = scmp.eq.s32.totalorder %s4425_s22, 0 }
  0xe1   : > { %3598 = dma.done.wait (%p4426_p10), [#allocation13], 32   ;;  %p4427_p1 = pmov %p4426_p10 }
  0xe3   : > { %3600 = vsyncadd (%p4427_p1), [#allocation13], 4294967264  ;;  %p4428_p6 = pmov %p4427_p1 }
  0xe4   : > { %p4429_p11 = pmov %p4427_p1 }
  0xe5   : > { %3602 = dma.done.wait (%p4428_p6), [#allocation16], 9216  }
  0xe6   : > { %3604 = vsyncadd (%p4429_p11), [#allocation16], 4294958080  ;;  %v3221_v0 = vld [vmem:[%s407_s29] sm:$0xff]   ;;  %v3222_v1 = vld [vmem:[%s407_s29 + $0x8] sm:$0xff]   ;;  %s4039_s21 = scalar_lea.vmem [#allocation17], %s2543_s8  ;;  %s481_s17 = scalar_lea.vmem [#allocation18], %s4015_s1 }
  0xe7   : > { %524 = vst [vmem:[#allocation3 + $0x8] sm:$0xff] %v3221_v0  ;;  %v3223_v2 = vld [vmem:[%s407_s29 + $0x10] sm:$0xff]   ;;  %525 = vst [vmem:[#allocation3 + $0x10] sm:$0xff] %v3222_v1  ;;  %v3224_v3 = vld [vmem:[%s407_s29 + $0x18] sm:$0xff]   ;;  %s487_s16 = scalar_lea.vmem [#allocation20], %s4015_s1  ;;  %s4430_s26 = sld [smem:[#allocation30_spill]] }
  0xe8   : > { %526 = vst [vmem:[#allocation3 + $0x18] sm:$0xff] %v3223_v2  ;;  %v3225_v4 = vld [vmem:[%s416_s15] sm:$0xff]   ;;  %527 = vst [vmem:[#allocation3 + $0x20] sm:$0xff] %v3224_v3  ;;  %v3226_v5 = vld [vmem:[%s425_s30] sm:$0xff]  }
  0xe9   : > { %536 = vst [vmem:[#allocation3] sm:$0xff] %v3225_v4  ;;  %546 = vst [vmem:[#allocation3 + $0x28] sm:$0xff] %v3226_v5 }
  0xed   : > { %p2556_p13 = scmp.ne.s32.totalorder %s4430_s26, 0 }
  0xee   : > { %v3653_v6 = vmov (!%p2556_p13), 0  }
  0xef   : > { %550 = sbr.rel (%p2556_p13) target bundleno = 246 (0xf6), region = 72  ;;  %551 = vst [vmem:[#allocation3] sm:$0xff] (!%p2556_p13), %v3653_v6 }
  0xf6 PF: > { %s4431_s23 = sld [smem:[#allocation30_spill]] }
  0xfc   : > { %p2557_p2 = scmp.ne.s32.totalorder %s4431_s23, 3 }
  0xfd   : > { %v3654_v7 = vmov (!%p2557_p2), 0  }
  0xfe   : > { %555 = sbr.rel (%p2557_p2) target bundleno = 261 (0x105), region = 76  ;;  %556 = vst [vmem:[#allocation3 + $0x28] sm:$0xff] (!%p2557_p2), %v3654_v7 }
 0x105 PF: > { %v3227_v8 = vld [vmem:[#allocation15] sm:$0xff]   ;;  %v3229_v10 = vld [vmem:[#allocation15 + $0x8] sm:$0xff]   ;;  %v3231_v12 = vld [vmem:[#allocation15 + $0x10] sm:$0xff]   ;;  %vm611_vm0 = vcmask 1047552   ;;  %vm612_vm1 = vsmask.f32 7938 }
 0x106   : > { %v3228_v9 = vld [vmem:[#allocation15 + $0x100] sm:$0xff]   ;;  %2790 = vmatprep.subr.bf16.mxu1 %v3227_v8  ;;  %v3230_v11 = vld [vmem:[#allocation15 + $0x108] sm:$0xff]   ;;  %v3232_v13 = vld [vmem:[#allocation15 + $0x110] sm:$0xff]   ;;  %vm633_vm2 = vsmask.f32 256  ;;  %vm632_vm4 = vcmask 1040384  }
 0x107   : > { %2886 = vmatprep.subr.bf16.mxu0 %v3228_v9  ;;  %2791 = vmatpush3.bf16.msra.mxu1 %v3227_v8  ;;  %v3233_v14 = vld [vmem:[#allocation15 + $0x18] sm:$0xff]   ;;  %v3235_v16 = vld [vmem:[#allocation15 + $0x20] sm:$0xff]   ;;  %v3237_v18 = vld [vmem:[#allocation15 + $0x28] sm:$0xff]   ;;  %vm707_vm6 = vsmask.f32 7424  ;;  %vm727_vm9 = vcmask 1047559  }
 0x108   : > { %2887 = vmatpush3.bf16.msra.mxu0 %v3228_v9  ;;  %2792 = vmatprep.subr.bf16.mxu1 %v3229_v10  ;;  %v3234_v15 = vld [vmem:[#allocation15 + $0x118] sm:$0xff]   ;;  %v3236_v17 = vld [vmem:[#allocation15 + $0x120] sm:$0xff]   ;;  %v3238_v19 = vld [vmem:[#allocation15 + $0x128] sm:$0xff]   ;;  %vm728_vm8 = vsmask.f32 7966  ;;  %s4440_s12 = sld [smem:[#allocation30_spill]] }
 0x109   : > { %2888 = vmatprep.subr.bf16.mxu0 %v3230_v11  ;;  %v4045_v20 = vld [vmem:[#allocation3] sm:$0xff]  ;;  %v3239_v23 = vld [vmem:[#allocation15 + $0x30] sm:$0xff]   ;;  %v4049_v24 = vld [vmem:[#allocation3 + $0x8] sm:$0xff]  ;;  %s4441_s13 = sld [smem:[#allocation31_spill]]  ;;  %s2267_s19 = sshll.u32 %s4039_s21, 4  ;;  %s4207_s19 = int_to_ptr.vmem [resolvable:$true] %s2267_s19 }
 0x10a   : > { %v564_v21 = vshrl.u32 %v4045_v20, 16  ;;  %v567_v22 = vshll.u32 %v4045_v20, 16  ;;  %v614_v26 = vld [vmem:[#allocation2] sm:$0xff]  ;;  %2902 = vmatprep.mubr.bf16.mxu0 %v4049_v24  ;;  %vm4055_vm3 = vmand %vm611_vm0, %vm612_vm1  ;;  %v571_v28 = vshrl.u32 %v4049_v24, 16  ;;  %v574_v29 = vshll.u32 %v4049_v24, 16  ;;  %v617_v36 = vld [vmem:[#allocation2 + $0x8] sm:$0xff] }
 0x10b   : > { %2793 = vmatpush3.bf16.msra.mxu1 %v3229_v10  ;;  %v4061_v30 = vld [vmem:[#allocation3 + $0x10] sm:$0xff]  ;;  %v3241_v38 = vld [vmem:[#allocation15 + $0x38] sm:$0xff]   ;;  %vm4073_vm5 = vmand %vm632_vm4, %vm633_vm2  ;;  %s4442_s6 = sld [smem:[#allocation35_spill]]  ;;  %s4443_s8 = sld [smem:[#allocation42_spill]] }
 0x10c   : > { %2889 = vmatpush3.bf16.msra.mxu0 %v3230_v11  ;;  %2794 = vmatprep.subr.bf16.mxu1 %v3231_v12  ;;  %v566_v25 = vrot.slane %v564_v21, 7  ;;  %v3240_v31 = vld [vmem:[#allocation15 + $0x130] sm:$0xff]   ;;  %v578_v33 = vshrl.u32 %v4061_v30, 16  ;;  %v573_v34 = vrot.slane %v571_v28, 7  ;;  %v581_v40 = vshll.u32 %v4061_v30, 16  ;;  %v3242_v41 = vld [vmem:[#allocation15 + $0x138] sm:$0xff]   ;;  %vm4092_vm7 = vmand %vm611_vm0, %vm707_vm6 }
 0x10d   : > { %2890 = vmatprep.subr.bf16.mxu0 %v3232_v13  ;;  %v3243_v45 = vld [vmem:[#allocation15 + $0x40] sm:$0xff]   ;;  %v671_v48 = vrot.slane %v574_v29, 1  ;;  %v4081_v52 = vld [vmem:[#allocation3 + $0x18] sm:$0xff]  ;;  %v3246_v53 = vld [vmem:[#allocation15 + $0x148] sm:$0xff]   ;;  %s2243_s29 = scalar_lea.sflag [#allocation8], %s4015_s1  ;;  %s3473_s22 = scalar_lea.vmem %s4207_s19, 512 }
 0x10e   : > { %v569_v32 = vor.u32 %v567_v22, %v566_v25  ;;  %v580_v37 = vrot.slane %v578_v33, 7  ;;  %v576_v39 = vor.u32 %v574_v29, %v573_v34  ;;  %v3244_v46 = vld [vmem:[#allocation15 + $0x140] sm:$0xff]   ;;  %v585_v54 = vshrl.u32 %v4081_v52, 16  ;;  %v3248_v62 = vld [vmem:[#allocation15 + $0x150] sm:$0xff]   ;;  %v3250_v10 = vld [vmem:[#allocation15 + $0x158] sm:$0xff]   ;;  %s2658_s9 = sshll.u32 %s4440_s12, 3  ;;  %p3474_p0 = scmp.ne.s32.totalorder %s4207_s19, %s3473_s22 }
 0x10f   : > { %2795 = vmatpush3.bf16.msra.mxu1 %v3231_v12  ;;  %v620_v47 = vld [vmem:[#allocation2 + $0x10] sm:$0xff]  ;;  %v588_v55 = vshll.u32 %v4081_v52, 16  ;;  %v678_v56 = vrot.slane %v581_v40, 1  ;;  %v623_v60 = vld [vmem:[#allocation2 + $0x18] sm:$0xff]  ;;  %v672_v61 = vor.u32 %v671_v48, %v571_v28  ;;  %v712_v2 = vld [vmem:[#allocation4 + $0x8] sm:$0xff]  ;;  %s2641_s25 = sshll.u32 %s4441_s13, 5 }
 0x110   : > { %2891 = vmatpush3.bf16.msra.mxu0 %v3232_v13  ;;  %2796 = vmatprep.subr.bf16.mxu1 %v3233_v14  ;;  %v615_v35 = vsel %vm4055_vm3, %v569_v32, %v614_v26  ;;  %v618_v42 = vsel %vm4055_vm3, %v576_v39, %v617_v36  ;;  %v583_v44 = vor.u32 %v581_v40, %v580_v37  ;;  %v587_v59 = vrot.slane %v585_v54, 7  ;;  %v4098_v5 = vld [vmem:[#allocation3 + $0x20] sm:$0xff]  ;;  %v3245_v12 = vld [vmem:[#allocation15 + $0x48] sm:$0xff]   ;;  %vm4112_vm10 = vmand %vm727_vm9, %vm728_vm8  ;;  %s2264_s7 = sadd.s32 %s2658_s9, %s2641_s25  ;;  %s3655_s3 = smov [#allocation17]  }
 0x111   : > { %2892 = vmatprep.subr.bf16.mxu0 %v3234_v15  ;;  %616 = vst [vmem:[#allocation2] sm:$0xff] %v615_v35  ;;  %619 = vst [vmem:[#allocation2 + $0x8] sm:$0xff] %v618_v42  ;;  %v679_v1 = vor.u32 %v678_v56, %v578_v33  ;;  %v713_v6 = vsel %vm4092_vm7, %v672_v61, %v712_v2  ;;  %v715_v9 = vld [vmem:[#allocation4 + $0x10] sm:$0xff]  ;;  %v690_v13 = vshll.u32 %v4098_v5, 16  ;;  %v3254_v29 = vld [vmem:[#allocation15 + $0x168] sm:$0xff]   ;;  %v664_v37 = vrot.slane %v567_v22, 1 }
 0x112   : > { %v621_v50 = vsel %vm4055_vm3, %v583_v44, %v620_v47  ;;  %v590_v63 = vor.u32 %v588_v55, %v587_v59  ;;  %714 = vst [vmem:[#allocation4 + $0x8] sm:$0xff] %v713_v6  ;;  %v3249_v28 = vld [vmem:[#allocation15 + $0x58] sm:$0xff]   ;;  %v3256_v39 = vld [vmem:[#allocation15 + $0x170] sm:$0xff]   ;;  %v718_v40 = vld [vmem:[#allocation4 + $0x18] sm:$0xff]  ;;  %s2642_s18 = sshll.u32 %s2264_s7, 6  ;;  %p4444_p3 = scmp.ne.s32.totalorder %s4442_s6, 0 }
 0x113   : > { %2797 = vmatpush3.bf16.msra.mxu1 %v3233_v14  ;;  %622 = vst [vmem:[#allocation2 + $0x10] sm:$0xff] %v621_v50  ;;  %v716_v11 = vsel %vm4092_vm7, %v679_v1, %v715_v9  ;;  %v721_v44 = vld [vmem:[#allocation4 + $0x20] sm:$0xff]  ;;  %v3258_v48 = vld [vmem:[#allocation15 + $0x178] sm:$0xff]   ;;  %v3259_v2 = vld [vmem:[#allocation15 + $0x80] sm:$0xff]   ;;  %s4212_s28 = scalar_lea.hbm %s4443_s8, %s2642_s18  ;;  %s3477_s14 = sshll.u32 %s3655_s3, 4  ;;  %s3478_s14 = int_to_ptr.vmem [resolvable:$false] %s3477_s14 }
 0x114   : > { %2893 = vmatpush3.bf16.msra.mxu0 %v3234_v15  ;;  %2798 = vmatprep.subr.bf16.mxu1 %v3235_v16  ;;  %v624_v4 = vsel %vm4055_vm3, %v590_v63, %v623_v60  ;;  %717 = vst [vmem:[#allocation4 + $0x10] sm:$0xff] %v716_v11  ;;  %v3247_v15 = vld [vmem:[#allocation15 + $0x50] sm:$0xff]   ;;  %v3253_v50 = vld [vmem:[#allocation15 + $0x68] sm:$0xff]   ;;  %v3266_v9 = vld [vmem:[#allocation15 + $0x198] sm:$0xff]   ;;  %p3475_p5 = pnand %p3474_p0, %p4444_p3  ;;  %s3479_s15 = scalar_lea.vmem %s3478_s14, 1024 }
 0x115   : > { %2894 = vmatprep.subr.bf16.mxu0 %v3236_v17  ;;  %625 = vst [vmem:[#allocation2 + $0x18] sm:$0xff] %v624_v4  ;;  %v3262_v60 = vld [vmem:[#allocation15 + $0x188] sm:$0xff]   ;;  %v3264_v1 = vld [vmem:[#allocation15 + $0x190] sm:$0xff]   ;;  %v3267_v27 = vld [vmem:[#allocation15 + $0xa0] sm:$0xff]   ;;  %p3480_p8 = scmp.lt.s32.totalorder %s4207_s19, %s3478_s14  ;;  %p3481_p12 = scmp.lt.s32.totalorder %s3479_s15, %s3473_s22 }
 0x116   : > { %v626_v4 = vld [vmem:[#allocation2 + $0x20] sm:$0xff]  ;;  %v3273_v43 = vld [vmem:[#allocation15 + $0xb8] sm:$0xff]   ;;  %p3476_p9 = pneg %p3475_p5 }
 0x117   : > { %2799 = vmatpush3.bf16.msra.mxu1 %v3235_v16  ;;  %v3252_v16 = vld [vmem:[#allocation15 + $0x160] sm:$0xff]   ;;  %p3482_p4 = por %p3481_p12, %p3480_p8 }
 0x118   : > { %2895 = vmatpush3.bf16.msra.mxu0 %v3236_v17  ;;  %2800 = vmatprep.subr.bf16.mxu1 %v3237_v18  ;;  %v635_v49 = vld [vmem:[#allocation2] sm:$0x1]  ;;  %v638_v57 = vld [vmem:[#allocation2 + $0x8] sm:$0x1] }
 0x119   : > { %2896 = vmatprep.subr.bf16.mxu0 %v3238_v19  ;;  %v636_v51 = vsel %vm4073_vm5, 0, %v635_v49  ;;  %v639_v58 = vsel %vm4073_vm5, 0, %v638_v57  ;;  %v733_v26 = vld [vmem:[#allocation4 + $0x8] sm:$0x80]  ;;  %v709_v49 = vld [vmem:[#allocation4] sm:$0xff]  ;;  %p3483_p7 = pnand %p3482_p4, %p3476_p9 }
 0x11a   : > { %637 = vst [vmem:[#allocation2] sm:$0x1] %v636_v51  ;;  %640 = vst [vmem:[#allocation2 + $0x8] sm:$0x1] %v639_v58  ;;  %v641_v3 = vld [vmem:[#allocation2 + $0x10] sm:$0x1] }
 0x11b   : > { %2801 = vmatpush3.bf16.msra.mxu1 %v3237_v18  ;;  %v642_v8 = vsel %vm4073_vm5, 0, %v641_v3  ;;  %v685_v18 = vrot.slane %v588_v55, 1  ;;  %v734_v33 = vsel %vm4112_vm10, 0, %v733_v26  ;;  %v736_v34 = vld [vmem:[#allocation4 + $0x10] sm:$0x80]  ;;  %v3257_v58 = vld [vmem:[#allocation15 + $0x78] sm:$0xff]  }
 0x11c   : > { %2897 = vmatpush3.bf16.msra.mxu0 %v3238_v19  ;;  %2802 = vmatprep.subr.bf16.mxu1 %v3239_v23  ;;  %643 = vst [vmem:[#allocation2 + $0x10] sm:$0x1] %v642_v8  ;;  %v688_v19 = vshrl.u32 %v4098_v5, 16  ;;  %v644_v25 = vld [vmem:[#allocation2 + $0x18] sm:$0x1]  ;;  %v737_v35 = vsel %vm4112_vm10, 0, %v736_v34 }
 0x11d   : > { %2898 = vmatprep.subr.bf16.mxu0 %v3240_v31  ;;  %v645_v32 = vsel %vm4073_vm5, 0, %v644_v25  ;;  %735 = vst [vmem:[#allocation4 + $0x8] sm:$0x80] %v734_v33  ;;  %v686_v36 = vor.u32 %v685_v18, %v585_v54  ;;  %738 = vst [vmem:[#allocation4 + $0x10] sm:$0x80] %v737_v35  ;;  %v3260_v51 = vld [vmem:[#allocation15 + $0x180] sm:$0xff]  }
 0x11e   : > { %646 = vst [vmem:[#allocation2 + $0x18] sm:$0x1] %v645_v32  ;;  %v594_v57 = vrot.slane %v688_v19, 7  ;;  %v3261_v8 = vld [vmem:[#allocation15 + $0x88] sm:$0xff]   ;;  %v3263_v18 = vld [vmem:[#allocation15 + $0x90] sm:$0xff]  }
 0x11f   : > { %2803 = vmatpush3.bf16.msra.mxu1 %v3239_v23  ;;  %v692_v23 = vrot.slane %v690_v13, 1  ;;  %v719_v42 = vsel %vm4092_vm7, %v686_v36, %v718_v40  ;;  %v3272_v34 = vld [vmem:[#allocation15 + $0x1b0] sm:$0xff]   ;;  %v3269_v40 = vld [vmem:[#allocation15 + $0xa8] sm:$0xff]  }
 0x120   : > { %2899 = vmatpush3.bf16.msra.mxu0 %v3240_v31  ;;  %2804 = vmatprep.subr.bf16.mxu1 %v3241_v38  ;;  %720 = vst [vmem:[#allocation4 + $0x18] sm:$0xff] %v719_v42  ;;  %v597_v63 = vor.u32 %v690_v13, %v594_v57  ;;  %v3268_v13 = vld [vmem:[#allocation15 + $0x1a0] sm:$0xff]   ;;  %v724_v35 = vld [vmem:[#allocation4 + $0x28] sm:$0xff]  ;;  %v3285_v57 = vld [vmem:[#allocation15 + $0xe8] sm:$0xff]  }
 0x121   : > { %2900 = vmatprep.subr.bf16.mxu0 %v3242_v41  ;;  %v748_v7 = vld [vmem:[#allocation2] sm:$0xff]  ;;  %v4107_v14 = vld [vmem:[#allocation2 + $0x8] sm:$0xff] }
 0x122   : > { %2806 = vmatprep.mubr.bf16.mxu1 %v748_v7  ;;  %v627_v7 = vsel %vm4055_vm3, %v597_v63, %v626_v4  ;;  %v3271_v42 = vld [vmem:[#allocation15 + $0xb0] sm:$0xff]  }
 0x123   : > { %2805 = vmatpush3.bf16.msra.mxu1 %v3241_v38  ;;  %v4119_v31 = vld [vmem:[#allocation2 + $0x10] sm:$0xff]  ;;  %v693_v38 = vor.u32 %v692_v23, %v688_v19  ;;  %628 = vst [vmem:[#allocation2 + $0x20] sm:$0xff] %v627_v7 }
 0x124   : > { %2901 = vmatpush3.bf16.msra.mxu0 %v3242_v41  ;;  %2814 = vmatprep.subr.bf16.mxu1 %v3243_v45  ;;  %v3251_v41 = vld [vmem:[#allocation15 + $0x60] sm:$0xff]   ;;  %v4140_v47 = vld [vmem:[#allocation4 + $0x8] sm:$0xff] }
 0x125   : > { %2910 = vmatprep.subr.bf16.mxu0 %v3244_v46  ;;  %v722_v22 = vsel %vm4092_vm7, %v693_v38, %v721_v44  ;;  %v4149_v59 = vld [vmem:[#allocation4 + $0x10] sm:$0xff] }
 0x126   : > { %2807 = vmatmul.mubr.bf16.vlgmr.msra.gmra.mrb[0].mxu1 %v4107_v14  ;;  %723 = vst [vmem:[#allocation4 + $0x20] sm:$0xff] %v722_v22  ;;  %v3274_v38 = vld [vmem:[#allocation15 + $0x1b8] sm:$0xff]  }
 0x127   : > { %2903 = vmatmul.mubr.bf16.vlgmr.msra.gmra.mrb[0].mxu0 %v4061_v30  ;;  %2815 = vmatpush3.bf16.msra.mxu1 %v3243_v45  ;;  %v665_v45 = vor.u32 %v664_v37, %v564_v21  ;;  %v739_v54 = vld [vmem:[#allocation4 + $0x18] sm:$0x80] }
 0x128   : > { %2911 = vmatpush3.bf16.msra.mxu0 %v3244_v46  ;;  %2906 = vmatprep.mubr.bf16.mxu0 %v4081_v52  ;;  %v4138_v46 = vld [vmem:[#allocation2 + $0x18] sm:$0xff]  ;;  %v740_v55 = vsel %vm4112_vm10, 0, %v739_v54 }
 0x129   : > { %2912 = vmatprep.subr.bf16.mxu0 %v3246_v53  ;;  %2816 = vmatprep.subr.bf16.mxu1 %v3245_v12  ;;  %v710_v21 = vsel %vm4092_vm7, %v665_v45, %v709_v49  ;;  %741 = vst [vmem:[#allocation4 + $0x18] sm:$0x80] %v740_v55  ;;  %v3278_v45 = vld [vmem:[#allocation15 + $0x1c8] sm:$0xff]   ;;  %v3275_v49 = vld [vmem:[#allocation15 + $0xc0] sm:$0xff]   ;;  %v3281_v55 = vld [vmem:[#allocation15 + $0xd8] sm:$0xff]  }
 0x12a   : > { %2810 = vmatprep.mubr.bf16.mxu1 %v4119_v31  ;;  %711 = vst [vmem:[#allocation4] sm:$0xff] %v710_v21  ;;  %v647_v25 = vld [vmem:[#allocation2 + $0x20] sm:$0x1] }
 0x12b   : > { %2817 = vmatpush3.bf16.msra.mxu1 %v3245_v12  ;;  %v3277_v21 = vld [vmem:[#allocation15 + $0xc8] sm:$0xff]  }
 0x12c   : > { %2913 = vmatpush3.bf16.msra.mxu0 %v3246_v53  ;;  %2818 = vmatprep.subr.bf16.mxu1 %v3247_v15  ;;  %v3255_v53 = vld [vmem:[#allocation15 + $0x70] sm:$0xff]   ;;  %v3286_v54 = vld [vmem:[#allocation15 + $0x1e8] sm:$0xff]  }
 0x12d   : > { %2914 = vmatprep.subr.bf16.mxu0 %v3248_v62  ;;  %v742_v56 = vld [vmem:[#allocation4 + $0x20] sm:$0x80] }
 0x12e   : > { %2811 = vmatmul.mubr.bf16.gmra.mrb[4].mxu1 %v4138_v46 }
 0x12f   : > { %2907 = vmatmul.mubr.bf16.gmra.mrb[4].mxu0 %v4098_v5  ;;  %2819 = vmatpush3.bf16.msra.mxu1 %v3247_v15 }
 0x130   : > { %2915 = vmatpush3.bf16.msra.mxu0 %v3248_v62  ;;  %2820 = vmatprep.subr.bf16.mxu1 %v3249_v28  ;;  %v4158_v3 = vld [vmem:[#allocation4 + $0x18] sm:$0xff] }
 0x131   : > { %2916 = vmatprep.subr.bf16.mxu0 %v3250_v10  ;;  %2830 = vmatprep.mubr.bf16.mxu1 %v4045_v20  ;;  %v743_v20 = vsel %vm4112_vm10, 0, %v742_v56  ;;  %v730_v61 = vld [vmem:[#allocation4] sm:$0x80]  ;;  %v3283_v56 = vld [vmem:[#allocation15 + $0xe0] sm:$0xff]  }
 0x132   : > { %2926 = vmatprep.mubr.bf16.mxu0 %v4140_v47  ;;  %744 = vst [vmem:[#allocation4 + $0x20] sm:$0x80] %v743_v20  ;;  %v731_v62 = vsel %vm4112_vm10, 0, %v730_v61  ;;  %v3287_v20 = vld [vmem:[#allocation15 + $0xf0] sm:$0xff]   ;;  %v3289_v61 = vld [vmem:[#allocation15 + $0xf8] sm:$0xff]  }
 0x133   : > { %2821 = vmatpush3.bf16.msra.mxu1 %v3249_v28  ;;  %732 = vst [vmem:[#allocation4] sm:$0x80] %v731_v62  ;;  %v648_v28 = vsel %vm4073_vm5, 0, %v647_v25  ;;  %v3294_v62 = vld [vmem:[#allocation15 + $0x218] sm:$0xff]  }
 0x134   : > { %2917 = vmatpush3.bf16.msra.mxu0 %v3250_v10  ;;  %2822 = vmatprep.subr.bf16.mxu1 %v3251_v41  ;;  %v4165_v10 = vld [vmem:[#allocation3 + $0x28] sm:$0xff]  ;;  %649 = vst [vmem:[#allocation2 + $0x20] sm:$0x1] %v648_v28 }
 0x135   : > { %2918 = vmatprep.subr.bf16.mxu0 %v3252_v16  ;;  %v599_v11 = vshrl.u32 %v4165_v10, 16  ;;  %v602_v12 = vshll.u32 %v4165_v10, 16 }
 0x137   : > { %2823 = vmatpush3.bf16.msra.mxu1 %v3251_v41  ;;  %v601_v15 = vrot.slane %v599_v11, 7  ;;  %v699_v23 = vrot.slane %v602_v12, 1  ;;  %v3276_v41 = vld [vmem:[#allocation15 + $0x1c0] sm:$0xff]  }
 0x138   : > { %2919 = vmatpush3.bf16.msra.mxu0 %v3252_v16  ;;  %2824 = vmatprep.subr.bf16.mxu1 %v3253_v50  ;;  %v629_v16 = vld [vmem:[#allocation2 + $0x28] sm:$0xff] }
 0x139   : > { %2920 = vmatprep.subr.bf16.mxu0 %v3254_v29  ;;  %v4161_v6 = vld [vmem:[#allocation4 + $0x20] sm:$0xff]  ;;  %v604_v19 = vor.u32 %v602_v12, %v601_v15  ;;  %v700_v33 = vor.u32 %v699_v23, %v599_v11 }
 0x13a   : > { %v1047_v32 = vld [vmem:[#allocation4] sm:$0xff] }
 0x13b   : > { %2825 = vmatpush3.bf16.msra.mxu1 %v3253_v50  ;;  %v630_v26 = vsel %vm4055_vm3, %v604_v19, %v629_v16  ;;  %v725_v36 = vsel %vm4092_vm7, %v700_v33, %v724_v35  ;;  %v4184_v22 = vld [vmem:[#allocation2 + $0x20] sm:$0xff]  ;;  %v3282_v50 = vld [vmem:[#allocation15 + $0x1d8] sm:$0xff]  }
 0x13c   : > { %2921 = vmatpush3.bf16.msra.mxu0 %v3254_v29  ;;  %2826 = vmatprep.subr.bf16.mxu1 %v3255_v53  ;;  %631 = vst [vmem:[#allocation2 + $0x28] sm:$0xff] %v630_v26  ;;  %v3265_v29 = vld [vmem:[#allocation15 + $0x98] sm:$0xff]   ;;  %726 = vst [vmem:[#allocation4 + $0x28] sm:$0xff] %v725_v36 }
 0x13d   : > { %2922 = vmatprep.subr.bf16.mxu0 %v3256_v39 }
 0x13f   : > { %2827 = vmatpush3.bf16.msra.mxu1 %v3255_v53  ;;  %v3279_v53 = vld [vmem:[#allocation15 + $0xd0] sm:$0xff]  }
 0x140   : > { %2923 = vmatpush3.bf16.msra.mxu0 %v3256_v39  ;;  %2828 = vmatprep.subr.bf16.mxu1 %v3257_v58 }
 0x141   : > { %2924 = vmatprep.subr.bf16.mxu0 %v3258_v48 }
 0x143   : > { %2829 = vmatpush3.bf16.msra.mxu1 %v3257_v58  ;;  %v650_v37 = vld [vmem:[#allocation2 + $0x28] sm:$0x1]  ;;  %v745_v0 = vld [vmem:[#allocation4 + $0x28] sm:$0x80]  ;;  %v3291_v58 = vld [vmem:[#allocation15 + $0x200] sm:$0xff]  }
 0x144   : > { %2925 = vmatpush3.bf16.msra.mxu0 %v3258_v48  ;;  %2838 = vmatprep.subr.bf16.mxu1 %v3259_v2  ;;  %v651_v39 = vsel %vm4073_vm5, 0, %v650_v37  ;;  %v746_v44 = vsel %vm4112_vm10, 0, %v745_v0  ;;  %v3280_v48 = vld [vmem:[#allocation15 + $0x1d0] sm:$0xff]  }
 0x145   : > { %2934 = vmatprep.subr.bf16.mxu0 %v3260_v51  ;;  %652 = vst [vmem:[#allocation2 + $0x28] sm:$0x1] %v651_v39  ;;  %747 = vst [vmem:[#allocation4 + $0x28] sm:$0x80] %v746_v44 }
 0x146   : > { %2831 = vmatmul.mubr.bf16.vlgmr.msra.gmra.mrb[0].mxu1 %v4049_v24  ;;  %v3270_v24 = vld [vmem:[#allocation15 + $0x1a8] sm:$0xff]  }
 0x147   : > { %2927 = vmatmul.mubr.bf16.vlgmr.msra.gmra.mrb[0].mxu0 %v4149_v59  ;;  %2839 = vmatpush3.bf16.msra.mxu1 %v3259_v2 }
 0x148   : > { %2935 = vmatpush3.bf16.msra.mxu0 %v3260_v51  ;;  %2930 = vmatprep.mubr.bf16.mxu0 %v4158_v3  ;;  %v3284_v51 = vld [vmem:[#allocation15 + $0x1e0] sm:$0xff]  }
 0x149   : > { %2936 = vmatprep.subr.bf16.mxu0 %v3262_v60  ;;  %2840 = vmatprep.subr.bf16.mxu1 %v3261_v8 }
 0x14a   : > { %2834 = vmatprep.mubr.bf16.mxu1 %v4061_v30 }
 0x14b   : > { %2841 = vmatpush3.bf16.msra.mxu1 %v3261_v8 }
 0x14c   : > { %2937 = vmatpush3.bf16.msra.mxu0 %v3262_v60  ;;  %2842 = vmatprep.subr.bf16.mxu1 %v3263_v18  ;;  %v1685_v17 = vld [vmem:[#allocation2 + $0x28] sm:$0xff]  ;;  %v3292_v60 = vld [vmem:[#allocation15 + $0x208] sm:$0xff]  }
 0x14d   : > { %2938 = vmatprep.subr.bf16.mxu0 %v3264_v1 }
 0x14e   : > { %2835 = vmatmul.mubr.bf16.gmra.mrb[4].mxu1 %v4081_v52 }
 0x14f   : > { %2931 = vmatmul.mubr.bf16.gmra.mrb[4].mxu0 %v4161_v6  ;;  %2843 = vmatpush3.bf16.msra.mxu1 %v3263_v18 }
 0x150   : > { %2939 = vmatpush3.bf16.msra.mxu0 %v3264_v1  ;;  %2950 = vmatprep.mubr.bf16.mxu0 %v4119_v31 }
 0x151   : > { %2940 = vmatprep.subr.bf16.mxu0 %v3266_v9  ;;  %2844 = vmatprep.subr.bf16.mxu1 %v3265_v29 }
 0x152   : > { %2854 = vmatprep.mubr.bf16.mxu1 %v1047_v32 }
 0x153   : > { %2845 = vmatpush3.bf16.msra.mxu1 %v3265_v29 }
 0x154   : > { %2941 = vmatpush3.bf16.msra.mxu0 %v3266_v9  ;;  %2846 = vmatprep.subr.bf16.mxu1 %v3267_v27 }
 0x155   : > { %2942 = vmatprep.subr.bf16.mxu0 %v3268_v13 }
 0x157   : > { %2847 = vmatpush3.bf16.msra.mxu1 %v3267_v27 }
 0x158   : > { %2943 = vmatpush3.bf16.msra.mxu0 %v3268_v13  ;;  %2848 = vmatprep.subr.bf16.mxu1 %v3269_v40 }
 0x159   : > { %2944 = vmatprep.subr.bf16.mxu0 %v3270_v24 }
 0x15b   : > { %2849 = vmatpush3.bf16.msra.mxu1 %v3269_v40 }
 0x15c   : > { %2945 = vmatpush3.bf16.msra.mxu0 %v3270_v24  ;;  %2850 = vmatprep.subr.bf16.mxu1 %v3271_v42 }
 0x15d   : > { %2946 = vmatprep.subr.bf16.mxu0 %v3272_v34 }
 0x15f   : > { %2851 = vmatpush3.bf16.msra.mxu1 %v3271_v42 }
 0x160   : > { %2947 = vmatpush3.bf16.msra.mxu0 %v3272_v34  ;;  %2852 = vmatprep.subr.bf16.mxu1 %v3273_v43 }
 0x161   : > { %2948 = vmatprep.subr.bf16.mxu0 %v3274_v38 }
 0x163   : > { %2853 = vmatpush3.bf16.msra.mxu1 %v3273_v43 }
 0x164   : > { %2949 = vmatpush3.bf16.msra.mxu0 %v3274_v38  ;;  %2862 = vmatprep.subr.bf16.mxu1 %v3275_v49 }
 0x165   : > { %2958 = vmatprep.subr.bf16.mxu0 %v3276_v41 }
 0x166   : > { %2855 = vmatmul.mubr.bf16.vlgmr.msra.gmra.mrb[0].mxu1 %v4140_v47  ;;  %v3288_v47 = vld [vmem:[#allocation15 + $0x1f0] sm:$0xff]  }
 0x167   : > { %2951 = vmatmul.mubr.bf16.vlgmr.msra.gmra.mrb[0].mxu0 %v4138_v46  ;;  %2863 = vmatpush3.bf16.msra.mxu1 %v3275_v49 }
 0x168   : > { %2959 = vmatpush3.bf16.msra.mxu0 %v3276_v41  ;;  %2954 = vmatprep.mubr.bf16.mxu0 %v4184_v22 }
 0x169   : > { %2960 = vmatprep.subr.bf16.mxu0 %v3278_v45  ;;  %2864 = vmatprep.subr.bf16.mxu1 %v3277_v21 }
 0x16a   : > { %2858 = vmatprep.mubr.bf16.mxu1 %v4149_v59 }
 0x16b   : > { %2865 = vmatpush3.bf16.msra.mxu1 %v3277_v21 }
 0x16c   : > { %2961 = vmatpush3.bf16.msra.mxu0 %v3278_v45  ;;  %2866 = vmatprep.subr.bf16.mxu1 %v3279_v53 }
 0x16d   : > { %2962 = vmatprep.subr.bf16.mxu0 %v3280_v48 }
 0x16e   : > { %2859 = vmatmul.mubr.bf16.gmra.mrb[4].mxu1 %v4158_v3 }
 0x16f   : > { %2955 = vmatmul.mubr.bf16.gmra.mrb[4].mxu0 %v1685_v17  ;;  %2867 = vmatpush3.bf16.msra.mxu1 %v3279_v53 }
 0x170   : > { %2963 = vmatpush3.bf16.msra.mxu0 %v3280_v48  ;;  %2974 = vmatprep.mubr.bf16.mxu0 %v4061_v30  ;;  %v3290_v30 = vld [vmem:[#allocation15 + $0x1f8] sm:$0xff]  }
 0x171   : > { %2964 = vmatprep.subr.bf16.mxu0 %v3282_v50  ;;  %2868 = vmatprep.subr.bf16.mxu1 %v3281_v55 }
 0x172   : > { %2878 = vmatprep.mubr.bf16.mxu1 %v4107_v14  ;;  %v3293_v14 = vld [vmem:[#allocation15 + $0x210] sm:$0xff]  }
 0x173   : > { %2869 = vmatpush3.bf16.msra.mxu1 %v3281_v55 }
 0x174   : > { %2965 = vmatpush3.bf16.msra.mxu0 %v3282_v50  ;;  %2870 = vmatprep.subr.bf16.mxu1 %v3283_v56 }
 0x175   : > { %2966 = vmatprep.subr.bf16.mxu0 %v3284_v51 }
 0x177   : > { %2871 = vmatpush3.bf16.msra.mxu1 %v3283_v56 }
 0x178   : > { %2967 = vmatpush3.bf16.msra.mxu0 %v3284_v51  ;;  %2872 = vmatprep.subr.bf16.mxu1 %v3285_v57 }
 0x179   : > { %2968 = vmatprep.subr.bf16.mxu0 %v3286_v54 }
 0x17b   : > { %2873 = vmatpush3.bf16.msra.mxu1 %v3285_v57 }
 0x17c   : > { %2969 = vmatpush3.bf16.msra.mxu0 %v3286_v54  ;;  %2874 = vmatprep.subr.bf16.mxu1 %v3287_v20 }
 0x17d   : > { %2970 = vmatprep.subr.bf16.mxu0 %v3288_v47 }
 0x17f   : > { %2875 = vmatpush3.bf16.msra.mxu1 %v3287_v20 }
 0x180   : > { %2971 = vmatpush3.bf16.msra.mxu0 %v3288_v47  ;;  %2876 = vmatprep.subr.bf16.mxu1 %v3289_v61 }
 0x181   : > { %2972 = vmatprep.subr.bf16.mxu0 %v3290_v30 }
 0x183   : > { %2877 = vmatpush3.bf16.msra.mxu1 %v3289_v61 }
 0x184   : > { %2973 = vmatpush3.bf16.msra.mxu0 %v3290_v30  ;;  %3006 = vmatprep.subr.bf16.mxu1 %v3291_v58 }
 0x185   : > { %2982 = vmatprep.subr.bf16.mxu0 %v3291_v58 }
 0x186   : > { %2879 = vmatmul.mubr.bf16.vlgmr.msra.gmra.mrb[0].mxu1 %v4119_v31  ;;  %v3297_v31 = vld [vmem:[#allocation15 + $0x230] sm:$0xff]  }
 0x187   : > { %2975 = vmatmul.mubr.bf16.vlgmr.msra.gmra.mrb[0].mxu0 %v4081_v52  ;;  %3014 = vmatpush3.bf16.msra.mxu1 %v3291_v58  ;;  %v3295_v52 = vld [vmem:[#allocation15 + $0x220] sm:$0xff]  }
 0x188   : > { %2983 = vmatpush3.bf16.msra.mxu0 %v3291_v58  ;;  %2978 = vmatprep.mubr.bf16.mxu0 %v4098_v5  ;;  %v3296_v5 = vld [vmem:[#allocation15 + $0x228] sm:$0xff]  }
 0x189   : > { %2984 = vmatprep.subr.bf16.mxu0 %v3292_v60  ;;  %2882 = vmatprep.mubr.bf16.mxu1 %v4138_v46  ;;  %v3298_v46 = vld [vmem:[#allocation15 + $0x238] sm:$0xff]  }
 0x18a   : > { %3007 = vmatprep.subr.bf16.mxu1 %v3292_v60 }
 0x18b   : > { %3015 = vmatpush3.bf16.msra.mxu1 %v3292_v60 }
 0x18c   : > { %2985 = vmatpush3.bf16.msra.mxu0 %v3292_v60  ;;  %3008 = vmatprep.subr.bf16.mxu1 %v3293_v14 }
 0x18d   : > { %2986 = vmatprep.subr.bf16.mxu0 %v3293_v14 }
 0x18e   : > { %2883 = vmatmul.mubr.bf16.gmra.mrb[4].mxu1 %v4184_v22 }
 0x18f   : > { %2979 = vmatmul.mubr.bf16.gmra.mrb[4].mxu0 %v4165_v10  ;;  %3016 = vmatpush3.bf16.msra.mxu1 %v3293_v14 }
 0x190   : > { %2987 = vmatpush3.bf16.msra.mxu0 %v3293_v14  ;;  %2998 = vmatprep.mubr.bf16.mxu0 %v4149_v59  ;;  %v2003_v59 = vld [vmem:[#allocation4 + $0x28] sm:$0xff] }
 0x191   : > { %2988 = vmatprep.subr.bf16.mxu0 %v3294_v62  ;;  %3009 = vmatprep.subr.bf16.mxu1 %v3294_v62 }
 0x192   : > { %3002 = vmatprep.mubr.bf16.mxu1 %v4161_v6 }
 0x193   : > { %3017 = vmatpush3.bf16.msra.mxu1 %v3294_v62 }
 0x194   : > { %2989 = vmatpush3.bf16.msra.mxu0 %v3294_v62  ;;  %3010 = vmatprep.subr.bf16.mxu1 %v3295_v52 }
 0x195   : > { %2990 = vmatprep.subr.bf16.mxu0 %v3295_v52 }
 0x197   : > { %3018 = vmatpush3.bf16.msra.mxu1 %v3295_v52 }
 0x198   : > { %2991 = vmatpush3.bf16.msra.mxu0 %v3295_v52  ;;  %3011 = vmatprep.subr.bf16.mxu1 %v3296_v5 }
 0x199   : > { %2992 = vmatprep.subr.bf16.mxu0 %v3296_v5 }
 0x19b   : > { %3019 = vmatpush3.bf16.msra.mxu1 %v3296_v5 }
 0x19c   : > { %2993 = vmatpush3.bf16.msra.mxu0 %v3296_v5  ;;  %3012 = vmatprep.subr.bf16.mxu1 %v3297_v31 }
 0x19d   : > { %2994 = vmatprep.subr.bf16.mxu0 %v3297_v31 }
 0x19f   : > { %3020 = vmatpush3.bf16.msra.mxu1 %v3297_v31 }
 0x1a0   : > { %2995 = vmatpush3.bf16.msra.mxu0 %v3297_v31  ;;  %3013 = vmatprep.subr.bf16.mxu1 %v3298_v46 }
 0x1a1   : > { %2996 = vmatprep.subr.bf16.mxu0 %v3298_v46 }
 0x1a3   : > { %3021 = vmatpush3.bf16.msra.mxu1 %v3298_v46 }
 0x1a4   : > { %2997 = vmatpush3.bf16.msra.mxu0 %v3298_v46 }
 0x1a6   : > { %3003 = vmatmul.mubr.bf16.vlgmr.msra.gmra.mrb[8].mxu1 %v2003_v59 }
 0x1a7   : > { %2999 = vmatmul.mubr.bf16.vlgmr.msra.gmra.mrb[0].mxu0 %v4158_v3 }
 0x259   : > { %v2880_v1 = vpop.f32.mrb[0].mxu1 }
 0x25a   : > { %v1309_v4 = vpop.f32.mrb[1].mxu1 }
 0x25b   : > { %v2881_v7 = vpop.f32.mrb[2].mxu1 }
 0x25c   : > { %v1312_v9 = vpop.f32.mrb[3].mxu1 }
 0x261   : > { %v2884_v10 = vpop.f32.mrb[4].mxu1 }
 0x262   : > { %v2980_v63 = vpop.f32.mrb[4].mxu0  ;;  %v1325_v12 = vpop.f32.mrb[5].mxu1 }
 0x263   : > { %v1960_v2 = vpop.f32.mrb[5].mxu0  ;;  %v3026_v11 = vadd.f32 %v2980_v63, %v2884_v10  ;;  %v2885_v15 = vpop.f32.mrb[6].mxu1 }
 0x264   : > { %v2981_v6 = vpop.f32.mrb[6].mxu0  ;;  %v3028_v13 = vadd.f32 %v1960_v2, %v1325_v12  ;;  %v1328_v3 = vpop.f32.mrb[7].mxu1 }
 0x265   : > { %v1963_v8 = vpop.f32.mrb[7].mxu0  ;;  %v3030_v16 = vadd.f32 %v2981_v6, %v2885_v15 }
 0x266   : > { %v3032_v18 = vadd.f32 %v1963_v8, %v1328_v3 }
 0x279   : > { %v3004_v40 = vpop.f32.mrb[8].mxu1 }
 0x27a   : > { %v3000_v19 = vpop.f32.mrb[0].mxu0  ;;  %v3027_v41 = vadd.f32 %v3026_v11, %v3004_v40  ;;  %v2119_v42 = vpop.f32.mrb[9].mxu1 }
 0x27b   : > { %v3022_v23 = vadd.f32 %v3000_v19, %v2880_v1  ;;  %v2103_v25 = vpop.f32.mrb[1].mxu0  ;;  %v3029_v22 = vadd.f32 %v3028_v13, %v2119_v42  ;;  %v3005_v43 = vpop.f32.mrb[10].mxu1 }
 0x27c   : > { %v3023_v26 = vadd.f32 %v2103_v25, %v1309_v4  ;;  %v3001_v24 = vpop.f32.mrb[2].mxu0  ;;  %v3031_v48 = vadd.f32 %v3030_v16, %v3005_v43  ;;  %v2122_v49 = vpop.f32.mrb[11].mxu1  ;;  %v2226_v30 = vmul.f32 %v3027_v41, %v3027_v41 }
 0x27d   : > { %v3024_v28 = vadd.f32 %v3001_v24, %v2881_v7  ;;  %v2106_v29 = vpop.f32.mrb[3].mxu0  ;;  %v2222_v37 = vmul.f32 %v3022_v23, %v3022_v23  ;;  %v2224_v50 = vmul.f32 %v3029_v22, %v3029_v22  ;;  %v3033_v21 = vadd.f32 %v3032_v18, %v2122_v49 }
 0x27e   : > { %v3025_v32 = vadd.f32 %v2106_v29, %v1312_v9  ;;  %v2220_v34 = vmul.f32 %v3023_v26, %v3023_v26  ;;  %v2677_v53 = vpack.c.bf16 %v3031_v48, %v3027_v41 }
 0x27f   : > { %v2667_v33 = vpack.c.bf16 %v3024_v28, %v3022_v23  ;;  %v2223_v0 = vmul.f32 %v3024_v28, %v3024_v28  ;;  %v2672_v54 = vpack.c.bf16 %v3033_v21, %v3029_v22  ;;  %v2225_v47 = vmul.f32 %v3033_v21, %v3033_v21 }
 0x280   : > { %v2662_v27 = vpack.c.bf16 %v3025_v32, %v3023_v26  ;;  %v2206_v35 = vadd.f32 %v3025_v32, %v3023_v26  ;;  %v2221_v36 = vmul.f32 %v3025_v32, %v3025_v32  ;;  %2681 = vst [vmem:[%s4039_s21 + $0x18] sm:$0xff] %v2677_v53  }
 0x281   : > { %2679 = vst [vmem:[%s4039_s21 + $0x8] sm:$0xff] %v2667_v33   ;;  %2680 = vst [vmem:[%s4039_s21 + $0x10] sm:$0xff] %v2672_v54  }
 0x282   : > { %2663 = vst [vmem:[%s4039_s21] sm:$0xff] %v2662_v27   ;;  %v2207_v38 = vadd.f32 %v3022_v23, %v2206_v35  ;;  %v2228_v39 = vadd.f32 %v2221_v36, %v2220_v34 }
 0x284   : > { %v2229_v44 = vadd.f32 %v2228_v39, %v2222_v37  ;;  %v2208_v45 = vadd.f32 %v3024_v28, %v2207_v38 }
 0x286   : > { %v2230_v17 = vadd.f32 %v2229_v44, %v2223_v0  ;;  %v2209_v51 = vadd.f32 %v3029_v22, %v2208_v45 }
 0x288   : > { %v2210_v55 = vadd.f32 %v3033_v21, %v2209_v51  ;;  %v2231_v56 = vadd.f32 %v2230_v17, %v2224_v50 }
 0x28a   : > { %v2211_v57 = vadd.f32 %v3027_v41, %v2210_v55  ;;  %v2232_v58 = vadd.f32 %v2231_v56, %v2225_v47 }
 0x28b   : > { %3486 = shalt.err (!%p3483_p7)
}
 0x28c   : > { %s3487_s30 = scalar_lea.hbm %s4212_s28, 512  ;;  %s3491_s23 = scalar_lea.hbm %s4443_s8, 4096 }
 0x28d   : > { %p3488_p10 = scmp.ne.s32.totalorder %s4212_s28, %s3487_s30  ;;  %p3492_p11 = scmp.lt.u32.totalorder %s4212_s28, %s4443_s8 }
 0x28e   : > { %p3493_p13 = scmp.lt.u32.totalorder %s3491_s23, %s3487_s30  ;;  %p3495_p0 = scmp.lt.u32.totalorder %s3487_s30, %s4212_s28 }
 0x28f   : > { %p3489_p1 = pnand %p3488_p10, %p4444_p3 }
 0x290   : > { %p3494_p2 = por %p3493_p13, %p3492_p11 }
 0x291   : > { %p3490_p6 = pneg %p3489_p1 }
 0x292   : > { %p3496_p5 = por %p3495_p0, %p3494_p2 }
 0x294   : > { %p3497_p9 = pnand %p3496_p5, %p3490_p6 }
 0x296   : > { %3500 = shalt.err (!%p3497_p9)
}
 0x297   : > { %s3656_s7 = smov 64   ;;  %s3657_s18 = smov 4   ;;  %v2227_v20 = vmul.f32 %v3031_v48, %v3031_v48  ;;  %v2212_v60 = vadd.f32 %v3031_v48, %v2211_v57  ;;  %v2233_v61 = vadd.f32 %v2232_v58, %v2226_v30 }
 0x298   : > { %3104 = dma.vmem_to_hbm [thread:$0]  (%p4444_p3), %s4207_s19, 512, %s4212_s28, %s2243_s29, %s3656_s7, %s3656_s7, %s3657_s18  }
 0x299   : > { %v2234_v14 = vadd.f32 %v2233_v61, %v2227_v20  ;;  %v2213_v62 = vrot.slane %v2212_v60, 4  ;;  %s2643_s27 = sshll.u32 %s4441_s13, 2  ;;  %s2285_s19 = sshll.u32 %s481_s17, 4  ;;  %s4251_s19 = int_to_ptr.vmem [resolvable:$true] %s2285_s19 }
 0x29a   : > { %s2281_s24 = sadd.s32 %s4440_s12, %s2643_s27  ;;  %s2300_s28 = sshll.u32 %s487_s16, 4  ;;  %s4260_s28 = int_to_ptr.vmem [resolvable:$true] %s2300_s28 }
 0x29b   : > { %v2214_v52 = vadd.f32 %v2213_v62, %v2212_v60  ;;  %v2235_v5 = vrot.slane %v2234_v14, 4  ;;  %s2644_s3 = sshll.u32 %s2281_s24, 4  ;;  %s4446_s14 = sld [smem:[#allocation43_spill]] }
 0x29c   : > { %s4447_s21 = sld [smem:[#allocation44_spill]]  ;;  %s4264_s23 = scalar_lea.sflag [#allocation19], %s412_s20 }
 0x29d   : > { %v2215_v31 = vrot.slane %v2214_v52, 2  ;;  %v2236_v46 = vadd.f32 %v2235_v5, %v2234_v14  ;;  %s3501_s9 = scalar_lea.vmem %s4251_s19, 16  ;;  %s3658_s25 = smov [#allocation18]  }
 0x29e   : > { %p3502_p8 = scmp.ne.s32.totalorder %s4251_s19, %s3501_s9  ;;  %s3505_s7 = sshll.u32 %s3658_s25, 4  ;;  %s3506_s7 = int_to_ptr.vmem [resolvable:$false] %s3505_s7 }
 0x29f   : > { %v2216_v59 = vadd.f32 %v2215_v31, %v2214_v52  ;;  %v2237_v63 = vrot.slane %v2236_v46, 2  ;;  %p3508_p7 = scmp.lt.s32.totalorder %s4251_s19, %s3506_s7 }
 0x2a0   : > { %p3503_p12 = pnand %p3502_p8, %p4444_p3 }
 0x2a1   : > { %v2217_v1 = vrot.slane %v2216_v59, 1  ;;  %v2238_v2 = vadd.f32 %v2237_v63, %v2236_v46  ;;  %s4249_s15 = scalar_lea.hbm %s4446_s14, %s2644_s3 }
 0x2a2   : > { %s4258_s26 = scalar_lea.hbm %s4447_s21, %s2644_s3  ;;  %p3504_p4 = pneg %p3503_p12 }
 0x2a3   : > { %v2218_v4 = vadd.f32 %v2217_v1, %v2216_v59  ;;  %v2239_v6 = vrot.slane %v2238_v2, 1 }
 0x2a5   : > { %2219 = vst [vmem:[%s481_s17] sm:$0x1] %v2218_v4  ;;  %v2240_v7 = vadd.f32 %v2239_v6, %v2238_v2  ;;  %s3507_s17 = scalar_lea.vmem %s3506_s7, 32 }
 0x2a6   : > { %p3509_p10 = scmp.lt.s32.totalorder %s3507_s17, %s3501_s9 }
 0x2a8   : > { %p3510_p1 = por %p3509_p10, %p3508_p7 }
 0x2aa   : > { %p3511_p6 = pnand %p3510_p1, %p3504_p4 }
 0x2ac   : > { %3514 = shalt.err (!%p3511_p6)
}
 0x2ad   : > { %s3515_s20 = scalar_lea.hbm %s4249_s15, 16  ;;  %s3519_s24 = scalar_lea.hbm %s4446_s14, 128 }
 0x2ae   : > { %p3516_p11 = scmp.ne.s32.totalorder %s4249_s15, %s3515_s20  ;;  %p3520_p0 = scmp.lt.u32.totalorder %s4249_s15, %s4446_s14 }
 0x2af   : > { %p3521_p5 = scmp.lt.u32.totalorder %s3519_s24, %s3515_s20  ;;  %p3523_p8 = scmp.lt.u32.totalorder %s3515_s20, %s4249_s15 }
 0x2b0   : > { %p3517_p13 = pnand %p3516_p11, %p4444_p3 }
 0x2b1   : > { %p3522_p9 = por %p3521_p5, %p3520_p0 }
 0x2b2   : > { %p3518_p2 = pneg %p3517_p13 }
 0x2b3   : > { %p3524_p12 = por %p3523_p8, %p3522_p9 }
 0x2b5   : > { %p3525_p4 = pnand %p3524_p12, %p3518_p2 }
 0x2b7   : > { %3528 = shalt.err (!%p3525_p4)
}
 0x2b8   : > { %3105 = dma.vmem_to_hbm [thread:$0]  (%p4444_p3), %s4251_s19, 16, %s4249_s15, %s4264_s23   ;;  %2241 = vst [vmem:[%s487_s16] sm:$0x1] %v2240_v7 }
 0x2b9   : > { %s3529_s29 = scalar_lea.vmem %s4260_s28, 16  ;;  %s3659_s13 = smov [#allocation20]  }
 0x2ba   : > { %p3530_p7 = scmp.ne.s32.totalorder %s4260_s28, %s3529_s29  ;;  %s3533_s12 = sshll.u32 %s3659_s13, 4  ;;  %s3534_s12 = int_to_ptr.vmem [resolvable:$false] %s3533_s12 }
 0x2bb   : > { %s3535_s30 = scalar_lea.vmem %s3534_s12, 32  ;;  %p3536_p6 = scmp.lt.s32.totalorder %s4260_s28, %s3534_s12 }
 0x2bc   : > { %p3531_p10 = pnand %p3530_p7, %p4444_p3  ;;  %p3537_p11 = scmp.lt.s32.totalorder %s3535_s30, %s3529_s29 }
 0x2be   : > { %p3532_p1 = pneg %p3531_p10  ;;  %p3538_p13 = por %p3537_p11, %p3536_p6 }
 0x2c0   : > { %p3539_p2 = pnand %p3538_p13, %p3532_p1 }
 0x2c2   : > { %3542 = shalt.err (!%p3539_p2)
}
 0x2c3   : > { %s3543_s1 = scalar_lea.hbm %s4258_s26, 16  ;;  %s3547_s15 = scalar_lea.hbm %s4447_s21, 128 }
 0x2c4   : > { %p3544_p0 = scmp.ne.s32.totalorder %s4258_s26, %s3543_s1  ;;  %p3548_p8 = scmp.lt.u32.totalorder %s4258_s26, %s4447_s21 }
 0x2c5   : > { %p3549_p12 = scmp.lt.u32.totalorder %s3547_s15, %s3543_s1  ;;  %p3551_p7 = scmp.lt.u32.totalorder %s3543_s1, %s4258_s26 }
 0x2c6   : > { %p3545_p5 = pnand %p3544_p0, %p4444_p3 }
 0x2c7   : > { %p3550_p4 = por %p3549_p12, %p3548_p8 }
 0x2c8   : > { %p3546_p9 = pneg %p3545_p5 }
 0x2c9   : > { %p3552_p10 = por %p3551_p7, %p3550_p4 }
 0x2cb   : > { %p3553_p1 = pnand %p3552_p10, %p3546_p9 }
 0x2cd   : > { %3556 = shalt.err (!%p3553_p1)
}
 0x2ce   : > { %3106 = dma.vmem_to_hbm [thread:$0]  (%p4444_p3), %s4260_s28, 16, %s4258_s26, %s4264_s23  }
 0x2cf PF: > { %s4448_s7 = sld [smem:[#allocation32_spill]]  ;;  %s4449_s17 = sld [smem:[#allocation27_spill]] }
 0x2d0   : > { %s4450_s20 = sld [smem:[#allocation36_spill]] }
 0x2d5   : > { %p3147_p6 = scmp.ge.s32.totalorder %s4448_s7, 2  ;;  %s2312_s18 = sand.u32 1, %s4449_s17  }
 0x2d6   : > { %p4451_p11 = scmp.ne.s32.totalorder %s4450_s20, 0  ;;  %s2313_s27 = scalar_lea.sflag [#allocation8], %s2312_s18 }
 0x2d8   : > { %p3131_p13 = pnand %p3147_p6, %p4451_p11 }
 0x2da   : > { %3606 = dma.done.wait (!%p3131_p13), %s2313_s27, 512  }
 0x2db   : > { %3608 = vsyncadd (!%p3131_p13), %s2313_s27, 4294966784  ;;  %s4452_s24 = sadd.s32 4294967294, %s4448_s7  }
 0x2dc   : > { %s2321_s22 = sand.u32 1, %s4452_s24  }
 0x2dd   : > { %s2322_s3 = scalar_lea.sflag [#allocation19], %s2321_s22 }
 0x2de   : > { %3610 = dma.done.wait (!%p3131_p13), %s2322_s3, 32  }
 0x2df   : > { %3612 = vsyncadd (!%p3131_p13), %s2322_s3, 4294967264  ;;  %s33_s12 = sadd.s32 1, %s4448_s7   ;;  %s4453_s27 = sld [smem:[#allocation28_spill]] }
 0x2e0   : > { %p30_p3 = scmp.ge.s32.totalorder %s33_s12, 10   ;;  %s4454_s28 = sld [smem:[#allocation29_spill]] }
 0x2e1   : > { %s4455_s29 = sld [smem:[#allocation39_spill]]  ;;  %s4456_s6 = sld [smem:[#allocation37_spill]] }
 0x2e2   : > { %s4457_s26 = sld [smem:[#allocation38_spill]]  ;;  %s4458_s30 = smov %s3635_s10 }
 0x2e3   : > { %s4459_s9 = smov %s3639_s11  ;;  %32 = sbr.rel (!%p30_p3) target bundleno = 19 (0x13), region = 180 }
 0x2e7   : > { %s4460_s10 = smov %s4456_s6 }
 0x2e8   : > { %s4461_s11 = smov %s4457_s26 }
 0x2ea   :  { %2334 = vsyncpa [#allocation7], 1 }
 0x2eb   :  { %2336 = vsyncpa [#allocation7 + $0x1], 1 }
 0x2ec   :  { %2337 = vsyncpa [#allocation10], 1 }
 0x2ed   :  { %2339 = vsyncpa [#allocation10 + $0x1], 1 }
 0x2ee   :  { %2340 = vsyncpa [#allocation13], 1 }
 0x2ef   :  { %2341 = vsyncpa [#allocation16], 1 }
 0x2f0   :  { %2342 = vsyncpa [#allocation8], 1 }
 0x2f1   :  { %2344 = vsyncpa [#allocation8 + $0x1], 1 }
 0x2f2   :  { %2345 = vsyncpa [#allocation19], 1 }
 0x2f3   :  { %2347 = vsyncpa [#allocation19 + $0x1], 1 }

// kernel: double_conv.4
= control target key start
LH: loop header
LB: loop body
LE: loop exit
PB: predicated region body
PF: predicated region fallthrough
CT: control target
= control target key end

     0   :  { %s4433_s0 = inlined_call_operand.hbm [shape: bf16[2,16,16,128], index: 0, kind: input, shape index: {}]   ;;  %s4434_s1 = inlined_call_operand.hbm [shape: bf16[2,4,16,128], index: 1, kind: input, shape index: {}]   ;;  %s4435_s2 = inlined_call_operand.hbm [shape: bf16[2,4,16,128], index: 2, kind: input, shape index: {}]   ;;  %s4436_s3 = inlined_call_operand.hbm [shape: f32[1,128], index: 3, kind: input, shape index: {}]   ;;  %s4437_s4 = inlined_call_operand.hbm [shape: f32[1,128], index: 4, kind: input, shape index: {}]   ;;  %s4438_s5 = inlined_call_operand.hbm [shape: bf16[9,128,128], index: 5, kind: input, shape index: {}]   ;;  %s4439_s6 = inlined_call_operand.hbm [shape: bf16[2,16,16,128], index: 6, kind: output, shape index: {0}]   ;;  %s4440_s7 = inlined_call_operand.hbm [shape: f32[2,4,1,128], index: 7, kind: output, shape index: {1}]   ;;  %s4441_s8 = inlined_call_operand.hbm [shape: f32[2,4,1,128], index: 8, kind: output, shape index: {2}]  }
   0x1   :  { %4475 = sst [smem:[#allocation40_spill]] %s4434_s1 }
   0x2   :  { %4476 = sst [smem:[#allocation41_spill]] %s4436_s3 }
   0x3   :  { %4477 = sst [smem:[#allocation42_spill]] %s4439_s6 }
   0x4   :  { %4478 = sst [smem:[#allocation43_spill]] %s4440_s7 }
   0x5   :  { %4479 = sst [smem:[#allocation44_spill]] %s4441_s8 }
   0x6   :  { %14 = vsyncpa [#allocation7], 0 }
   0x7   :  { %16 = vsyncpa [#allocation7 + $0x1], 0 }
   0x8   :  { %17 = vsyncpa [#allocation10], 0 }
   0x9   :  { %19 = vsyncpa [#allocation10 + $0x1], 0 }
   0xa   :  { %20 = vsyncpa [#allocation13], 0 }
   0xb   :  { %21 = vsyncpa [#allocation16], 0 }
   0xc   :  { %22 = vsyncpa [#allocation8], 0 }
   0xd   :  { %24 = vsyncpa [#allocation8 + $0x1], 0 }
   0xe   :  { %25 = vsyncpa [#allocation19], 0 }
   0xf   :  { %27 = vsyncpa [#allocation19 + $0x1], 0  ;;  %s3786_s27 = smov 0   ;;  %s3788_s28 = smov 0  }
  0x10   :  { %s3790_s29 = smov 0   ;;  %s3792_s30 = smov 0  }
  0x11   :  { %s3794_s9 = smov 0   ;;  %s3796_s10 = smov 0  }
  0x12   :  { %s3798_s11 = smov 0   ;;  %s3800_s12 = smov 0  }
  0x13 LB: > { %4480 = sst [smem:[#allocation27_spill]] %s3696_s27  ;;  %s3827_s13 = sadd.s32 4294967295, %s3724_s12   ;;  %s3724_s12 = sphi %s3800_s12, %s33_s12   ;;  %s3720_s11 = sphi %s3798_s11, %s4553_s11   ;;  %s3716_s10 = sphi %s3796_s10, %s4552_s10   ;;  %s3712_s9 = sphi %s3794_s9, %s4551_s9   ;;  %s3708_s30 = sphi %s3792_s30, %s4550_s30   ;;  %s3704_s29 = sphi %s3790_s29, %s4547_s29   ;;  %s3700_s28 = sphi %s3788_s28, %s4546_s28   ;;  %s3696_s27 = sphi %s3786_s27, %s4545_s27  }
  0x14   : > { %4481 = sst [smem:[#allocation28_spill]] %s3700_s28  ;;  %s4442_s14 = sadd.s32 4294967294, %s3724_s12  }
  0x15   : > { %4482 = sst [smem:[#allocation29_spill]] %s3704_s29  ;;  %p61_p0 = scmp.ne.s32.totalorder %s3704_s29, %s3700_s28 }
  0x16   : > { %4483 = sst [smem:[#allocation30_spill]] %s3708_s30  ;;  %p62_p1 = scmp.eq.s32.totalorder %s3724_s12, 0 }
  0x17   : > { %4484 = sst [smem:[#allocation31_spill]] %s3712_s9  ;;  %p67_p2 = scmp.ne.s32.totalorder %s3700_s28, %s3696_s27 }
  0x18   : > { %4485 = sst [smem:[#allocation32_spill]] %s3724_s12  ;;  %p4448_p3 = scmp.eq.s32.totalorder %s3827_s13, 0 }
  0x19   : > { %4486 = sst [smem:[#allocation33_spill]] %s3827_s13  ;;  %p212_p4 = scmp.eq.s32.totalorder %s3827_s13, 7 }
  0x1a   : > { %p3838_p5 = por %p62_p1, %p61_p0  ;;  %p218_p6 = scmp.eq.s32.totalorder %s4442_s14, 7 }
  0x1b   : > { %p3846_p7 = por %p4448_p3, %p67_p2  ;;  %p3850_p8 = por %p212_p4, %p61_p0 }
  0x1c   : > { %s4487_s16 = scalar_select %p3838_p5, 1, 0 }
  0x1d   : > { %s4488_s17 = scalar_select %p3846_p7, 1, 0 }
  0x1e   : > { %s4490_s18 = scalar_select %p3850_p8, 1, 0 }
  0x1f   : > { %4489 = sst [smem:[#allocation34_spill]] %s4488_s17  ;;  %p3854_p9 = por %p218_p6, %p67_p2 }
  0x20   : > { %4491 = sst [smem:[#allocation35_spill]] %s4490_s18  ;;  %p2584_p10 = scmp.ge.s32.totalorder %s3724_s12, 1 }
  0x21   : > { %s4492_s19 = scalar_select %p3854_p9, 1, 0 }
  0x22   : > { %p281_p11 = scmp.lt.s32.totalorder %s3724_s12, 9  ;;  %s3726_s21 = smov [#allocation12]  }
  0x23   : > { %4493 = sst [smem:[#allocation36_spill]] %s4492_s19  ;;  %s294_s22 = sshll.u32 %s3726_s21, 4  ;;  %s295_s22 = int_to_ptr.vmem [resolvable:$true] %s294_s22 }
  0x24   : > { %p3860_p12 = pnand %p2584_p10, %p281_p11  ;;  %s42_s24 = sadd.s32 1, %s3716_s10 }
  0x25   : > { %p3873_p1 = scmp.ge.s32.totalorder %s42_s24, 4  ;;  %s45_s26 = sadd.s32 1, %s3720_s11 }
  0x26   : > { %s4494_s20 = scalar_select %p3860_p12, 1, 0 }
  0x27   : > { %p3197_p13 = pneg %p3860_p12  ;;  %s4497_s3 = sld [smem:[#allocation41_spill]] }
  0x28   : > { %s4496_s25 = scalar_select %p3873_p1, 1, 0 }
  0x29   : > { %p3868_p0 = pnand %p3197_p13, %p4448_p3 }
  0x2b   : > { %s4495_s23 = scalar_select %p3868_p0, 1, 0 }
  0x2c   : > { %p3886_p4 = pneg %p3868_p0 }
  0x2d   : > { %s3380_s19 = scalar_lea.hbm %s4497_s3, 16 }
  0x2e   : > { %p3381_p2 = scmp.ne.s32.totalorder %s4497_s3, %s3380_s19  ;;  %p3387_p11 = scmp.lt.u32.totalorder %s3380_s19, %s4497_s3 }
  0x2f   : > { %s4498_s8 = scalar_select %p3886_p4, 1, 0 }
  0x30   : > { %p3383_p6 = pnand %p3886_p4, %p3381_p2 }
  0x32   : > { %p3384_p10 = pneg %p3383_p6 }
  0x34   : > { %p3389_p13 = pnand %p3387_p11, %p3384_p10 }
  0x36   : > { %3392 = shalt.err (!%p3389_p13)
}
  0x37   : > { %s3393_s14 = scalar_lea.vmem %s295_s22, 16  ;;  %s3400_s27 = scalar_lea.vmem %s295_s22, 32 }
  0x38   : > { %p3394_p3 = scmp.ne.s32.totalorder %s295_s22, %s3393_s14  ;;  %p3401_p7 = scmp.lt.s32.totalorder %s295_s22, %s295_s22 }
  0x39   : > { %p3402_p12 = scmp.lt.s32.totalorder %s3400_s27, %s3393_s14 }
  0x3a   : > { %p3396_p9 = pnand %p3394_p3, %p3886_p4 }
  0x3b   : > { %p3403_p5 = por %p3402_p12, %p3401_p7 }
  0x3c   : > { %p3397_p8 = pneg %p3396_p9 }
  0x3e   : > { %p3404_p1 = pnand %p3403_p5, %p3397_p8 }
  0x40   : > { %3407 = shalt.err (!%p3404_p1)
}
  0x41   : > { %3200 = dma.hbm_to_vmem [thread:$0]  (!%p3868_p0), %s4497_s3, 16, %s295_s22, [#allocation13]  }
  0x42   : > { %p4499_p3 = scmp.ne.s32.totalorder %s4496_s25, 0  ;;  %p3230_p7 = scmp.lt.s32.totalorder %s3724_s12, 8 }
  0x43   : > { %s3913_s7 = sand.u32 1, %s3704_s29   ;;  %s353_s19 = sand.u32 1, %s3724_s12  }
  0x44   : > { %s4555_s24 = smov (%p4499_p3, %s42_s24), 0  ;;  %s4557_s26 = smov (!%p4499_p3, %s45_s26), %s3720_s11 }
  0x45   : > { %4500 = sst [smem:[#allocation37_spill]] %s4555_s24  ;;  %s50_s6 = ssub.s32 %s3716_s10, %s4555_s24 }
  0x46   : > { %p47_p5 = scmp.ge.s32.totalorder %s4557_s26, 2  ;;  %p4502_p8 = scmp.ne.s32.totalorder %s4487_s16, 0 }
  0x47   : > { %s2594_s25 = sshll.u32 %s3913_s7, 3  ;;  %s2595_s15 = sshll.u32 %s3716_s10, 1 }
  0x48   : > { %s4559_s26 = smov (%p47_p5, %s4557_s26), 0  ;;  %p3920_p9 = pnand %p3230_p7, %p4502_p8 }
  0x49   : > { %4501 = sst [smem:[#allocation38_spill]] %s4559_s26  ;;  %s49_s14 = ssub.s32 %s3720_s11, %s4559_s26 }
  0x4a   : > { %s4503_s22 = scalar_select %p3920_p9, 1, 0 }
  0x4b   : > { %s51_s27 = sor.u32 %s50_s6, %s49_s14  ;;  %s2596_s21 = sshll.u32 %s3720_s11, 3 }
  0x4c   : > { %p52_p12 = scmp.eq.s32.totalorder %s51_s27, 0  ;;  %s4504_s3 = sadd.s32 1, %s3704_s29 }
  0x4d   : > { %s3934_s18 = sadd.s32 %s2596_s21, %s2595_s15  ;;  %s357_s16 = scalar_lea.vmem [#allocation9], %s2594_s25 }
  0x4e   : > { %s3932_s24 = scalar_select %p52_p12, %s3704_s29, %s4504_s3  }
  0x4f   : > { %s366_s12 = sshll.u32 %s357_s16, 4  ;;  %s2597_s9 = sshll.u32 %s3934_s18, 6  ;;  %s3939_s12 = int_to_ptr.vmem [resolvable:$true] %s366_s12 }
  0x50   : > { %4505 = sst [smem:[#allocation39_spill]] %s3932_s24  ;;  %s4506_s1 = sld [smem:[#allocation40_spill]] }
  0x51   : > { %s3948_s3 = scalar_lea.sflag [#allocation10], %s353_s19  ;;  %p3954_p2 = pneg %p3920_p9 }
  0x53   : > { %s4507_s27 = scalar_select %p3954_p2, 1, 0 }
  0x56   : > { %s3946_s6 = scalar_lea.hbm %s4506_s1, %s2597_s9  ;;  %s3413_s15 = scalar_lea.hbm %s4506_s1, 1024 }
  0x57   : > { %s3408_s14 = scalar_lea.hbm %s3946_s6, 128  ;;  %p3414_p11 = scmp.lt.u32.totalorder %s3946_s6, %s4506_s1 }
  0x58   : > { %p3409_p1 = scmp.ne.s32.totalorder %s3946_s6, %s3408_s14  ;;  %p3415_p13 = scmp.lt.u32.totalorder %s3413_s15, %s3408_s14 }
  0x59   : > { %p3417_p5 = scmp.lt.u32.totalorder %s3408_s14, %s3946_s6 }
  0x5a   : > { %p3411_p6 = pnand %p3954_p2, %p3409_p1  ;;  %p3416_p3 = por %p3415_p13, %p3414_p11 }
  0x5c   : > { %p3412_p10 = pneg %p3411_p6  ;;  %p3418_p7 = por %p3417_p5, %p3416_p3 }
  0x5e   : > { %p3419_p8 = pnand %p3418_p7, %p3412_p10 }
  0x60   : > { %3422 = shalt.err (!%p3419_p8)
}
  0x61   : > { %s3423_s19 = scalar_lea.vmem %s3939_s12, 128  ;;  %s3727_s30 = smov [#allocation9]  }
  0x62   : > { %p3424_p12 = scmp.ne.s32.totalorder %s3939_s12, %s3423_s19  ;;  %s3428_s26 = sshll.u32 %s3727_s30, 4  ;;  %s3429_s26 = int_to_ptr.vmem [resolvable:$false] %s3428_s26 }
  0x63   : > { %s3430_s21 = scalar_lea.vmem %s3429_s26, 256  ;;  %p3431_p0 = scmp.lt.s32.totalorder %s3939_s12, %s3429_s26 }
  0x64   : > { %p3426_p1 = pnand %p3424_p12, %p3954_p2  ;;  %p3432_p4 = scmp.lt.s32.totalorder %s3430_s21, %s3423_s19 }
  0x66   : > { %p3427_p6 = pneg %p3426_p1  ;;  %p3433_p11 = por %p3432_p4, %p3431_p0 }
  0x68   : > { %p3434_p13 = pnand %p3433_p11, %p3427_p6 }
  0x6a   : > { %3437 = shalt.err (!%p3434_p13)
}
  0x6b   : > { %s3728_s14 = smov 64   ;;  %s3729_s15 = smov 4  }
  0x6c   : > { %3213 = dma.hbm_to_vmem [thread:$0]  (!%p3920_p9), %s3946_s6, 128, %s3939_s12, %s3948_s3, %s3728_s14, %s3728_s14, %s3729_s15  }
  0x6d   : > { %s3986_s30 = scalar_lea.hbm %s4435_s2, %s2597_s9  ;;  %s380_s26 = scalar_lea.vmem [#allocation11], %s2594_s25 }
  0x6e   : > { %s389_s21 = sshll.u32 %s380_s26, 4  ;;  %s3730_s1 = smov [#allocation14]   ;;  %s3990_s21 = int_to_ptr.vmem [resolvable:$true] %s389_s21 }
  0x6f   : > { %s305_s24 = sshll.u32 %s3730_s1, 4  ;;  %s3731_s29 = smov [#allocation15]   ;;  %s306_s24 = int_to_ptr.vmem [resolvable:$true] %s305_s24 }
  0x70   : > { %s315_s13 = sshll.u32 %s3731_s29, 4  ;;  %s3438_s12 = scalar_lea.hbm %s4437_s4, 16  ;;  %s316_s13 = int_to_ptr.vmem [resolvable:$true] %s315_s13 }
  0x71   : > { %p3439_p0 = scmp.ne.s32.totalorder %s4437_s4, %s3438_s12  ;;  %p4508_p4 = scmp.ne.s32.totalorder %s4498_s8, 0 }
  0x72   : > { %p3445_p5 = scmp.lt.u32.totalorder %s3438_s12, %s4437_s4 }
  0x73   : > { %p3441_p10 = pnand %p3439_p0, %p4508_p4 }
  0x75   : > { %p3442_p3 = pneg %p3441_p10 }
  0x77   : > { %p3447_p7 = pnand %p3445_p5, %p3442_p3 }
  0x79   : > { %3450 = shalt.err (!%p3447_p7)
}
  0x7a   : > { %s3451_s1 = scalar_lea.vmem %s306_s24, 16  ;;  %s3458_s28 = scalar_lea.vmem %s306_s24, 32 }
  0x7b   : > { %p3452_p8 = scmp.ne.s32.totalorder %s306_s24, %s3451_s1  ;;  %p3459_p6 = scmp.lt.s32.totalorder %s306_s24, %s306_s24 }
  0x7c   : > { %p3460_p11 = scmp.lt.s32.totalorder %s3458_s28, %s3451_s1 }
  0x7d   : > { %p3454_p12 = pnand %p3452_p8, %p4508_p4 }
  0x7e   : > { %p3461_p13 = por %p3460_p11, %p3459_p6 }
  0x7f   : > { %p3455_p1 = pneg %p3454_p12 }
  0x81   : > { %p3462_p9 = pnand %p3461_p13, %p3455_p1 }
  0x83   : > { %3465 = shalt.err (!%p3462_p9)
}
  0x84   : > { %p4509_p0 = scmp.ne.s32.totalorder %s4495_s23, 0  ;;  %s3466_s26 = scalar_lea.hbm %s4438_s5, 9216 }
  0x85   : > { %p3467_p10 = scmp.ne.s32.totalorder %s4438_s5, %s3466_s26  ;;  %p3473_p9 = scmp.lt.u32.totalorder %s3466_s26, %s4438_s5 }
  0x86   : > { %3203 = dma.hbm_to_vmem [thread:$0]  (!%p4509_p0), %s4437_s4, 16, %s306_s24, [#allocation13]  }
  0x87   : > { %p3469_p3 = pnand %p3467_p10, %p4508_p4 }
  0x89   : > { %p3470_p5 = pneg %p3469_p3 }
  0x8b   : > { %p3475_p7 = pnand %p3473_p9, %p3470_p5 }
  0x8d   : > { %3478 = shalt.err (!%p3475_p7)
}
  0x8e   : > { %s3479_s25 = scalar_lea.vmem %s316_s13, 9216  ;;  %p3487_p6 = scmp.lt.s32.totalorder %s316_s13, %s316_s13 }
  0x8f   : > { %p3480_p8 = scmp.ne.s32.totalorder %s316_s13, %s3479_s25  ;;  %p3488_p11 = scmp.lt.s32.totalorder %s3479_s25, %s3479_s25 }
  0x91   : > { %p3482_p12 = pnand %p3480_p8, %p4508_p4  ;;  %p3489_p13 = por %p3488_p11, %p3487_p6 }
  0x93   : > { %p3483_p1 = pneg %p3482_p12 }
  0x95   : > { %p3490_p2 = pnand %p3489_p13, %p3483_p1 }
  0x97   : > { %3493 = shalt.err (!%p3490_p2)
}
  0x98   : > { %3206 = dma.hbm_to_vmem [thread:$0]  (!%p4509_p0), %s4438_s5, 9216, %s316_s13, [#allocation16], %s3728_s14, %s3728_s14, %s3729_s15  }
  0x99   : > { %s2589_s8 = sshll.u32 %s3913_s7, 5  ;;  %s2709_s28 = sshll.u32 %s3716_s10, 3 }
  0x9a   : > { %s2592_s29 = sshll.u32 %s3720_s11, 5  ;;  %s333_s16 = scalar_lea.vmem [#allocation6], %s2589_s8 }
  0x9b   : > { %s340_s17 = sadd.s32 %s2709_s28, %s2592_s29  ;;  %s343_s19 = sshll.u32 %s333_s16, 4  ;;  %s4034_s19 = int_to_ptr.vmem [resolvable:$true] %s343_s19 }
  0x9c   : > { %s2593_s26 = sshll.u32 %s340_s17, 6  ;;  %s330_s6 = scalar_lea.sflag [#allocation7], %s3913_s7 }
  0x9d   : > { %s4039_s18 = scalar_lea.hbm %s4433_s0, %s2593_s26  ;;  %p4510_p4 = scmp.ne.s32.totalorder %s4507_s27, 0 }
  0x9e   : > { %s3494_s13 = scalar_lea.hbm %s4039_s18, 512  ;;  %s3499_s24 = scalar_lea.hbm %s4433_s0, 4096 }
  0x9f   : > { %p3495_p2 = scmp.ne.s32.totalorder %s4039_s18, %s3494_s13  ;;  %p3500_p3 = scmp.lt.u32.totalorder %s4039_s18, %s4433_s0 }
  0xa0   : > { %p3501_p5 = scmp.lt.u32.totalorder %s3499_s24, %s3494_s13  ;;  %p3503_p7 = scmp.lt.u32.totalorder %s3494_s13, %s4039_s18 }
  0xa1   : > { %p3497_p0 = pnand %p3495_p2, %p4510_p4 }
  0xa2   : > { %p3502_p9 = por %p3501_p5, %p3500_p3 }
  0xa3   : > { %p3498_p10 = pneg %p3497_p0 }
  0xa4   : > { %p3504_p8 = por %p3503_p7, %p3502_p9 }
  0xa6   : > { %p3505_p12 = pnand %p3504_p8, %p3498_p10 }
  0xa8   : > { %3508 = shalt.err (!%p3505_p12)
}
  0xa9   : > { %s3509_s28 = scalar_lea.vmem %s4034_s19, 512  ;;  %s3732_s29 = smov [#allocation6]  }
  0xaa   : > { %p3510_p1 = scmp.ne.s32.totalorder %s4034_s19, %s3509_s28  ;;  %s3514_s17 = sshll.u32 %s3732_s29, 4  ;;  %s3515_s17 = int_to_ptr.vmem [resolvable:$false] %s3514_s17 }
  0xab   : > { %s3516_s16 = scalar_lea.vmem %s3515_s17, 1024  ;;  %p3517_p13 = scmp.lt.s32.totalorder %s4034_s19, %s3515_s17 }
  0xac   : > { %p3512_p6 = pnand %p3510_p1, %p4510_p4  ;;  %p3518_p2 = scmp.lt.s32.totalorder %s3516_s16, %s3509_s28 }
  0xae   : > { %p3513_p11 = pneg %p3512_p6  ;;  %p3519_p0 = por %p3518_p2, %p3517_p13 }
  0xb0   : > { %p3520_p3 = pnand %p3519_p0, %p3513_p11 }
  0xb2   : > { %3523 = shalt.err (!%p3520_p3)
}
  0xb3   : > { %p4511_p10 = scmp.ne.s32.totalorder %s4503_s22, 0  ;;  %s3524_s26 = scalar_lea.hbm %s3986_s30, 128 }
  0xb4   : > { %p3525_p5 = scmp.ne.s32.totalorder %s3986_s30, %s3524_s26  ;;  %s3529_s13 = scalar_lea.hbm %s4435_s2, 1024 }
  0xb5   : > { %3210 = dma.hbm_to_vmem [thread:$0]  (!%p4511_p10), %s4039_s18, 512, %s4034_s19, %s330_s6, %s3728_s14, %s3728_s14, %s3729_s15  }
  0xb6   : > { %p3527_p9 = pnand %p3525_p5, %p4510_p4  ;;  %p3530_p8 = scmp.lt.u32.totalorder %s3986_s30, %s4435_s2 }
  0xb7   : > { %p3531_p12 = scmp.lt.u32.totalorder %s3529_s13, %s3524_s26  ;;  %p3533_p6 = scmp.lt.u32.totalorder %s3524_s26, %s3986_s30 }
  0xb8   : > { %p3528_p7 = pneg %p3527_p9 }
  0xb9   : > { %p3532_p1 = por %p3531_p12, %p3530_p8 }
  0xbb   : > { %p3534_p11 = por %p3533_p6, %p3532_p1 }
  0xbd   : > { %p3535_p13 = pnand %p3534_p11, %p3528_p7 }
  0xbf   : > { %3538 = shalt.err (!%p3535_p13)
}
  0xc0   : > { %s3539_s7 = scalar_lea.vmem %s3990_s21, 128  ;;  %s3733_s19 = smov [#allocation11]  }
  0xc1   : > { %p3540_p2 = scmp.ne.s32.totalorder %s3990_s21, %s3539_s7  ;;  %s3544_s18 = sshll.u32 %s3733_s19, 4  ;;  %s3545_s18 = int_to_ptr.vmem [resolvable:$false] %s3544_s18 }
  0xc2   : > { %s3546_s6 = scalar_lea.vmem %s3545_s18, 256  ;;  %p3547_p5 = scmp.lt.s32.totalorder %s3990_s21, %s3545_s18 }
  0xc3   : > { %p3542_p0 = pnand %p3540_p2, %p4510_p4  ;;  %p3548_p9 = scmp.lt.s32.totalorder %s3546_s6, %s3539_s7 }
  0xc5   : > { %p3543_p3 = pneg %p3542_p0  ;;  %p3549_p8 = por %p3548_p9, %p3547_p5 }
  0xc7   : > { %p3550_p12 = pnand %p3549_p8, %p3543_p3 }
  0xc9   : > { %3553 = shalt.err (!%p3550_p12)
}
  0xca   : > { %3216 = dma.hbm_to_vmem [thread:$0]  (!%p4511_p10), %s3986_s30, 128, %s3990_s21, %s3948_s3, %s3728_s14, %s3728_s14, %s3729_s15  }
  0xcb   : > { %p4512_p4 = scmp.ne.s32.totalorder %s4494_s20, 0 }
  0xcc   : > { %s4513_s27 = sld [smem:[#allocation28_spill]] (!%p4512_p4)  ;;  %s4514_s24 = sld [smem:[#allocation34_spill]] (!%p4512_p4) }
  0xcd   : > { %401 = sbr.rel (%p4512_p4) target bundleno = 724 (0x2d4), region = 44 }
  0xd2   : > { %s4096_s1 = sand.u32 (!%p4512_p4), 1, %s4513_s27   ;;  %p4515_p7 = scmp.ne.s32.totalorder (!%p4512_p4), %s4514_s24, 0 }
  0xd3   : > { %s2603_s8 = sshll.u32 (!%p4512_p4), %s4096_s1, 5  ;;  %s404_s28 = scalar_lea.sflag (!%p4512_p4), [#allocation7], %s4096_s1 }
  0xd4   : > { %s407_s22 = scalar_lea.vmem [#allocation6], %s2603_s8 }
  0xd5   : > { %3671 = dma.done.wait (%p4515_p7), %s404_s28, 512  }
  0xd6   : > { %3673 = vsyncadd (%p4515_p7), %s404_s28, 4294966784  ;;  %s4516_s3 = sld [smem:[#allocation33_spill]]  ;;  %s2604_s14 = sshll.u32 %s4096_s1, 3 }
  0xd7   : > { %s4110_s30 = scalar_lea.vmem [#allocation9], %s2604_s14 }
  0xdc   : > { %s412_s20 = sand.u32 1, %s4516_s3  }
  0xdd   : > { %s413_s15 = scalar_lea.sflag [#allocation10], %s412_s20 }
  0xde   : > { %3675 = dma.done.wait (%p4515_p7), %s413_s15, 256  }
  0xdf   : > { %3677 = vsyncadd (%p4515_p7), %s413_s15, 4294967040  ;;  %s4116_s21 = scalar_lea.vmem [#allocation11], %s2604_s14  ;;  %p4517_p10 = scmp.eq.s32.totalorder %s4516_s3, 0 }
  0xe1   : > { %3679 = dma.done.wait (%p4517_p10), [#allocation13], 32   ;;  %p4518_p1 = pmov %p4517_p10 }
  0xe3   : > { %3681 = vsyncadd (%p4518_p1), [#allocation13], 4294967264  ;;  %p4519_p6 = pmov %p4518_p1 }
  0xe4   : > { %p4520_p11 = pmov %p4518_p1 }
  0xe5   : > { %3683 = dma.done.wait (%p4519_p6), [#allocation16], 9216  }
  0xe6   : > { %3685 = vsyncadd (%p4520_p11), [#allocation16], 4294958080  ;;  %v2720_v0 = vld [vmem:[%s407_s22] sm:$0xff]   ;;  %v2763_v4 = vld [vmem:[%s407_s22 + $0x8] sm:$0xff]   ;;  %s4130_s29 = scalar_lea.vmem [#allocation17], %s2603_s8  ;;  %s481_s17 = scalar_lea.vmem [#allocation18], %s4096_s1 }
  0xe7   : > { %v2610_v1 = vld [vmem:[#allocation12] ss:$0 sm:$0xff]  ;;  %v2721_v2 = vunpack.c.l.bf16 %v2720_v0  ;;  %v2722_v3 = vunpack.c.h.bf16 %v2720_v0  ;;  %v2764_v5 = vld [vmem:[%s407_s22 + $0x10] sm:$0xff]   ;;  %v2765_v6 = vld [vmem:[%s407_s22 + $0x18] sm:$0xff]   ;;  %v2725_v8 = vunpack.c.l.bf16 %v2763_v4  ;;  %v2726_v9 = vunpack.c.h.bf16 %v2763_v4  ;;  %s487_s16 = scalar_lea.vmem [#allocation20], %s4096_s1  ;;  %s4521_s26 = sld [smem:[#allocation30_spill]] }
  0xe8   : > { %v2611_v7 = vld [vmem:[#allocation14] ss:$0 sm:$0xff]  ;;  %v2729_v10 = vunpack.c.l.bf16 %v2764_v5  ;;  %v2730_v11 = vunpack.c.h.bf16 %v2764_v5  ;;  %v2733_v14 = vunpack.c.l.bf16 %v2765_v6  ;;  %v2734_v15 = vunpack.c.h.bf16 %v2765_v6  ;;  %v2740_v33 = vld [vmem:[%s4116_s21] sm:$0xff]  }
  0xe9   : > { %v514_v12 = vmul.f32 %v2721_v2, %v2610_v1  ;;  %v515_v13 = vmul.f32 %v2722_v3, %v2610_v1  ;;  %v516_v16 = vmul.f32 %v2725_v8, %v2610_v1  ;;  %v517_v17 = vmul.f32 %v2726_v9, %v2610_v1  ;;  %v2736_v28 = vld [vmem:[%s4110_s30] sm:$0xff]  }
  0xea   : > { %v518_v18 = vmul.f32 %v2729_v10, %v2610_v1  ;;  %v519_v19 = vmul.f32 %v2730_v11, %v2610_v1  ;;  %v520_v22 = vmul.f32 %v2733_v14, %v2610_v1  ;;  %v521_v23 = vmul.f32 %v2734_v15, %v2610_v1 }
  0xeb   : > { %v529_v20 = vadd.f32 %v2611_v7, %v514_v12  ;;  %v530_v21 = vadd.f32 %v2611_v7, %v515_v13  ;;  %v531_v24 = vadd.f32 %v2611_v7, %v516_v16  ;;  %v532_v25 = vadd.f32 %v2611_v7, %v517_v17 }
  0xec   : > { %v533_v26 = vadd.f32 %v2611_v7, %v518_v18  ;;  %v534_v27 = vadd.f32 %v2611_v7, %v519_v19  ;;  %v535_v31 = vadd.f32 %v2611_v7, %v520_v22  ;;  %v536_v32 = vadd.f32 %v2611_v7, %v521_v23 }
  0xed   : > { %v537_v29 = vmax.f32 %v529_v20, 0.0  ;;  %v538_v30 = vmax.f32 %v530_v21, 0.0  ;;  %v539_v34 = vmax.f32 %v531_v24, 0.0  ;;  %v540_v35 = vmax.f32 %v532_v25, 0.0  ;;  %p2616_p13 = scmp.ne.s32.totalorder %s4521_s26, 0 }
  0xee   : > { %v541_v36 = vmax.f32 %v533_v26, 0.0  ;;  %v542_v37 = vmax.f32 %v534_v27, 0.0  ;;  %v543_v39 = vmax.f32 %v535_v31, 0.0  ;;  %v544_v40 = vmax.f32 %v536_v32, 0.0 }
  0xef   : > { %v545_v38 = vpack.c.bf16 %v538_v30, %v537_v29  ;;  %v2737_v41 = vunpack.c.l.bf16 %v2736_v28  ;;  %v546_v42 = vpack.c.bf16 %v540_v35, %v539_v34  ;;  %v2738_v44 = vunpack.c.h.bf16 %v2736_v28 }
  0xf0   : > { %v547_v43 = vpack.c.bf16 %v542_v37, %v541_v36  ;;  %v2741_v45 = vunpack.c.l.bf16 %v2740_v33  ;;  %v548_v46 = vpack.c.bf16 %v544_v40, %v543_v39  ;;  %v2742_v48 = vunpack.c.h.bf16 %v2740_v33 }
  0xf1   : > { %550 = vst [vmem:[#allocation3 + $0x8] sm:$0xff] %v545_v38  ;;  %v565_v47 = vmul.f32 %v2737_v41, %v2610_v1  ;;  %551 = vst [vmem:[#allocation3 + $0x10] sm:$0xff] %v546_v42  ;;  %v566_v49 = vmul.f32 %v2738_v44, %v2610_v1  ;;  %v3734_v62 = vmov (!%p2616_p13), 0  }
  0xf2   : > { %552 = vst [vmem:[#allocation3 + $0x18] sm:$0xff] %v547_v43  ;;  %v591_v50 = vmul.f32 %v2741_v45, %v2610_v1  ;;  %553 = vst [vmem:[#allocation3 + $0x20] sm:$0xff] %v548_v46  ;;  %v592_v52 = vmul.f32 %v2742_v48, %v2610_v1 }
  0xf3   : > { %v574_v51 = vadd.f32 %v2611_v7, %v565_v47  ;;  %v575_v53 = vadd.f32 %v2611_v7, %v566_v49 }
  0xf4   : > { %v600_v54 = vadd.f32 %v2611_v7, %v591_v50  ;;  %v601_v56 = vadd.f32 %v2611_v7, %v592_v52  ;;  %610 = sbr.rel (%p2616_p13) target bundleno = 251 (0xfb), region = 72 }
  0xf5   : > { %v576_v55 = vmax.f32 %v574_v51, 0.0  ;;  %v577_v57 = vmax.f32 %v575_v53, 0.0 }
  0xf6   : > { %v602_v58 = vmax.f32 %v600_v54, 0.0  ;;  %v603_v59 = vmax.f32 %v601_v56, 0.0 }
  0xf7   : > { %v578_v60 = vpack.c.bf16 %v577_v57, %v576_v55 }
  0xf8   : > { %v604_v61 = vpack.c.bf16 %v603_v59, %v602_v58 }
  0xf9   : > { %579 = vst [vmem:[#allocation3] sm:$0xff] %v578_v60 }
  0xfa   : > { %606 = vst [vmem:[#allocation3 + $0x28] sm:$0xff] %v604_v61  ;;  %611 = vst [vmem:[#allocation3] sm:$0xff] (!%p2616_p13), %v3734_v62 }
  0xfb PF: > { %s4522_s23 = sld [smem:[#allocation30_spill]] }
 0x101   : > { %p2617_p2 = scmp.ne.s32.totalorder %s4522_s23, 3 }
 0x102   : > { %v3735_v63 = vmov (!%p2617_p2), 0  }
 0x103   : > { %615 = sbr.rel (%p2617_p2) target bundleno = 266 (0x10a), region = 76  ;;  %616 = vst [vmem:[#allocation3 + $0x28] sm:$0xff] (!%p2617_p2), %v3735_v63 }
 0x10a PF: > { %v3308_v0 = vld [vmem:[#allocation15] sm:$0xff]   ;;  %v3310_v2 = vld [vmem:[#allocation15 + $0x8] sm:$0xff]   ;;  %v3312_v4 = vld [vmem:[#allocation15 + $0x10] sm:$0xff]   ;;  %vm671_vm0 = vcmask 1047552   ;;  %vm672_vm1 = vsmask.f32 7938 }
 0x10b   : > { %v3309_v1 = vld [vmem:[#allocation15 + $0x100] sm:$0xff]   ;;  %2877 = vmatprep.subr.bf16.mxu1 %v3308_v0  ;;  %v3311_v3 = vld [vmem:[#allocation15 + $0x108] sm:$0xff]   ;;  %v3313_v5 = vld [vmem:[#allocation15 + $0x110] sm:$0xff]   ;;  %vm693_vm2 = vsmask.f32 256  ;;  %vm692_vm4 = vcmask 1040384  }
 0x10c   : > { %2973 = vmatprep.subr.bf16.mxu0 %v3309_v1  ;;  %2878 = vmatpush3.bf16.msra.mxu1 %v3308_v0  ;;  %v3314_v6 = vld [vmem:[#allocation15 + $0x18] sm:$0xff]   ;;  %v3316_v8 = vld [vmem:[#allocation15 + $0x20] sm:$0xff]   ;;  %v3318_v10 = vld [vmem:[#allocation15 + $0x28] sm:$0xff]   ;;  %vm767_vm6 = vsmask.f32 7424  ;;  %vm787_vm9 = vcmask 1047559  }
 0x10d   : > { %2974 = vmatpush3.bf16.msra.mxu0 %v3309_v1  ;;  %2879 = vmatprep.subr.bf16.mxu1 %v3310_v2  ;;  %v3315_v7 = vld [vmem:[#allocation15 + $0x118] sm:$0xff]   ;;  %v3317_v9 = vld [vmem:[#allocation15 + $0x120] sm:$0xff]   ;;  %v3319_v11 = vld [vmem:[#allocation15 + $0x128] sm:$0xff]   ;;  %vm788_vm8 = vsmask.f32 7966  ;;  %s4531_s12 = sld [smem:[#allocation30_spill]] }
 0x10e   : > { %2975 = vmatprep.subr.bf16.mxu0 %v3311_v3  ;;  %v4136_v12 = vld [vmem:[#allocation3] sm:$0xff]  ;;  %v3320_v15 = vld [vmem:[#allocation15 + $0x30] sm:$0xff]   ;;  %v4140_v16 = vld [vmem:[#allocation3 + $0x8] sm:$0xff]  ;;  %s4532_s13 = sld [smem:[#allocation31_spill]]  ;;  %s2327_s19 = sshll.u32 %s4130_s29, 4  ;;  %s4298_s19 = int_to_ptr.vmem [resolvable:$true] %s2327_s19 }
 0x10f   : > { %v624_v13 = vshrl.u32 %v4136_v12, 16  ;;  %v627_v14 = vshll.u32 %v4136_v12, 16  ;;  %v674_v18 = vld [vmem:[#allocation2] sm:$0xff]  ;;  %2989 = vmatprep.mubr.bf16.mxu0 %v4140_v16  ;;  %vm4146_vm3 = vmand %vm671_vm0, %vm672_vm1  ;;  %v631_v20 = vshrl.u32 %v4140_v16, 16  ;;  %v634_v21 = vshll.u32 %v4140_v16, 16  ;;  %v677_v28 = vld [vmem:[#allocation2 + $0x8] sm:$0xff] }
 0x110   : > { %2880 = vmatpush3.bf16.msra.mxu1 %v3310_v2  ;;  %v4152_v22 = vld [vmem:[#allocation3 + $0x10] sm:$0xff]  ;;  %v3322_v30 = vld [vmem:[#allocation15 + $0x38] sm:$0xff]   ;;  %vm4164_vm5 = vmand %vm692_vm4, %vm693_vm2  ;;  %s4533_s6 = sld [smem:[#allocation35_spill]]  ;;  %s4534_s8 = sld [smem:[#allocation42_spill]] }
 0x111   : > { %2976 = vmatpush3.bf16.msra.mxu0 %v3311_v3  ;;  %2881 = vmatprep.subr.bf16.mxu1 %v3312_v4  ;;  %v626_v17 = vrot.slane %v624_v13, 7  ;;  %v3321_v23 = vld [vmem:[#allocation15 + $0x130] sm:$0xff]   ;;  %v638_v25 = vshrl.u32 %v4152_v22, 16  ;;  %v633_v26 = vrot.slane %v631_v20, 7  ;;  %v641_v32 = vshll.u32 %v4152_v22, 16  ;;  %v3323_v33 = vld [vmem:[#allocation15 + $0x138] sm:$0xff]   ;;  %vm4183_vm7 = vmand %vm671_vm0, %vm767_vm6 }
 0x112   : > { %2977 = vmatprep.subr.bf16.mxu0 %v3313_v5  ;;  %v3324_v37 = vld [vmem:[#allocation15 + $0x40] sm:$0xff]   ;;  %v731_v40 = vrot.slane %v634_v21, 1  ;;  %v4172_v44 = vld [vmem:[#allocation3 + $0x18] sm:$0xff]  ;;  %v3327_v45 = vld [vmem:[#allocation15 + $0x148] sm:$0xff]   ;;  %s2303_s22 = scalar_lea.sflag [#allocation8], %s4096_s1  ;;  %s3554_s3 = scalar_lea.vmem %s4298_s19, 512 }
 0x113   : > { %v629_v24 = vor.u32 %v627_v14, %v626_v17  ;;  %v640_v29 = vrot.slane %v638_v25, 7  ;;  %v636_v31 = vor.u32 %v634_v21, %v633_v26  ;;  %v3325_v38 = vld [vmem:[#allocation15 + $0x140] sm:$0xff]   ;;  %v645_v46 = vshrl.u32 %v4172_v44, 16  ;;  %v3329_v54 = vld [vmem:[#allocation15 + $0x150] sm:$0xff]   ;;  %v3331_v2 = vld [vmem:[#allocation15 + $0x158] sm:$0xff]   ;;  %s2718_s9 = sshll.u32 %s4531_s12, 3  ;;  %p3555_p0 = scmp.ne.s32.totalorder %s4298_s19, %s3554_s3 }
 0x114   : > { %2882 = vmatpush3.bf16.msra.mxu1 %v3312_v4  ;;  %v680_v39 = vld [vmem:[#allocation2 + $0x10] sm:$0xff]  ;;  %v648_v47 = vshll.u32 %v4172_v44, 16  ;;  %v738_v48 = vrot.slane %v641_v32, 1  ;;  %v683_v52 = vld [vmem:[#allocation2 + $0x18] sm:$0xff]  ;;  %v732_v53 = vor.u32 %v731_v40, %v631_v20  ;;  %v772_v58 = vld [vmem:[#allocation4 + $0x8] sm:$0xff]  ;;  %s2701_s25 = sshll.u32 %s4532_s13, 5 }
 0x115   : > { %2978 = vmatpush3.bf16.msra.mxu0 %v3313_v5  ;;  %2883 = vmatprep.subr.bf16.mxu1 %v3314_v6  ;;  %v675_v27 = vsel %vm4146_vm3, %v629_v24, %v674_v18  ;;  %v678_v34 = vsel %vm4146_vm3, %v636_v31, %v677_v28  ;;  %v643_v36 = vor.u32 %v641_v32, %v640_v29  ;;  %v647_v51 = vrot.slane %v645_v46, 7  ;;  %v4189_v61 = vld [vmem:[#allocation3 + $0x20] sm:$0xff]  ;;  %v3326_v4 = vld [vmem:[#allocation15 + $0x48] sm:$0xff]   ;;  %vm4203_vm10 = vmand %vm787_vm9, %vm788_vm8  ;;  %s2324_s7 = sadd.s32 %s2718_s9, %s2701_s25  ;;  %s3736_s14 = smov [#allocation17]  }
 0x116   : > { %2979 = vmatprep.subr.bf16.mxu0 %v3315_v7  ;;  %676 = vst [vmem:[#allocation2] sm:$0xff] %v675_v27  ;;  %679 = vst [vmem:[#allocation2 + $0x8] sm:$0xff] %v678_v34  ;;  %v739_v57 = vor.u32 %v738_v48, %v638_v25  ;;  %v773_v62 = vsel %vm4183_vm7, %v732_v53, %v772_v58  ;;  %v775_v1 = vld [vmem:[#allocation4 + $0x10] sm:$0xff]  ;;  %v750_v5 = vshll.u32 %v4189_v61, 16  ;;  %v3335_v21 = vld [vmem:[#allocation15 + $0x168] sm:$0xff]   ;;  %v724_v29 = vrot.slane %v627_v14, 1 }
 0x117   : > { %v681_v42 = vsel %vm4146_vm3, %v643_v36, %v680_v39  ;;  %v650_v55 = vor.u32 %v648_v47, %v647_v51  ;;  %774 = vst [vmem:[#allocation4 + $0x8] sm:$0xff] %v773_v62  ;;  %v3330_v20 = vld [vmem:[#allocation15 + $0x58] sm:$0xff]   ;;  %v3337_v31 = vld [vmem:[#allocation15 + $0x170] sm:$0xff]   ;;  %v778_v32 = vld [vmem:[#allocation4 + $0x18] sm:$0xff]  ;;  %s2702_s18 = sshll.u32 %s2324_s7, 6  ;;  %p4535_p3 = scmp.ne.s32.totalorder %s4533_s6, 0 }
 0x118   : > { %2884 = vmatpush3.bf16.msra.mxu1 %v3314_v6  ;;  %682 = vst [vmem:[#allocation2 + $0x10] sm:$0xff] %v681_v42  ;;  %v776_v3 = vsel %vm4183_vm7, %v739_v57, %v775_v1  ;;  %v781_v36 = vld [vmem:[#allocation4 + $0x20] sm:$0xff]  ;;  %v3339_v40 = vld [vmem:[#allocation15 + $0x178] sm:$0xff]   ;;  %v3340_v58 = vld [vmem:[#allocation15 + $0x80] sm:$0xff]   ;;  %s4303_s28 = scalar_lea.hbm %s4534_s8, %s2702_s18  ;;  %s3558_s15 = sshll.u32 %s3736_s14, 4  ;;  %s3559_s15 = int_to_ptr.vmem [resolvable:$false] %s3558_s15 }
 0x119   : > { %2980 = vmatpush3.bf16.msra.mxu0 %v3315_v7  ;;  %2885 = vmatprep.subr.bf16.mxu1 %v3316_v8  ;;  %v684_v60 = vsel %vm4146_vm3, %v650_v55, %v683_v52  ;;  %777 = vst [vmem:[#allocation4 + $0x10] sm:$0xff] %v776_v3  ;;  %v3328_v7 = vld [vmem:[#allocation15 + $0x50] sm:$0xff]   ;;  %v3334_v42 = vld [vmem:[#allocation15 + $0x68] sm:$0xff]   ;;  %v3347_v1 = vld [vmem:[#allocation15 + $0x198] sm:$0xff]   ;;  %p3556_p5 = pnand %p3555_p0, %p4535_p3  ;;  %s3560_s30 = scalar_lea.vmem %s3559_s15, 1024 }
 0x11a   : > { %2981 = vmatprep.subr.bf16.mxu0 %v3317_v9  ;;  %685 = vst [vmem:[#allocation2 + $0x18] sm:$0xff] %v684_v60  ;;  %v3343_v52 = vld [vmem:[#allocation15 + $0x188] sm:$0xff]   ;;  %v3345_v57 = vld [vmem:[#allocation15 + $0x190] sm:$0xff]   ;;  %v3348_v19 = vld [vmem:[#allocation15 + $0xa0] sm:$0xff]   ;;  %p3561_p8 = scmp.lt.s32.totalorder %s4298_s19, %s3559_s15  ;;  %p3562_p12 = scmp.lt.s32.totalorder %s3560_s30, %s3554_s3 }
 0x11b   : > { %v686_v60 = vld [vmem:[#allocation2 + $0x20] sm:$0xff]  ;;  %v3354_v35 = vld [vmem:[#allocation15 + $0xb8] sm:$0xff]   ;;  %p3557_p9 = pneg %p3556_p5 }
 0x11c   : > { %2886 = vmatpush3.bf16.msra.mxu1 %v3316_v8  ;;  %v3333_v8 = vld [vmem:[#allocation15 + $0x160] sm:$0xff]   ;;  %p3563_p4 = por %p3562_p12, %p3561_p8 }
 0x11d   : > { %2982 = vmatpush3.bf16.msra.mxu0 %v3317_v9  ;;  %2887 = vmatprep.subr.bf16.mxu1 %v3318_v10  ;;  %v695_v41 = vld [vmem:[#allocation2] sm:$0x1]  ;;  %v698_v49 = vld [vmem:[#allocation2 + $0x8] sm:$0x1] }
 0x11e   : > { %2983 = vmatprep.subr.bf16.mxu0 %v3319_v11  ;;  %v696_v43 = vsel %vm4164_vm5, 0, %v695_v41  ;;  %v699_v50 = vsel %vm4164_vm5, 0, %v698_v49  ;;  %v793_v18 = vld [vmem:[#allocation4 + $0x8] sm:$0x80]  ;;  %v769_v41 = vld [vmem:[#allocation4] sm:$0xff]  ;;  %p3564_p7 = pnand %p3563_p4, %p3557_p9 }
 0x11f   : > { %697 = vst [vmem:[#allocation2] sm:$0x1] %v696_v43  ;;  %700 = vst [vmem:[#allocation2 + $0x8] sm:$0x1] %v699_v50  ;;  %v701_v59 = vld [vmem:[#allocation2 + $0x10] sm:$0x1] }
 0x120   : > { %2888 = vmatpush3.bf16.msra.mxu1 %v3318_v10  ;;  %v702_v0 = vsel %vm4164_vm5, 0, %v701_v59  ;;  %v745_v10 = vrot.slane %v648_v47, 1  ;;  %v794_v25 = vsel %vm4203_vm10, 0, %v793_v18  ;;  %v796_v26 = vld [vmem:[#allocation4 + $0x10] sm:$0x80]  ;;  %v3338_v50 = vld [vmem:[#allocation15 + $0x78] sm:$0xff]  }
 0x121   : > { %2984 = vmatpush3.bf16.msra.mxu0 %v3319_v11  ;;  %2889 = vmatprep.subr.bf16.mxu1 %v3320_v15  ;;  %703 = vst [vmem:[#allocation2 + $0x10] sm:$0x1] %v702_v0  ;;  %v748_v11 = vshrl.u32 %v4189_v61, 16  ;;  %v704_v17 = vld [vmem:[#allocation2 + $0x18] sm:$0x1]  ;;  %v797_v27 = vsel %vm4203_vm10, 0, %v796_v26 }
 0x122   : > { %2985 = vmatprep.subr.bf16.mxu0 %v3321_v23  ;;  %v705_v24 = vsel %vm4164_vm5, 0, %v704_v17  ;;  %795 = vst [vmem:[#allocation4 + $0x8] sm:$0x80] %v794_v25  ;;  %v746_v28 = vor.u32 %v745_v10, %v645_v46  ;;  %798 = vst [vmem:[#allocation4 + $0x10] sm:$0x80] %v797_v27  ;;  %v3341_v43 = vld [vmem:[#allocation15 + $0x180] sm:$0xff]  }
 0x123   : > { %706 = vst [vmem:[#allocation2 + $0x18] sm:$0x1] %v705_v24  ;;  %v654_v49 = vrot.slane %v748_v11, 7  ;;  %v3342_v0 = vld [vmem:[#allocation15 + $0x88] sm:$0xff]   ;;  %v3344_v10 = vld [vmem:[#allocation15 + $0x90] sm:$0xff]  }
 0x124   : > { %2890 = vmatpush3.bf16.msra.mxu1 %v3320_v15  ;;  %v752_v15 = vrot.slane %v750_v5, 1  ;;  %v779_v34 = vsel %vm4183_vm7, %v746_v28, %v778_v32  ;;  %v3353_v26 = vld [vmem:[#allocation15 + $0x1b0] sm:$0xff]   ;;  %v3350_v32 = vld [vmem:[#allocation15 + $0xa8] sm:$0xff]  }
 0x125   : > { %2986 = vmatpush3.bf16.msra.mxu0 %v3321_v23  ;;  %2891 = vmatprep.subr.bf16.mxu1 %v3322_v30  ;;  %780 = vst [vmem:[#allocation4 + $0x18] sm:$0xff] %v779_v34  ;;  %v657_v55 = vor.u32 %v750_v5, %v654_v49  ;;  %v3349_v5 = vld [vmem:[#allocation15 + $0x1a0] sm:$0xff]   ;;  %v784_v27 = vld [vmem:[#allocation4 + $0x28] sm:$0xff]  ;;  %v3366_v49 = vld [vmem:[#allocation15 + $0xe8] sm:$0xff]  }
 0x126   : > { %2987 = vmatprep.subr.bf16.mxu0 %v3323_v33  ;;  %v808_v63 = vld [vmem:[#allocation2] sm:$0xff]  ;;  %v4198_v6 = vld [vmem:[#allocation2 + $0x8] sm:$0xff] }
 0x127   : > { %2893 = vmatprep.mubr.bf16.mxu1 %v808_v63  ;;  %v687_v63 = vsel %vm4146_vm3, %v657_v55, %v686_v60  ;;  %v3352_v34 = vld [vmem:[#allocation15 + $0xb0] sm:$0xff]  }
 0x128   : > { %2892 = vmatpush3.bf16.msra.mxu1 %v3322_v30  ;;  %v4210_v23 = vld [vmem:[#allocation2 + $0x10] sm:$0xff]  ;;  %v753_v30 = vor.u32 %v752_v15, %v748_v11  ;;  %688 = vst [vmem:[#allocation2 + $0x20] sm:$0xff] %v687_v63 }
 0x129   : > { %2988 = vmatpush3.bf16.msra.mxu0 %v3323_v33  ;;  %2901 = vmatprep.subr.bf16.mxu1 %v3324_v37  ;;  %v3332_v33 = vld [vmem:[#allocation15 + $0x60] sm:$0xff]   ;;  %v4231_v39 = vld [vmem:[#allocation4 + $0x8] sm:$0xff] }
 0x12a   : > { %2997 = vmatprep.subr.bf16.mxu0 %v3325_v38  ;;  %v782_v14 = vsel %vm4183_vm7, %v753_v30, %v781_v36  ;;  %v4240_v51 = vld [vmem:[#allocation4 + $0x10] sm:$0xff] }
 0x12b   : > { %2894 = vmatmul.mubr.bf16.vlgmr.msra.gmra.mrb[0].mxu1 %v4198_v6  ;;  %783 = vst [vmem:[#allocation4 + $0x20] sm:$0xff] %v782_v14  ;;  %v3355_v30 = vld [vmem:[#allocation15 + $0x1b8] sm:$0xff]  }
 0x12c   : > { %2990 = vmatmul.mubr.bf16.vlgmr.msra.gmra.mrb[0].mxu0 %v4152_v22  ;;  %2902 = vmatpush3.bf16.msra.mxu1 %v3324_v37  ;;  %v725_v37 = vor.u32 %v724_v29, %v624_v13  ;;  %v799_v46 = vld [vmem:[#allocation4 + $0x18] sm:$0x80] }
 0x12d   : > { %2998 = vmatpush3.bf16.msra.mxu0 %v3325_v38  ;;  %2993 = vmatprep.mubr.bf16.mxu0 %v4172_v44  ;;  %v4229_v38 = vld [vmem:[#allocation2 + $0x18] sm:$0xff]  ;;  %v800_v47 = vsel %vm4203_vm10, 0, %v799_v46 }
 0x12e   : > { %2999 = vmatprep.subr.bf16.mxu0 %v3327_v45  ;;  %2903 = vmatprep.subr.bf16.mxu1 %v3326_v4  ;;  %v770_v13 = vsel %vm4183_vm7, %v725_v37, %v769_v41  ;;  %801 = vst [vmem:[#allocation4 + $0x18] sm:$0x80] %v800_v47  ;;  %v3359_v37 = vld [vmem:[#allocation15 + $0x1c8] sm:$0xff]   ;;  %v3356_v41 = vld [vmem:[#allocation15 + $0xc0] sm:$0xff]   ;;  %v3362_v47 = vld [vmem:[#allocation15 + $0xd8] sm:$0xff]  }
 0x12f   : > { %2897 = vmatprep.mubr.bf16.mxu1 %v4210_v23  ;;  %771 = vst [vmem:[#allocation4] sm:$0xff] %v770_v13  ;;  %v707_v17 = vld [vmem:[#allocation2 + $0x20] sm:$0x1] }
 0x130   : > { %2904 = vmatpush3.bf16.msra.mxu1 %v3326_v4  ;;  %v3358_v13 = vld [vmem:[#allocation15 + $0xc8] sm:$0xff]  }
 0x131   : > { %3000 = vmatpush3.bf16.msra.mxu0 %v3327_v45  ;;  %2905 = vmatprep.subr.bf16.mxu1 %v3328_v7  ;;  %v3336_v45 = vld [vmem:[#allocation15 + $0x70] sm:$0xff]   ;;  %v3367_v46 = vld [vmem:[#allocation15 + $0x1e8] sm:$0xff]  }
 0x132   : > { %3001 = vmatprep.subr.bf16.mxu0 %v3329_v54  ;;  %v802_v48 = vld [vmem:[#allocation4 + $0x20] sm:$0x80] }
 0x133   : > { %2898 = vmatmul.mubr.bf16.gmra.mrb[4].mxu1 %v4229_v38 }
 0x134   : > { %2994 = vmatmul.mubr.bf16.gmra.mrb[4].mxu0 %v4189_v61  ;;  %2906 = vmatpush3.bf16.msra.mxu1 %v3328_v7 }
 0x135   : > { %3002 = vmatpush3.bf16.msra.mxu0 %v3329_v54  ;;  %2907 = vmatprep.subr.bf16.mxu1 %v3330_v20  ;;  %v4249_v59 = vld [vmem:[#allocation4 + $0x18] sm:$0xff] }
 0x136   : > { %3003 = vmatprep.subr.bf16.mxu0 %v3331_v2  ;;  %2917 = vmatprep.mubr.bf16.mxu1 %v4136_v12  ;;  %v803_v12 = vsel %vm4203_vm10, 0, %v802_v48  ;;  %v790_v53 = vld [vmem:[#allocation4] sm:$0x80]  ;;  %v3364_v48 = vld [vmem:[#allocation15 + $0xe0] sm:$0xff]  }
 0x137   : > { %3013 = vmatprep.mubr.bf16.mxu0 %v4231_v39  ;;  %804 = vst [vmem:[#allocation4 + $0x20] sm:$0x80] %v803_v12  ;;  %v791_v54 = vsel %vm4203_vm10, 0, %v790_v53  ;;  %v3368_v12 = vld [vmem:[#allocation15 + $0xf0] sm:$0xff]   ;;  %v3370_v53 = vld [vmem:[#allocation15 + $0xf8] sm:$0xff]  }
 0x138   : > { %2908 = vmatpush3.bf16.msra.mxu1 %v3330_v20  ;;  %792 = vst [vmem:[#allocation4] sm:$0x80] %v791_v54  ;;  %v708_v20 = vsel %vm4164_vm5, 0, %v707_v17  ;;  %v3375_v54 = vld [vmem:[#allocation15 + $0x218] sm:$0xff]  }
 0x139   : > { %3004 = vmatpush3.bf16.msra.mxu0 %v3331_v2  ;;  %2909 = vmatprep.subr.bf16.mxu1 %v3332_v33  ;;  %v4256_v2 = vld [vmem:[#allocation3 + $0x28] sm:$0xff]  ;;  %709 = vst [vmem:[#allocation2 + $0x20] sm:$0x1] %v708_v20 }
 0x13a   : > { %3005 = vmatprep.subr.bf16.mxu0 %v3333_v8  ;;  %v659_v3 = vshrl.u32 %v4256_v2, 16  ;;  %v662_v4 = vshll.u32 %v4256_v2, 16 }
 0x13c   : > { %2910 = vmatpush3.bf16.msra.mxu1 %v3332_v33  ;;  %v661_v7 = vrot.slane %v659_v3, 7  ;;  %v759_v15 = vrot.slane %v662_v4, 1  ;;  %v3357_v33 = vld [vmem:[#allocation15 + $0x1c0] sm:$0xff]  }
 0x13d   : > { %3006 = vmatpush3.bf16.msra.mxu0 %v3333_v8  ;;  %2911 = vmatprep.subr.bf16.mxu1 %v3334_v42  ;;  %v689_v8 = vld [vmem:[#allocation2 + $0x28] sm:$0xff] }
 0x13e   : > { %3007 = vmatprep.subr.bf16.mxu0 %v3335_v21  ;;  %v4252_v62 = vld [vmem:[#allocation4 + $0x20] sm:$0xff]  ;;  %v664_v11 = vor.u32 %v662_v4, %v661_v7  ;;  %v760_v25 = vor.u32 %v759_v15, %v659_v3 }
 0x13f   : > { %v1107_v24 = vld [vmem:[#allocation4] sm:$0xff] }
 0x140   : > { %2912 = vmatpush3.bf16.msra.mxu1 %v3334_v42  ;;  %v690_v18 = vsel %vm4146_vm3, %v664_v11, %v689_v8  ;;  %v785_v28 = vsel %vm4183_vm7, %v760_v25, %v784_v27  ;;  %v4275_v14 = vld [vmem:[#allocation2 + $0x20] sm:$0xff]  ;;  %v3363_v42 = vld [vmem:[#allocation15 + $0x1d8] sm:$0xff]  }
 0x141   : > { %3008 = vmatpush3.bf16.msra.mxu0 %v3335_v21  ;;  %2913 = vmatprep.subr.bf16.mxu1 %v3336_v45  ;;  %691 = vst [vmem:[#allocation2 + $0x28] sm:$0xff] %v690_v18  ;;  %v3346_v21 = vld [vmem:[#allocation15 + $0x98] sm:$0xff]   ;;  %786 = vst [vmem:[#allocation4 + $0x28] sm:$0xff] %v785_v28 }
 0x142   : > { %3009 = vmatprep.subr.bf16.mxu0 %v3337_v31 }
 0x144   : > { %2914 = vmatpush3.bf16.msra.mxu1 %v3336_v45  ;;  %v3360_v45 = vld [vmem:[#allocation15 + $0xd0] sm:$0xff]  }
 0x145   : > { %3010 = vmatpush3.bf16.msra.mxu0 %v3337_v31  ;;  %2915 = vmatprep.subr.bf16.mxu1 %v3338_v50 }
 0x146   : > { %3011 = vmatprep.subr.bf16.mxu0 %v3339_v40 }
 0x148   : > { %2916 = vmatpush3.bf16.msra.mxu1 %v3338_v50  ;;  %v710_v29 = vld [vmem:[#allocation2 + $0x28] sm:$0x1]  ;;  %v805_v56 = vld [vmem:[#allocation4 + $0x28] sm:$0x80]  ;;  %v3372_v50 = vld [vmem:[#allocation15 + $0x200] sm:$0xff]  }
 0x149   : > { %3012 = vmatpush3.bf16.msra.mxu0 %v3339_v40  ;;  %2925 = vmatprep.subr.bf16.mxu1 %v3340_v58  ;;  %v711_v31 = vsel %vm4164_vm5, 0, %v710_v29  ;;  %v806_v36 = vsel %vm4203_vm10, 0, %v805_v56  ;;  %v3361_v40 = vld [vmem:[#allocation15 + $0x1d0] sm:$0xff]  }
 0x14a   : > { %3021 = vmatprep.subr.bf16.mxu0 %v3341_v43  ;;  %712 = vst [vmem:[#allocation2 + $0x28] sm:$0x1] %v711_v31  ;;  %807 = vst [vmem:[#allocation4 + $0x28] sm:$0x80] %v806_v36 }
 0x14b   : > { %2918 = vmatmul.mubr.bf16.vlgmr.msra.gmra.mrb[0].mxu1 %v4140_v16  ;;  %v3351_v16 = vld [vmem:[#allocation15 + $0x1a8] sm:$0xff]  }
 0x14c   : > { %3014 = vmatmul.mubr.bf16.vlgmr.msra.gmra.mrb[0].mxu0 %v4240_v51  ;;  %2926 = vmatpush3.bf16.msra.mxu1 %v3340_v58 }
 0x14d   : > { %3022 = vmatpush3.bf16.msra.mxu0 %v3341_v43  ;;  %3017 = vmatprep.mubr.bf16.mxu0 %v4249_v59  ;;  %v3365_v43 = vld [vmem:[#allocation15 + $0x1e0] sm:$0xff]  }
 0x14e   : > { %3023 = vmatprep.subr.bf16.mxu0 %v3343_v52  ;;  %2927 = vmatprep.subr.bf16.mxu1 %v3342_v0 }
 0x14f   : > { %2921 = vmatprep.mubr.bf16.mxu1 %v4152_v22 }
 0x150   : > { %2928 = vmatpush3.bf16.msra.mxu1 %v3342_v0 }
 0x151   : > { %3024 = vmatpush3.bf16.msra.mxu0 %v3343_v52  ;;  %2929 = vmatprep.subr.bf16.mxu1 %v3344_v10  ;;  %v1745_v9 = vld [vmem:[#allocation2 + $0x28] sm:$0xff]  ;;  %v3373_v52 = vld [vmem:[#allocation15 + $0x208] sm:$0xff]  }
 0x152   : > { %3025 = vmatprep.subr.bf16.mxu0 %v3345_v57 }
 0x153   : > { %2922 = vmatmul.mubr.bf16.gmra.mrb[4].mxu1 %v4172_v44 }
 0x154   : > { %3018 = vmatmul.mubr.bf16.gmra.mrb[4].mxu0 %v4252_v62  ;;  %2930 = vmatpush3.bf16.msra.mxu1 %v3344_v10 }
 0x155   : > { %3026 = vmatpush3.bf16.msra.mxu0 %v3345_v57  ;;  %3037 = vmatprep.mubr.bf16.mxu0 %v4210_v23 }
 0x156   : > { %3027 = vmatprep.subr.bf16.mxu0 %v3347_v1  ;;  %2931 = vmatprep.subr.bf16.mxu1 %v3346_v21 }
 0x157   : > { %2941 = vmatprep.mubr.bf16.mxu1 %v1107_v24 }
 0x158   : > { %2932 = vmatpush3.bf16.msra.mxu1 %v3346_v21 }
 0x159   : > { %3028 = vmatpush3.bf16.msra.mxu0 %v3347_v1  ;;  %2933 = vmatprep.subr.bf16.mxu1 %v3348_v19 }
 0x15a   : > { %3029 = vmatprep.subr.bf16.mxu0 %v3349_v5 }
 0x15c   : > { %2934 = vmatpush3.bf16.msra.mxu1 %v3348_v19 }
 0x15d   : > { %3030 = vmatpush3.bf16.msra.mxu0 %v3349_v5  ;;  %2935 = vmatprep.subr.bf16.mxu1 %v3350_v32 }
 0x15e   : > { %3031 = vmatprep.subr.bf16.mxu0 %v3351_v16 }
 0x160   : > { %2936 = vmatpush3.bf16.msra.mxu1 %v3350_v32 }
 0x161   : > { %3032 = vmatpush3.bf16.msra.mxu0 %v3351_v16  ;;  %2937 = vmatprep.subr.bf16.mxu1 %v3352_v34 }
 0x162   : > { %3033 = vmatprep.subr.bf16.mxu0 %v3353_v26 }
 0x164   : > { %2938 = vmatpush3.bf16.msra.mxu1 %v3352_v34 }
 0x165   : > { %3034 = vmatpush3.bf16.msra.mxu0 %v3353_v26  ;;  %2939 = vmatprep.subr.bf16.mxu1 %v3354_v35 }
 0x166   : > { %3035 = vmatprep.subr.bf16.mxu0 %v3355_v30 }
 0x168   : > { %2940 = vmatpush3.bf16.msra.mxu1 %v3354_v35 }
 0x169   : > { %3036 = vmatpush3.bf16.msra.mxu0 %v3355_v30  ;;  %2949 = vmatprep.subr.bf16.mxu1 %v3356_v41 }
 0x16a   : > { %3045 = vmatprep.subr.bf16.mxu0 %v3357_v33 }
 0x16b   : > { %2942 = vmatmul.mubr.bf16.vlgmr.msra.gmra.mrb[0].mxu1 %v4231_v39  ;;  %v3369_v39 = vld [vmem:[#allocation15 + $0x1f0] sm:$0xff]  }
 0x16c   : > { %3038 = vmatmul.mubr.bf16.vlgmr.msra.gmra.mrb[0].mxu0 %v4229_v38  ;;  %2950 = vmatpush3.bf16.msra.mxu1 %v3356_v41 }
 0x16d   : > { %3046 = vmatpush3.bf16.msra.mxu0 %v3357_v33  ;;  %3041 = vmatprep.mubr.bf16.mxu0 %v4275_v14 }
 0x16e   : > { %3047 = vmatprep.subr.bf16.mxu0 %v3359_v37  ;;  %2951 = vmatprep.subr.bf16.mxu1 %v3358_v13 }
 0x16f   : > { %2945 = vmatprep.mubr.bf16.mxu1 %v4240_v51 }
 0x170   : > { %2952 = vmatpush3.bf16.msra.mxu1 %v3358_v13 }
 0x171   : > { %3048 = vmatpush3.bf16.msra.mxu0 %v3359_v37  ;;  %2953 = vmatprep.subr.bf16.mxu1 %v3360_v45 }
 0x172   : > { %3049 = vmatprep.subr.bf16.mxu0 %v3361_v40 }
 0x173   : > { %2946 = vmatmul.mubr.bf16.gmra.mrb[4].mxu1 %v4249_v59 }
 0x174   : > { %3042 = vmatmul.mubr.bf16.gmra.mrb[4].mxu0 %v1745_v9  ;;  %2954 = vmatpush3.bf16.msra.mxu1 %v3360_v45 }
 0x175   : > { %3050 = vmatpush3.bf16.msra.mxu0 %v3361_v40  ;;  %3061 = vmatprep.mubr.bf16.mxu0 %v4152_v22  ;;  %v3371_v22 = vld [vmem:[#allocation15 + $0x1f8] sm:$0xff]  }
 0x176   : > { %3051 = vmatprep.subr.bf16.mxu0 %v3363_v42  ;;  %2955 = vmatprep.subr.bf16.mxu1 %v3362_v47 }
 0x177   : > { %2965 = vmatprep.mubr.bf16.mxu1 %v4198_v6  ;;  %v3374_v6 = vld [vmem:[#allocation15 + $0x210] sm:$0xff]  }
 0x178   : > { %2956 = vmatpush3.bf16.msra.mxu1 %v3362_v47 }
 0x179   : > { %3052 = vmatpush3.bf16.msra.mxu0 %v3363_v42  ;;  %2957 = vmatprep.subr.bf16.mxu1 %v3364_v48 }
 0x17a   : > { %3053 = vmatprep.subr.bf16.mxu0 %v3365_v43 }
 0x17c   : > { %2958 = vmatpush3.bf16.msra.mxu1 %v3364_v48 }
 0x17d   : > { %3054 = vmatpush3.bf16.msra.mxu0 %v3365_v43  ;;  %2959 = vmatprep.subr.bf16.mxu1 %v3366_v49 }
 0x17e   : > { %3055 = vmatprep.subr.bf16.mxu0 %v3367_v46 }
 0x180   : > { %2960 = vmatpush3.bf16.msra.mxu1 %v3366_v49 }
 0x181   : > { %3056 = vmatpush3.bf16.msra.mxu0 %v3367_v46  ;;  %2961 = vmatprep.subr.bf16.mxu1 %v3368_v12 }
 0x182   : > { %3057 = vmatprep.subr.bf16.mxu0 %v3369_v39 }
 0x184   : > { %2962 = vmatpush3.bf16.msra.mxu1 %v3368_v12 }
 0x185   : > { %3058 = vmatpush3.bf16.msra.mxu0 %v3369_v39  ;;  %2963 = vmatprep.subr.bf16.mxu1 %v3370_v53 }
 0x186   : > { %3059 = vmatprep.subr.bf16.mxu0 %v3371_v22 }
 0x188   : > { %2964 = vmatpush3.bf16.msra.mxu1 %v3370_v53 }
 0x189   : > { %3060 = vmatpush3.bf16.msra.mxu0 %v3371_v22  ;;  %3093 = vmatprep.subr.bf16.mxu1 %v3372_v50 }
 0x18a   : > { %3069 = vmatprep.subr.bf16.mxu0 %v3372_v50 }
 0x18b   : > { %2966 = vmatmul.mubr.bf16.vlgmr.msra.gmra.mrb[0].mxu1 %v4210_v23  ;;  %v3378_v23 = vld [vmem:[#allocation15 + $0x230] sm:$0xff]  }
 0x18c   : > { %3062 = vmatmul.mubr.bf16.vlgmr.msra.gmra.mrb[0].mxu0 %v4172_v44  ;;  %3101 = vmatpush3.bf16.msra.mxu1 %v3372_v50  ;;  %v3376_v44 = vld [vmem:[#allocation15 + $0x220] sm:$0xff]  }
 0x18d   : > { %3070 = vmatpush3.bf16.msra.mxu0 %v3372_v50  ;;  %3065 = vmatprep.mubr.bf16.mxu0 %v4189_v61  ;;  %v3377_v61 = vld [vmem:[#allocation15 + $0x228] sm:$0xff]  }
 0x18e   : > { %3071 = vmatprep.subr.bf16.mxu0 %v3373_v52  ;;  %2969 = vmatprep.mubr.bf16.mxu1 %v4229_v38  ;;  %v3379_v38 = vld [vmem:[#allocation15 + $0x238] sm:$0xff]  }
 0x18f   : > { %3094 = vmatprep.subr.bf16.mxu1 %v3373_v52 }
 0x190   : > { %3102 = vmatpush3.bf16.msra.mxu1 %v3373_v52 }
 0x191   : > { %3072 = vmatpush3.bf16.msra.mxu0 %v3373_v52  ;;  %3095 = vmatprep.subr.bf16.mxu1 %v3374_v6 }
 0x192   : > { %3073 = vmatprep.subr.bf16.mxu0 %v3374_v6 }
 0x193   : > { %2970 = vmatmul.mubr.bf16.gmra.mrb[4].mxu1 %v4275_v14 }
 0x194   : > { %3066 = vmatmul.mubr.bf16.gmra.mrb[4].mxu0 %v4256_v2  ;;  %3103 = vmatpush3.bf16.msra.mxu1 %v3374_v6 }
 0x195   : > { %3074 = vmatpush3.bf16.msra.mxu0 %v3374_v6  ;;  %3085 = vmatprep.mubr.bf16.mxu0 %v4240_v51  ;;  %v2063_v51 = vld [vmem:[#allocation4 + $0x28] sm:$0xff] }
 0x196   : > { %3075 = vmatprep.subr.bf16.mxu0 %v3375_v54  ;;  %3096 = vmatprep.subr.bf16.mxu1 %v3375_v54 }
 0x197   : > { %3089 = vmatprep.mubr.bf16.mxu1 %v4252_v62 }
 0x198   : > { %3104 = vmatpush3.bf16.msra.mxu1 %v3375_v54 }
 0x199   : > { %3076 = vmatpush3.bf16.msra.mxu0 %v3375_v54  ;;  %3097 = vmatprep.subr.bf16.mxu1 %v3376_v44 }
 0x19a   : > { %3077 = vmatprep.subr.bf16.mxu0 %v3376_v44 }
 0x19c   : > { %3105 = vmatpush3.bf16.msra.mxu1 %v3376_v44 }
 0x19d   : > { %3078 = vmatpush3.bf16.msra.mxu0 %v3376_v44  ;;  %3098 = vmatprep.subr.bf16.mxu1 %v3377_v61 }
 0x19e   : > { %3079 = vmatprep.subr.bf16.mxu0 %v3377_v61 }
 0x1a0   : > { %3106 = vmatpush3.bf16.msra.mxu1 %v3377_v61 }
 0x1a1   : > { %3080 = vmatpush3.bf16.msra.mxu0 %v3377_v61  ;;  %3099 = vmatprep.subr.bf16.mxu1 %v3378_v23 }
 0x1a2   : > { %3081 = vmatprep.subr.bf16.mxu0 %v3378_v23 }
 0x1a4   : > { %3107 = vmatpush3.bf16.msra.mxu1 %v3378_v23 }
 0x1a5   : > { %3082 = vmatpush3.bf16.msra.mxu0 %v3378_v23  ;;  %3100 = vmatprep.subr.bf16.mxu1 %v3379_v38 }
 0x1a6   : > { %3083 = vmatprep.subr.bf16.mxu0 %v3379_v38 }
 0x1a8   : > { %3108 = vmatpush3.bf16.msra.mxu1 %v3379_v38 }
 0x1a9   : > { %3084 = vmatpush3.bf16.msra.mxu0 %v3379_v38 }
 0x1ab   : > { %3090 = vmatmul.mubr.bf16.vlgmr.msra.gmra.mrb[8].mxu1 %v2063_v51 }
 0x1ac   : > { %3086 = vmatmul.mubr.bf16.vlgmr.msra.gmra.mrb[0].mxu0 %v4249_v59 }
 0x25e   : > { %v2967_v57 = vpop.f32.mrb[0].mxu1 }
 0x25f   : > { %v1369_v60 = vpop.f32.mrb[1].mxu1 }
 0x260   : > { %v2968_v63 = vpop.f32.mrb[2].mxu1 }
 0x261   : > { %v1372_v1 = vpop.f32.mrb[3].mxu1 }
 0x266   : > { %v2971_v2 = vpop.f32.mrb[4].mxu1 }
 0x267   : > { %v3067_v55 = vpop.f32.mrb[4].mxu0  ;;  %v1385_v4 = vpop.f32.mrb[5].mxu1 }
 0x268   : > { %v2020_v58 = vpop.f32.mrb[5].mxu0  ;;  %v3113_v3 = vadd.f32 %v3067_v55, %v2971_v2  ;;  %v2972_v7 = vpop.f32.mrb[6].mxu1 }
 0x269   : > { %v3068_v62 = vpop.f32.mrb[6].mxu0  ;;  %v3115_v5 = vadd.f32 %v2020_v58, %v1385_v4  ;;  %v1388_v59 = vpop.f32.mrb[7].mxu1 }
 0x26a   : > { %v2023_v0 = vpop.f32.mrb[7].mxu0  ;;  %v3117_v8 = vadd.f32 %v3068_v62, %v2972_v7 }
 0x26b   : > { %v3119_v10 = vadd.f32 %v2023_v0, %v1388_v59 }
 0x27e   : > { %v3091_v32 = vpop.f32.mrb[8].mxu1 }
 0x27f   : > { %v3087_v11 = vpop.f32.mrb[0].mxu0  ;;  %v3114_v33 = vadd.f32 %v3113_v3, %v3091_v32  ;;  %v2179_v34 = vpop.f32.mrb[9].mxu1 }
 0x280   : > { %v3109_v15 = vadd.f32 %v3087_v11, %v2967_v57  ;;  %v2163_v17 = vpop.f32.mrb[1].mxu0  ;;  %v3116_v14 = vadd.f32 %v3115_v5, %v2179_v34  ;;  %v3092_v35 = vpop.f32.mrb[10].mxu1 }
 0x281   : > { %v3110_v18 = vadd.f32 %v2163_v17, %v1369_v60  ;;  %v3088_v16 = vpop.f32.mrb[2].mxu0  ;;  %v3118_v40 = vadd.f32 %v3117_v8, %v3092_v35  ;;  %v2182_v41 = vpop.f32.mrb[11].mxu1  ;;  %v2286_v22 = vmul.f32 %v3114_v33, %v3114_v33 }
 0x282   : > { %v3111_v20 = vadd.f32 %v3088_v16, %v2968_v63  ;;  %v2166_v21 = vpop.f32.mrb[3].mxu0  ;;  %v2282_v29 = vmul.f32 %v3109_v15, %v3109_v15  ;;  %v2284_v42 = vmul.f32 %v3116_v14, %v3116_v14  ;;  %v3120_v13 = vadd.f32 %v3119_v10, %v2182_v41 }
 0x283   : > { %v3112_v24 = vadd.f32 %v2166_v21, %v1372_v1  ;;  %v2280_v26 = vmul.f32 %v3110_v18, %v3110_v18  ;;  %v2761_v45 = vpack.c.bf16 %v3118_v40, %v3114_v33 }
 0x284   : > { %v2751_v25 = vpack.c.bf16 %v3111_v20, %v3109_v15  ;;  %v2283_v56 = vmul.f32 %v3111_v20, %v3111_v20  ;;  %v2756_v46 = vpack.c.bf16 %v3120_v13, %v3116_v14  ;;  %v2285_v39 = vmul.f32 %v3120_v13, %v3120_v13 }
 0x285   : > { %v2746_v19 = vpack.c.bf16 %v3112_v24, %v3110_v18  ;;  %v2266_v27 = vadd.f32 %v3112_v24, %v3110_v18  ;;  %v2281_v28 = vmul.f32 %v3112_v24, %v3112_v24  ;;  %2768 = vst [vmem:[%s4130_s29 + $0x18] sm:$0xff] %v2761_v45  }
 0x286   : > { %2766 = vst [vmem:[%s4130_s29 + $0x8] sm:$0xff] %v2751_v25   ;;  %2767 = vst [vmem:[%s4130_s29 + $0x10] sm:$0xff] %v2756_v46  }
 0x287   : > { %2747 = vst [vmem:[%s4130_s29] sm:$0xff] %v2746_v19   ;;  %v2267_v30 = vadd.f32 %v3109_v15, %v2266_v27  ;;  %v2288_v31 = vadd.f32 %v2281_v28, %v2280_v26 }
 0x289   : > { %v2289_v36 = vadd.f32 %v2288_v31, %v2282_v29  ;;  %v2268_v37 = vadd.f32 %v3111_v20, %v2267_v30 }
 0x28b   : > { %v2290_v9 = vadd.f32 %v2289_v36, %v2283_v56  ;;  %v2269_v43 = vadd.f32 %v3116_v14, %v2268_v37 }
 0x28d   : > { %v2270_v47 = vadd.f32 %v3120_v13, %v2269_v43  ;;  %v2291_v48 = vadd.f32 %v2290_v9, %v2284_v42 }
 0x28f   : > { %v2271_v49 = vadd.f32 %v3114_v33, %v2270_v47  ;;  %v2292_v50 = vadd.f32 %v2291_v48, %v2285_v39 }
 0x290   : > { %3567 = shalt.err (!%p3564_p7)
}
 0x291   : > { %s3568_s21 = scalar_lea.hbm %s4303_s28, 512  ;;  %s3572_s23 = scalar_lea.hbm %s4534_s8, 4096 }
 0x292   : > { %p3569_p10 = scmp.ne.s32.totalorder %s4303_s28, %s3568_s21  ;;  %p3573_p11 = scmp.lt.u32.totalorder %s4303_s28, %s4534_s8 }
 0x293   : > { %p3574_p13 = scmp.lt.u32.totalorder %s3572_s23, %s3568_s21  ;;  %p3576_p0 = scmp.lt.u32.totalorder %s3568_s21, %s4303_s28 }
 0x294   : > { %p3570_p1 = pnand %p3569_p10, %p4535_p3 }
 0x295   : > { %p3575_p2 = por %p3574_p13, %p3573_p11 }
 0x296   : > { %p3571_p6 = pneg %p3570_p1 }
 0x297   : > { %p3577_p5 = por %p3576_p0, %p3575_p2 }
 0x299   : > { %p3578_p9 = pnand %p3577_p5, %p3571_p6 }
 0x29b   : > { %3581 = shalt.err (!%p3578_p9)
}
 0x29c   : > { %s3737_s7 = smov 64   ;;  %s3738_s18 = smov 4   ;;  %v2287_v12 = vmul.f32 %v3118_v40, %v3118_v40  ;;  %v2272_v52 = vadd.f32 %v3118_v40, %v2271_v49  ;;  %v2293_v53 = vadd.f32 %v2292_v50, %v2286_v22 }
 0x29d   : > { %3191 = dma.vmem_to_hbm [thread:$0]  (%p4535_p3), %s4298_s19, 512, %s4303_s28, %s2303_s22, %s3737_s7, %s3737_s7, %s3738_s18  }
 0x29e   : > { %v2294_v6 = vadd.f32 %v2293_v53, %v2287_v12  ;;  %v2273_v54 = vrot.slane %v2272_v52, 4  ;;  %s2703_s27 = sshll.u32 %s4532_s13, 2  ;;  %s2345_s19 = sshll.u32 %s481_s17, 4  ;;  %s4342_s19 = int_to_ptr.vmem [resolvable:$true] %s2345_s19 }
 0x29f   : > { %s2341_s24 = sadd.s32 %s4531_s12, %s2703_s27  ;;  %s2360_s28 = sshll.u32 %s487_s16, 4  ;;  %s4351_s28 = int_to_ptr.vmem [resolvable:$true] %s2360_s28 }
 0x2a0   : > { %v2274_v44 = vadd.f32 %v2273_v54, %v2272_v52  ;;  %v2295_v61 = vrot.slane %v2294_v6, 4  ;;  %s2704_s14 = sshll.u32 %s2341_s24, 4  ;;  %s4537_s15 = sld [smem:[#allocation43_spill]] }
 0x2a1   : > { %s4538_s29 = sld [smem:[#allocation44_spill]]  ;;  %s4355_s9 = scalar_lea.sflag [#allocation19], %s412_s20 }
 0x2a2   : > { %v2275_v23 = vrot.slane %v2274_v44, 2  ;;  %v2296_v38 = vadd.f32 %v2295_v61, %v2294_v6  ;;  %s3582_s25 = scalar_lea.vmem %s4342_s19, 16  ;;  %s3739_s7 = smov [#allocation18]  }
 0x2a3   : > { %p3583_p8 = scmp.ne.s32.totalorder %s4342_s19, %s3582_s25  ;;  %s3586_s18 = sshll.u32 %s3739_s7, 4  ;;  %s3587_s18 = int_to_ptr.vmem [resolvable:$false] %s3586_s18 }
 0x2a4   : > { %v2276_v51 = vadd.f32 %v2275_v23, %v2274_v44  ;;  %v2297_v55 = vrot.slane %v2296_v38, 2  ;;  %p3589_p7 = scmp.lt.s32.totalorder %s4342_s19, %s3587_s18 }
 0x2a5   : > { %p3584_p12 = pnand %p3583_p8, %p4535_p3 }
 0x2a6   : > { %v2277_v57 = vrot.slane %v2276_v51, 1  ;;  %v2298_v58 = vadd.f32 %v2297_v55, %v2296_v38  ;;  %s4340_s30 = scalar_lea.hbm %s4537_s15, %s2704_s14 }
 0x2a7   : > { %s4539_s26 = smov %s4538_s29  ;;  %s4349_s23 = scalar_lea.hbm %s4538_s29, %s2704_s14 }
 0x2a8   : > { %v2278_v60 = vadd.f32 %v2277_v57, %v2276_v51  ;;  %v2299_v62 = vrot.slane %v2298_v58, 1  ;;  %p3585_p4 = pneg %p3584_p12 }
 0x2aa   : > { %2279 = vst [vmem:[%s481_s17] sm:$0x1] %v2278_v60  ;;  %v2300_v63 = vadd.f32 %v2299_v62, %v2298_v58  ;;  %s3588_s17 = scalar_lea.vmem %s3587_s18, 32 }
 0x2ab   : > { %p3590_p10 = scmp.lt.s32.totalorder %s3588_s17, %s3582_s25 }
 0x2ad   : > { %p3591_p1 = por %p3590_p10, %p3589_p7 }
 0x2af   : > { %p3592_p6 = pnand %p3591_p1, %p3585_p4 }
 0x2b1   : > { %3595 = shalt.err (!%p3592_p6)
}
 0x2b2   : > { %s3596_s20 = scalar_lea.hbm %s4340_s30, 16  ;;  %s3600_s3 = scalar_lea.hbm %s4537_s15, 128 }
 0x2b3   : > { %p3597_p11 = scmp.ne.s32.totalorder %s4340_s30, %s3596_s20  ;;  %p3601_p0 = scmp.lt.u32.totalorder %s4340_s30, %s4537_s15 }
 0x2b4   : > { %p3602_p5 = scmp.lt.u32.totalorder %s3600_s3, %s3596_s20  ;;  %p3604_p8 = scmp.lt.u32.totalorder %s3596_s20, %s4340_s30 }
 0x2b5   : > { %p3598_p13 = pnand %p3597_p11, %p4535_p3 }
 0x2b6   : > { %p3603_p9 = por %p3602_p5, %p3601_p0 }
 0x2b7   : > { %p3599_p2 = pneg %p3598_p13 }
 0x2b8   : > { %p3605_p12 = por %p3604_p8, %p3603_p9 }
 0x2ba   : > { %p3606_p4 = pnand %p3605_p12, %p3599_p2 }
 0x2bc   : > { %3609 = shalt.err (!%p3606_p4)
}
 0x2bd   : > { %3192 = dma.vmem_to_hbm [thread:$0]  (%p4535_p3), %s4342_s19, 16, %s4340_s30, %s4355_s9   ;;  %2301 = vst [vmem:[%s487_s16] sm:$0x1] %v2300_v63 }
 0x2be   : > { %s3610_s13 = scalar_lea.vmem %s4351_s28, 16  ;;  %s3740_s12 = smov [#allocation20]  }
 0x2bf   : > { %p3611_p7 = scmp.ne.s32.totalorder %s4351_s28, %s3610_s13  ;;  %s3614_s21 = sshll.u32 %s3740_s12, 4  ;;  %s3615_s21 = int_to_ptr.vmem [resolvable:$false] %s3614_s21 }
 0x2c0   : > { %s3616_s29 = scalar_lea.vmem %s3615_s21, 32  ;;  %p3617_p6 = scmp.lt.s32.totalorder %s4351_s28, %s3615_s21 }
 0x2c1   : > { %p3612_p10 = pnand %p3611_p7, %p4535_p3  ;;  %p3618_p11 = scmp.lt.s32.totalorder %s3616_s29, %s3610_s13 }
 0x2c3   : > { %p3613_p1 = pneg %p3612_p10  ;;  %p3619_p13 = por %p3618_p11, %p3617_p6 }
 0x2c5   : > { %p3620_p2 = pnand %p3619_p13, %p3613_p1 }
 0x2c7   : > { %3623 = shalt.err (!%p3620_p2)
}
 0x2c8   : > { %s3624_s1 = scalar_lea.hbm %s4349_s23, 16  ;;  %s3628_s30 = scalar_lea.hbm %s4539_s26, 128 }
 0x2c9   : > { %p3625_p0 = scmp.ne.s32.totalorder %s4349_s23, %s3624_s1  ;;  %p3629_p8 = scmp.lt.u32.totalorder %s4349_s23, %s4539_s26 }
 0x2ca   : > { %p3630_p12 = scmp.lt.u32.totalorder %s3628_s30, %s3624_s1  ;;  %p3632_p7 = scmp.lt.u32.totalorder %s3624_s1, %s4349_s23 }
 0x2cb   : > { %p3626_p5 = pnand %p3625_p0, %p4535_p3 }
 0x2cc   : > { %p3631_p4 = por %p3630_p12, %p3629_p8 }
 0x2cd   : > { %p3627_p9 = pneg %p3626_p5 }
 0x2ce   : > { %p3633_p10 = por %p3632_p7, %p3631_p4 }
 0x2d0   : > { %p3634_p1 = pnand %p3633_p10, %p3627_p9 }
 0x2d2   : > { %3637 = shalt.err (!%p3634_p1)
}
 0x2d3   : > { %3193 = dma.vmem_to_hbm [thread:$0]  (%p4535_p3), %s4351_s28, 16, %s4349_s23, %s4355_s9  }
 0x2d4 PF: > { %s4540_s18 = sld [smem:[#allocation32_spill]]  ;;  %s4541_s17 = sld [smem:[#allocation27_spill]] }
 0x2d5   : > { %s4542_s20 = sld [smem:[#allocation36_spill]] }
 0x2da   : > { %p3234_p6 = scmp.ge.s32.totalorder %s4540_s18, 2  ;;  %s2372_s27 = sand.u32 1, %s4541_s17  }
 0x2db   : > { %p4543_p11 = scmp.ne.s32.totalorder %s4542_s20, 0  ;;  %s2373_s24 = scalar_lea.sflag [#allocation8], %s2372_s27 }
 0x2dd   : > { %p3218_p13 = pnand %p3234_p6, %p4543_p11 }
 0x2df   : > { %3687 = dma.done.wait (!%p3218_p13), %s2373_s24, 512  }
 0x2e0   : > { %3689 = vsyncadd (!%p3218_p13), %s2373_s24, 4294966784  ;;  %s4544_s3 = sadd.s32 4294967294, %s4540_s18  }
 0x2e1   : > { %s2381_s14 = sand.u32 1, %s4544_s3  }
 0x2e2   : > { %s2382_s22 = scalar_lea.sflag [#allocation19], %s2381_s14 }
 0x2e3   : > { %3691 = dma.done.wait (!%p3218_p13), %s2382_s22, 32  }
 0x2e4   : > { %3693 = vsyncadd (!%p3218_p13), %s2382_s22, 4294967264  ;;  %s33_s12 = sadd.s32 1, %s4540_s18   ;;  %s4545_s27 = sld [smem:[#allocation28_spill]] }
 0x2e5   : > { %p30_p3 = scmp.ge.s32.totalorder %s33_s12, 10   ;;  %s4546_s28 = sld [smem:[#allocation29_spill]] }
 0x2e6   : > { %s4547_s29 = sld [smem:[#allocation39_spill]]  ;;  %s4548_s6 = sld [smem:[#allocation37_spill]] }
 0x2e7   : > { %s4549_s23 = sld [smem:[#allocation38_spill]]  ;;  %s4550_s30 = smov %s3716_s10 }
 0x2e8   : > { %s4551_s9 = smov %s3720_s11  ;;  %32 = sbr.rel (!%p30_p3) target bundleno = 19 (0x13), region = 180 }
 0x2ec   : > { %s4552_s10 = smov %s4548_s6 }
 0x2ed   : > { %s4553_s11 = smov %s4549_s23 }
 0x2ef   :  { %2394 = vsyncpa [#allocation7], 1 }
 0x2f0   :  { %2396 = vsyncpa [#allocation7 + $0x1], 1 }
 0x2f1   :  { %2397 = vsyncpa [#allocation10], 1 }
 0x2f2   :  { %2399 = vsyncpa [#allocation10 + $0x1], 1 }
 0x2f3   :  { %2400 = vsyncpa [#allocation13], 1 }
 0x2f4   :  { %2401 = vsyncpa [#allocation16], 1 }
 0x2f5   :  { %2402 = vsyncpa [#allocation8], 1 }
 0x2f6   :  { %2404 = vsyncpa [#allocation8 + $0x1], 1 }
 0x2f7   :  { %2405 = vsyncpa [#allocation19], 1 }
 0x2f8   :  { %2407 = vsyncpa [#allocation19 + $0x1], 1 }

</bundles_post_ra>
